<compile_context>
chip_gen: v7x
topology: tpu7x:2x2x1
jax: 0.10.0
libtpu: 0.0.40
codegen_flags: <defaults>
</compile_context>

<pallas_src>
import functools

import jax
import jax.numpy as jnp
from jax.experimental import pallas as pl
from jax.experimental.pallas import tpu as pltpu


def _round_up(x, m):
    return (x + m - 1) // m * m


# ----------------------------- Pallas kernels ------------------------------

def _matmul_bias_act_kernel(cols_ref, w_ref, shift_ref, o_ref, *, relu):
    # cols_ref: (TM, K) bf16   w_ref: (K, N) bf16   shift_ref: (1, N) f32
    y = jnp.dot(cols_ref[...], w_ref[...], preferred_element_type=jnp.float32)
    y = y + shift_ref[...]
    if relu:
        y = jnp.maximum(y, 0.0)
    o_ref[...] = y.astype(o_ref.dtype)


def matmul_bias_act(lhs, w, shift, *, relu, out_dtype=jnp.bfloat16):
    """(M, K) @ (K, N) + shift[1, N] (+ ReLU), row-tiled over a 1-D grid."""
    M, K = lhs.shape
    N = w.shape[1]
    tile_m = min(512, _round_up(M, 16))
    m_pad = _round_up(M, tile_m)
    if m_pad != M:
        lhs = jnp.pad(lhs, ((0, m_pad - M), (0, 0)))
    out = pl.pallas_call(
        functools.partial(_matmul_bias_act_kernel, relu=relu),
        out_shape=jax.ShapeDtypeStruct((m_pad, N), out_dtype),
        grid_spec=pltpu.PrefetchScalarGridSpec(
            num_scalar_prefetch=0,
            grid=(m_pad // tile_m,),
            in_specs=[
                pl.BlockSpec((tile_m, K), lambda i: (i, 0)),
                pl.BlockSpec((K, N), lambda i: (0, 0)),   # weight stays resident
                pl.BlockSpec((1, N), lambda i: (0, 0)),
            ],
            out_specs=pl.BlockSpec((tile_m, N), lambda i: (i, 0)),
        ),
        compiler_params=pltpu.CompilerParams(
            dimension_semantics=("parallel",),
            vmem_limit_bytes=32 * 1024 * 1024),
    )(lhs, w, shift)
    return out[:M] if m_pad != M else out


def _final_head_kernel(x_ref, wf_ref, b_ref, cu_ref, cv_ref, cd_ref,
                       kp3d_ref, confd_ref, *, nclasses, depth):
    # x_ref: (P, C) bf16 activations of one batch element, rows in raster order
    # wf_ref: (C, NC*D) bf16 1x1-conv weight, b_ref: (1, NC*D) f32 bias
    # cu/cv: (P, 1) f32 u/v coordinate weights, cd: (1, D) f32 depth weights
    x = x_ref[...]
    cu = cu_ref[...]
    cv = cv_ref[...]
    cd = cd_ref[...]
    for nc in range(nclasses):                               # static unroll
        w_nc = wf_ref[:, nc * depth:(nc + 1) * depth]        # (C, D)
        b_nc = b_ref[:, nc * depth:(nc + 1) * depth]         # (1, D)
        logits = jnp.dot(x, w_nc, preferred_element_type=jnp.float32) + b_nc
        m = jnp.max(jnp.max(logits, axis=1, keepdims=True),
                    axis=0, keepdims=True)                   # (1, 1) class max
        e = jnp.exp(logits - m)                              # (P, D)
        ecol = jnp.sum(e, axis=1, keepdims=True)             # (P, 1) marginal
        erow = jnp.sum(e, axis=0, keepdims=True)             # (1, D) marginal
        s = jnp.sum(ecol, axis=0, keepdims=True)             # (1, 1)
        u = jnp.sum(ecol * cu, axis=0, keepdims=True)        # (1, 1)
        v = jnp.sum(ecol * cv, axis=0, keepdims=True)        # (1, 1)
        d = jnp.sum(erow * cd, axis=1, keepdims=True)        # (1, 1)
        inv_s = 1.0 / s        # == max(softmax): max(e) == exp(0) == 1 exactly
        # torch: p = softmax(x); confd = max(p); p = p / (p.sum() + 1e-7)
        factor = inv_s / (s * inv_s + 1e-7)
        kp3d_ref[pl.ds(nc, 1), pl.ds(0, 1)] = u * factor
        kp3d_ref[pl.ds(nc, 1), pl.ds(1, 1)] = v * factor
        kp3d_ref[pl.ds(nc, 1), pl.ds(2, 1)] = d * factor
        confd_ref[pl.ds(nc, 1), :] = inv_s


def final_conv_integral_head(x_rows, wf, bias, cu, cv, cd, *, nclasses, depth):
    """Fused 1x1 conv + per-class softmax + confidence + integral-3D head."""
    B, P, C = x_rows.shape
    NCD = wf.shape[1]
    kernel = functools.partial(_final_head_kernel, nclasses=nclasses, depth=depth)
    kp3d, confd = pl.pallas_call(
        kernel,
        out_shape=(jax.ShapeDtypeStruct((B, nclasses, 3), jnp.float32),
                   jax.ShapeDtypeStruct((B, nclasses, 1), jnp.float32)),
        grid_spec=pltpu.PrefetchScalarGridSpec(
            num_scalar_prefetch=0,
            grid=(B,),
            in_specs=[
                pl.BlockSpec((None, P, C), lambda b: (b, 0, 0)),
                pl.BlockSpec((C, NCD), lambda b: (0, 0)),
                pl.BlockSpec((1, NCD), lambda b: (0, 0)),
                pl.BlockSpec((P, 1), lambda b: (0, 0)),
                pl.BlockSpec((P, 1), lambda b: (0, 0)),
                pl.BlockSpec((1, depth), lambda b: (0, 0)),
            ],
            out_specs=(
                pl.BlockSpec((None, nclasses, 3), lambda b: (b, 0, 0)),
                pl.BlockSpec((None, nclasses, 1), lambda b: (b, 0, 0)),
            ),
        ),
        compiler_params=pltpu.CompilerParams(
            dimension_semantics=("parallel",),
            vmem_limit_bytes=32 * 1024 * 1024),
    )(x_rows, wf, bias, cu, cv, cd)
    return kp3d, confd[..., 0]


# ------------------------------- JAX glue -----------------------------------

def _im2col3x3(xp):
    """xp: (B, H+2, W+2, C) -> (B, H*W, 9*C) stride-1 3x3 patches (dh-major)."""
    B, Hp, Wp, C = xp.shape
    H, W = Hp - 2, Wp - 2
    patches = [xp[:, dh:dh + H, dw:dw + W, :]
               for dh in range(3) for dw in range(3)]
    cols = jnp.stack(patches, axis=3)                        # (B, H, W, 9, C)
    return cols.reshape(B, H * W, 9 * C)


# (output-phase r|s, patch-offset dh|dw) -> deconv kernel tap kh|kw (k=4,s=2,p=1)
_PHASE_TAPS = {(0, 0): 3, (0, 1): 1, (1, 1): 2, (1, 2): 0}


def _phase_weight_matrix(w_fold):
    """w_fold: (Cin, Cout, 4, 4) BN-folded ConvTranspose2d weight ->
    (9*Cin, 4*Cout); rows = (dh*3+dw)*Cin + ci, cols = (r*2+s)*Cout + co."""
    Cin, Cout = w_fold.shape[0], w_fold.shape[1]
    wm = jnp.zeros((3, 3, Cin, 2, 2, Cout), jnp.float32)
    for (r, dh), kh in _PHASE_TAPS.items():
        for (s, dw), kw in _PHASE_TAPS.items():
            wm = wm.at[dh, dw, :, r, s, :].set(w_fold[:, :, kh, kw])
    return wm.reshape(9 * Cin, 4 * Cout)


def deconv_bn_relu(x, wm, shift):
    """Phase-decomposed ConvTranspose2d(k=4,s=2,p=1) + BN(eval, folded) + ReLU.
    x: (B, H, W, Cin) -> (B, 2H, 2W, Cout)."""
    B, H, W, Cin = x.shape
    Cout = wm.shape[1] // 4
    xp = jnp.pad(x, ((0, 0), (1, 1), (1, 1), (0, 0)))
    cols = _im2col3x3(xp).reshape(B * H * W, 9 * Cin).astype(jnp.bfloat16)
    y = matmul_bias_act(cols, wm, shift, relu=True)          # (B*H*W, 4*Cout)
    y = y.reshape(B, H, W, 2, 2, Cout).transpose(0, 1, 3, 2, 4, 5)
    return y.reshape(B, 2 * H, 2 * W, Cout)


def prepare_params(params, eps=1e-5):
    """One-time, outside-the-forward weight prep: BN folding, phase-decomposed
    matmul weight layout, bf16 casts, shift vectors."""
    prep = {'deconv': []}
    for lp in params['deconv']:
        w = lp['w']                                          # (Cin, Cout, 4, 4)
        assert w.shape[2] == 4 and w.shape[3] == 4, \
            "TODO(synk): only deconv kernel_size=4 (stride 2, pad 1) supported"
        scale = lp['gamma'] / jnp.sqrt(lp['var'] + eps)
        shift = lp['beta'] - lp['mean'] * scale
        if lp.get('bias') is not None:                       # DECONV_WITH_BIAS
            shift = shift + lp['bias'] * scale
        w_fold = (w * scale[None, :, None, None]).astype(jnp.float32)
        wm = _phase_weight_matrix(w_fold)
        prep['deconv'].append({
            'wm': wm.astype(jnp.bfloat16),
            # shift for output column (r*2+s)*Cout + co  ->  shift[co]
            'shift': jnp.tile(shift.astype(jnp.float32)[None, :], (1, 4)),
        })
    wf = params['final']['w']                                # (NC*D, Cin, kf, kf)
    assert wf.shape[2] == 1 and wf.shape[3] == 1, \
        "TODO(synk): only FINAL_CONV_KERNEL=1 supported"
    NCD, Cin = wf.shape[0], wf.shape[1]
    prep['final'] = {
        'wm': wf.reshape(NCD, Cin).T.astype(jnp.bfloat16),   # (Cin, NC*D)
        'bias': params['final']['b'].reshape(1, NCD).astype(jnp.float32),
    }
    return prep


def integral_deconv_head_forward(feature_nchw, prep, cfg):
    assert cfg['NORM_TYPE'] == 'softmax', \
        "TODO(synk): 'sigmoid'/'divide_sum' norm types not implemented"
    NC, D = cfg['NCLASSES'], cfg['DEPTH_RESOLUTION']
    x = jnp.transpose(feature_nchw, (0, 2, 3, 1)).astype(jnp.bfloat16)  # NHWC
    for lp in prep['deconv']:
        x = deconv_bn_relu(x, lp['wm'], lp['shift'])
    B, H, W, C = x.shape
    x_rows = x.reshape(B, H * W, C)

    # raster-order integral coordinate weights (torch: arange(N)/N)
    idx = jnp.arange(H * W, dtype=jnp.int32)
    cu = ((idx % W).astype(jnp.float32) / W)[:, None]        # (P, 1)
    cv = ((idx // W).astype(jnp.float32) / H)[:, None]       # (P, 1)
    cd = (jnp.arange(D, dtype=jnp.float32) / D)[None, :]     # (1, D)

    kp3d, confd = final_conv_integral_head(
        x_rows, prep['final']['wm'], prep['final']['bias'], cu, cv, cd,
        nclasses=NC, depth=D)
    return {'kp3d': kp3d, 'kp3d_confd': confd}


# --------------------------- reference & params ------------------------------

def reference_forward(feature_nchw, params, cfg, eps=1e-5):
    """Pure-JAX reference (lax conv with lhs_dilation) with matmul operands
    rounded to bf16 at the same points as the Pallas path (parity check)."""
    def q(a):
        return a.astype(jnp.bfloat16).astype(jnp.float32)

    x = q(jnp.transpose(feature_nchw, (0, 2, 3, 1)))
    for lp in params['deconv']:
        scale = lp['gamma'] / jnp.sqrt(lp['var'] + eps)
        shift = lp['beta'] - lp['mean'] * scale
        if lp.get('bias') is not None:
            shift = shift + lp['bias'] * scale
        w_fold = q(lp['w'] * scale[None, :, None, None])     # (Cin, Cout, 4, 4)
        w_hwio = jnp.flip(w_fold, axis=(2, 3)).transpose(2, 3, 0, 1)
        y = jax.lax.conv_general_dilated(
            x, w_hwio, window_strides=(1, 1), padding=[(2, 2), (2, 2)],
            lhs_dilation=(2, 2), dimension_numbers=('NHWC', 'HWIO', 'NHWC'))
        x = q(jnp.maximum(y + shift[None, None, None, :], 0.0))
    B, H, W, C = x.shape
    NC, D = cfg['NCLASSES'], cfg['DEPTH_RESOLUTION']
    wf = q(params['final']['w'].reshape(NC * D, C))
    logits = (jnp.einsum('bhwc,kc->bkhw', x, wf)
              + params['final']['b'][None, :, None, None])
    heat = logits.reshape(B, NC, D * H * W)
    p = jax.nn.softmax(heat, axis=-1)
    confd = jnp.max(p, axis=-1)
    p = p / (jnp.sum(p, axis=-1, keepdims=True) + 1e-7)
    hm = p.reshape(B, NC, D, H, W)
    wu = jnp.arange(W, dtype=jnp.float32) / W
    wv = jnp.arange(H, dtype=jnp.float32) / H
    wd = jnp.arange(D, dtype=jnp.float32) / D
    u = jnp.einsum('bndhw,w->bn', hm, wu)
    v = jnp.einsum('bndhw,h->bn', hm, wv)
    d = jnp.einsum('bndhw,d->bn', hm, wd)
    kp3d = jnp.stack([u, v, d], axis=-1)
    return {'kp3d': kp3d, 'kp3d_confd': confd}


def init_params(key, cfg):
    """Deterministic synthetic parameter init mirroring the module shapes."""
    params = {'deconv': []}
    inplanes = cfg['INPUT_CHANNEL']
    for i in range(cfg['NUM_DECONV_LAYERS']):
        k = cfg['NUM_DECONV_KERNELS'][i]
        planes = cfg['NUM_DECONV_FILTERS'][i]
        key, sub = jax.random.split(key)
        std = (2.0 / (inplanes * k * k)) ** 0.5               # kaiming-ish
        w = std * jax.random.normal(sub, (inplanes, planes, k, k), jnp.float32)
        params['deconv'].append({
            'w': w,
            'gamma': jnp.ones((planes,), jnp.float32),
            'beta': jnp.zeros((planes,), jnp.float32),
            'mean': jnp.zeros((planes,), jnp.float32),
            'var': jnp.ones((planes,), jnp.float32),
            'bias': None,                                     # DECONV_WITH_BIAS=False
        })
        inplanes = planes
    kf = cfg['FINAL_CONV_KERNEL']
    cout = cfg['NCLASSES'] * cfg['DEPTH_RESOLUTION']
    key, sub = jax.random.split(key)
    std = (2.0 / (cout * kf * kf)) ** 0.5
    wf = std * jax.random.normal(sub, (cout, inplanes, kf, kf), jnp.float32)
    params['final'] = {'w': wf, 'b': jnp.zeros((cout,), jnp.float32)}
    return params


if __name__ == "__main__":
    cfg = dict(INPUT_CHANNEL=32, DEPTH_RESOLUTION=8, HEATMAP_SIZE=[16, 16],
               DECONV_WITH_BIAS=False, NCLASSES=4, NORM_TYPE='softmax',
               NUM_DECONV_LAYERS=2, NUM_DECONV_FILTERS=[32, 32],
               NUM_DECONV_KERNELS=[4, 4], FINAL_CONV_KERNEL=1)

    key = jax.random.PRNGKey(0)
    key, fk = jax.random.split(key)
    # feature 4x4 -> two stride-2 deconvs -> 16x16 heatmaps, depth 8, 4 classes
    feature = jax.random.normal(fk, (2, cfg['INPUT_CHANNEL'], 4, 4), jnp.float32)
    params = init_params(key, cfg)
    prep = prepare_params(params)        # one-time weight prep (BN fold, layout)

    fwd = jax.jit(lambda f, p: integral_deconv_head_forward(f, p, cfg))
    out = fwd(feature, prep)
    jax.block_until_ready(out)

    assert out['kp3d'].shape == (2, cfg['NCLASSES'], 3)
    assert out['kp3d_confd'].shape == (2, cfg['NCLASSES'])
    assert bool(jnp.all(jnp.isfinite(out['kp3d'])))
    assert bool(jnp.all(jnp.isfinite(out['kp3d_confd'])))

    # parity check vs pure-JAX reference (same bf16 rounding points)
    ref = jax.jit(lambda f, p: reference_forward(f, p, cfg))(feature, params)
    jax.block_until_ready(ref)
    assert bool(jnp.allclose(out['kp3d'], ref['kp3d'], rtol=2e-2, atol=2e-3))
    assert bool(jnp.allclose(out['kp3d_confd'], ref['kp3d_confd'],
                             rtol=2e-2, atol=1e-5))
    print("KERNEL_OK")
</pallas_src>

<mosaic_0001>
module attributes {stable_mosaic.version = 11 : i64} {
  func.func @_matmul_bias_act_kernel(%arg0: i32, %arg1: memref<32x288xbf16, #tpu.memory_space<vmem>>, %arg2: memref<288x128xbf16, #tpu.memory_space<vmem>>, %arg3: memref<1x128xf32, #tpu.memory_space<vmem>>, %arg4: memref<32x128xbf16, #tpu.memory_space<vmem>>) attributes {dimension_semantics = [#tpu.dimension_semantics<parallel>], iteration_bounds = array<i64: 1>, scalar_prefetch = 0 : i64, scratch_operands = 0 : i64, tpu.core_type = #tpu.core_type<tc>, window_params = [{transform_indices = @transform_0, window_bounds = array<i64: 32, 288>}, {pipeline_mode = #tpu.pipeline_mode<synchronous>, transform_indices = @transform_1, window_bounds = array<i64: 288, 128>}, {pipeline_mode = #tpu.pipeline_mode<synchronous>, transform_indices = @transform_2, window_bounds = array<i64: 1, 128>}, {transform_indices = @transform_3, window_bounds = array<i64: 32, 128>}]} {
    %c0 = arith.constant 0 : index
    %c0_0 = arith.constant 0 : index
    %0 = vector.load %arg1[%c0, %c0_0] : memref<32x288xbf16, #tpu.memory_space<vmem>>, vector<32x288xbf16>
    %c0_1 = arith.constant 0 : index
    %c0_2 = arith.constant 0 : index
    %1 = vector.load %arg2[%c0_1, %c0_2] : memref<288x128xbf16, #tpu.memory_space<vmem>>, vector<288x128xbf16>
    %cst = arith.constant dense<0.000000e+00> : vector<32x128xf32>
    %2 = tpu.matmul %0, %1, %cst {dimension_numbers = #tpu.dot_dimension_numbers<[1], [0], [0], [1], [0, 0, 1, 1], [], []>} : vector<32x288xbf16>, vector<288x128xbf16>, vector<32x128xf32> -> vector<32x128xf32>
    %c0_3 = arith.constant 0 : index
    %c0_4 = arith.constant 0 : index
    %3 = vector.load %arg3[%c0_3, %c0_4] : memref<1x128xf32, #tpu.memory_space<vmem>>, vector<1x128xf32>
    %4 = vector.broadcast %3 : vector<1x128xf32> to vector<32x128xf32>
    %5 = arith.addf %2, %4 : vector<32x128xf32>
    %cst_5 = arith.constant 0.000000e+00 : f32
    %6 = vector.broadcast %cst_5 : f32 to vector<32x128xf32>
    %7 = arith.maximumf %5, %6 : vector<32x128xf32>
    %8 = arith.truncf %7 : vector<32x128xf32> to vector<32x128xbf16>
    %c0_6 = arith.constant 0 : index
    %c0_7 = arith.constant 0 : index
    %9 = vector.load %arg4[%c0_6, %c0_7] : memref<32x128xbf16, #tpu.memory_space<vmem>>, vector<32x128xbf16>
    tpu.vector_store %arg4[%c0_6, %c0_7], %8 {strides = array<i32>} : memref<32x128xbf16, #tpu.memory_space<vmem>>, vector<32x128xbf16>,
    return
  }
  func.func @transform_0(%arg0: i32) -> (i32, i32) {
    %c0_i32 = arith.constant 0 : i32
    %c0_i32_0 = arith.constant 0 : i32
    return %arg0, %c0_i32 : i32, i32
  }
  func.func @transform_1(%arg0: i32) -> (i32, i32) {
    %c0_i32 = arith.constant 0 : i32
    %c0_i32_0 = arith.constant 0 : i32
    %c0_i32_1 = arith.constant 0 : i32
    return %c0_i32, %c0_i32_0 : i32, i32
  }
  func.func @transform_2(%arg0: i32) -> (i32, i32) {
    %c0_i32 = arith.constant 0 : i32
    %c0_i32_0 = arith.constant 0 : i32
    %c0_i32_1 = arith.constant 0 : i32
    return %c0_i32, %c0_i32_0 : i32, i32
  }
  func.func @transform_3(%arg0: i32) -> (i32, i32) {
    %c0_i32 = arith.constant 0 : i32
    %c0_i32_0 = arith.constant 0 : i32
    return %arg0, %c0_i32 : i32, i32
  }
}

module attributes {stable_mosaic.version = 11 : i64} {
  func.func @_matmul_bias_act_kernel(%arg0: i32, %arg1: memref<128x288xbf16, #tpu.memory_space<vmem>>, %arg2: memref<288x128xbf16, #tpu.memory_space<vmem>>, %arg3: memref<1x128xf32, #tpu.memory_space<vmem>>, %arg4: memref<128x128xbf16, #tpu.memory_space<vmem>>) attributes {dimension_semantics = [#tpu.dimension_semantics<parallel>], iteration_bounds = array<i64: 1>, scalar_prefetch = 0 : i64, scratch_operands = 0 : i64, tpu.core_type = #tpu.core_type<tc>, window_params = [{transform_indices = @transform_0, window_bounds = array<i64: 128, 288>}, {pipeline_mode = #tpu.pipeline_mode<synchronous>, transform_indices = @transform_1, window_bounds = array<i64: 288, 128>}, {pipeline_mode = #tpu.pipeline_mode<synchronous>, transform_indices = @transform_2, window_bounds = array<i64: 1, 128>}, {transform_indices = @transform_3, window_bounds = array<i64: 128, 128>}]} {
    %c0 = arith.constant 0 : index
    %c0_0 = arith.constant 0 : index
    %0 = vector.load %arg1[%c0, %c0_0] : memref<128x288xbf16, #tpu.memory_space<vmem>>, vector<128x288xbf16>
    %c0_1 = arith.constant 0 : index
    %c0_2 = arith.constant 0 : index
    %1 = vector.load %arg2[%c0_1, %c0_2] : memref<288x128xbf16, #tpu.memory_space<vmem>>, vector<288x128xbf16>
    %cst = arith.constant dense<0.000000e+00> : vector<128x128xf32>
    %2 = tpu.matmul %0, %1, %cst {dimension_numbers = #tpu.dot_dimension_numbers<[1], [0], [0], [1], [0, 0, 1, 1], [], []>} : vector<128x288xbf16>, vector<288x128xbf16>, vector<128x128xf32> -> vector<128x128xf32>
    %c0_3 = arith.constant 0 : index
    %c0_4 = arith.constant 0 : index
    %3 = vector.load %arg3[%c0_3, %c0_4] : memref<1x128xf32, #tpu.memory_space<vmem>>, vector<1x128xf32>
    %4 = vector.broadcast %3 : vector<1x128xf32> to vector<128x128xf32>
    %5 = arith.addf %2, %4 : vector<128x128xf32>
    %cst_5 = arith.constant 0.000000e+00 : f32
    %6 = vector.broadcast %cst_5 : f32 to vector<128x128xf32>
    %7 = arith.maximumf %5, %6 : vector<128x128xf32>
    %8 = arith.truncf %7 : vector<128x128xf32> to vector<128x128xbf16>
    %c0_6 = arith.constant 0 : index
    %c0_7 = arith.constant 0 : index
    %9 = vector.load %arg4[%c0_6, %c0_7] : memref<128x128xbf16, #tpu.memory_space<vmem>>, vector<128x128xbf16>
    tpu.vector_store %arg4[%c0_6, %c0_7], %8 {strides = array<i32>} : memref<128x128xbf16, #tpu.memory_space<vmem>>, vector<128x128xbf16>,
    return
  }
  func.func @transform_0(%arg0: i32) -> (i32, i32) {
    %c0_i32 = arith.constant 0 : i32
    %c0_i32_0 = arith.constant 0 : i32
    return %arg0, %c0_i32 : i32, i32
  }
  func.func @transform_1(%arg0: i32) -> (i32, i32) {
    %c0_i32 = arith.constant 0 : i32
    %c0_i32_0 = arith.constant 0 : i32
    %c0_i32_1 = arith.constant 0 : i32
    return %c0_i32, %c0_i32_0 : i32, i32
  }
  func.func @transform_2(%arg0: i32) -> (i32, i32) {
    %c0_i32 = arith.constant 0 : i32
    %c0_i32_0 = arith.constant 0 : i32
    %c0_i32_1 = arith.constant 0 : i32
    return %c0_i32, %c0_i32_0 : i32, i32
  }
  func.func @transform_3(%arg0: i32) -> (i32, i32) {
    %c0_i32 = arith.constant 0 : i32
    %c0_i32_0 = arith.constant 0 : i32
    return %arg0, %c0_i32 : i32, i32
  }
}

module attributes {stable_mosaic.version = 11 : i64} {
  func.func @_final_head_kernel(%arg0: i32, %arg1: memref<1x256x32xbf16, #tpu.memory_space<vmem>>, %arg2: memref<32x32xbf16, #tpu.memory_space<vmem>>, %arg3: memref<1x32xf32, #tpu.memory_space<vmem>>, %arg4: memref<256x1xf32, #tpu.memory_space<vmem>>, %arg5: memref<256x1xf32, #tpu.memory_space<vmem>>, %arg6: memref<1x8xf32, #tpu.memory_space<vmem>>, %arg7: memref<1x4x3xf32, #tpu.memory_space<vmem>>, %arg8: memref<1x4x1xf32, #tpu.memory_space<vmem>>) attributes {dimension_semantics = [#tpu.dimension_semantics<parallel>], iteration_bounds = array<i64: 2>, scalar_prefetch = 0 : i64, scratch_operands = 0 : i64, tpu.core_type = #tpu.core_type<tc>, window_params = [{transform_indices = @transform_0, window_bounds = array<i64: 1, 256, 32>}, {pipeline_mode = #tpu.pipeline_mode<synchronous>, transform_indices = @transform_1, window_bounds = array<i64: 32, 32>}, {pipeline_mode = #tpu.pipeline_mode<synchronous>, transform_indices = @transform_2, window_bounds = array<i64: 1, 32>}, {pipeline_mode = #tpu.pipeline_mode<synchronous>, transform_indices = @transform_3, window_bounds = array<i64: 256, 1>}, {pipeline_mode = #tpu.pipeline_mode<synchronous>, transform_indices = @transform_4, window_bounds = array<i64: 256, 1>}, {pipeline_mode = #tpu.pipeline_mode<synchronous>, transform_indices = @transform_5, window_bounds = array<i64: 1, 8>}, {transform_indices = @transform_6, window_bounds = array<i64: 1, 4, 3>}, {transform_indices = @transform_7, window_bounds = array<i64: 1, 4, 1>}]} {
    %c0 = arith.constant 0 : index
    %c0_0 = arith.constant 0 : index
    %c0_1 = arith.constant 0 : index
    %0 = vector.load %arg1[%c0, %c0_0, %c0_1] : memref<1x256x32xbf16, #tpu.memory_space<vmem>>, vector<1x256x32xbf16>
    %1 = vector.shape_cast %0 : vector<1x256x32xbf16> to vector<256x32xbf16>
    %c0_2 = arith.constant 0 : index
    %c0_3 = arith.constant 0 : index
    %2 = vector.load %arg4[%c0_2, %c0_3] : memref<256x1xf32, #tpu.memory_space<vmem>>, vector<256x1xf32>
    %c0_4 = arith.constant 0 : index
    %c0_5 = arith.constant 0 : index
    %3 = vector.load %arg5[%c0_4, %c0_5] : memref<256x1xf32, #tpu.memory_space<vmem>>, vector<256x1xf32>
    %c0_6 = arith.constant 0 : index
    %c0_7 = arith.constant 0 : index
    %4 = vector.load %arg6[%c0_6, %c0_7] : memref<1x8xf32, #tpu.memory_space<vmem>>, vector<1x8xf32>
    %c0_8 = arith.constant 0 : index
    %c0_9 = arith.constant 0 : index
    %5 = vector.load %arg2[%c0_8, %c0_9] : memref<32x32xbf16, #tpu.memory_space<vmem>>, vector<32x8xbf16>
    %c0_10 = arith.constant 0 : index
    %c0_11 = arith.constant 0 : index
    %6 = vector.load %arg3[%c0_10, %c0_11] : memref<1x32xf32, #tpu.memory_space<vmem>>, vector<1x8xf32>
    %cst = arith.constant dense<0.000000e+00> : vector<256x8xf32>
    %7 = tpu.matmul %1, %5, %cst {dimension_numbers = #tpu.dot_dimension_numbers<[1], [0], [0], [1], [0, 0, 1, 1], [], []>} : vector<256x32xbf16>, vector<32x8xbf16>, vector<256x8xf32> -> vector<256x8xf32>
    %8 = vector.broadcast %6 : vector<1x8xf32> to vector<256x8xf32>
    %9 = arith.addf %7, %8 : vector<256x8xf32>
    %cst_12 = arith.constant dense<0xFF800000> : vector<256xf32>
    %10 = vector.multi_reduction <maximumf>, %9, %cst_12 [1] : vector<256x8xf32> to vector<256xf32>
    %11 = vector.shape_cast %10 : vector<256xf32> to vector<256x1xf32>
    %cst_13 = arith.constant dense<0xFF800000> : vector<1xf32>
    %12 = vector.multi_reduction <maximumf>, %11, %cst_13 [0] : vector<256x1xf32> to vector<1xf32>
    %13 = vector.shape_cast %12 : vector<1xf32> to vector<1x1xf32>
    %14 = vector.broadcast %13 : vector<1x1xf32> to vector<256x8xf32>
    %15 = arith.subf %9, %14 : vector<256x8xf32>
    %16 = math.exp %15 : vector<256x8xf32>
    %cst_14 = arith.constant dense<0.000000e+00> : vector<256xf32>
    %17 = vector.multi_reduction <add>, %16, %cst_14 [1] : vector<256x8xf32> to vector<256xf32>
    %18 = vector.shape_cast %17 : vector<256xf32> to vector<256x1xf32>
    %cst_15 = arith.constant dense<0.000000e+00> : vector<8xf32>
    %19 = vector.multi_reduction <add>, %16, %cst_15 [0] : vector<256x8xf32> to vector<8xf32>
    %20 = vector.shape_cast %19 : vector<8xf32> to vector<1x8xf32>
    %cst_16 = arith.constant dense<0.000000e+00> : vector<1xf32>
    %21 = vector.multi_reduction <add>, %18, %cst_16 [0] : vector<256x1xf32> to vector<1xf32>
    %22 = vector.shape_cast %21 : vector<1xf32> to vector<1x1xf32>
    %23 = arith.mulf %18, %2 : vector<256x1xf32>
    %cst_17 = arith.constant dense<0.000000e+00> : vector<1xf32>
    %24 = vector.multi_reduction <add>, %23, %cst_17 [0] : vector<256x1xf32> to vector<1xf32>
    %25 = vector.shape_cast %24 : vector<1xf32> to vector<1x1xf32>
    %26 = arith.mulf %18, %3 : vector<256x1xf32>
    %cst_18 = arith.constant dense<0.000000e+00> : vector<1xf32>
    %27 = vector.multi_reduction <add>, %26, %cst_18 [0] : vector<256x1xf32> to vector<1xf32>
    %28 = vector.shape_cast %27 : vector<1xf32> to vector<1x1xf32>
    %29 = arith.mulf %20, %4 : vector<1x8xf32>
    %cst_19 = arith.constant dense<0.000000e+00> : vector<1xf32>
    %30 = vector.multi_reduction <add>, %29, %cst_19 [1] : vector<1x8xf32> to vector<1xf32>
    %31 = vector.shape_cast %30 : vector<1xf32> to vector<1x1xf32>
    %cst_20 = arith.constant 1.000000e+00 : f32
    %32 = vector.broadcast %cst_20 : f32 to vector<1x1xf32>
    %33 = arith.divf %32, %22 : vector<1x1xf32>
    %34 = arith.mulf %22, %33 : vector<1x1xf32>
    %cst_21 = arith.constant 1.000000e-07 : f32
    %35 = vector.broadcast %cst_21 : f32 to vector<1x1xf32>
    %36 = arith.addf %34, %35 : vector<1x1xf32>
    %37 = arith.divf %33, %36 : vector<1x1xf32>
    %38 = arith.mulf %25, %37 : vector<1x1xf32>
    %c0_22 = arith.constant 0 : index
    %c0_23 = arith.constant 0 : index
    %c0_24 = arith.constant 0 : index
    %39 = vector.load %arg7[%c0_22, %c0_23, %c0_24] : memref<1x4x3xf32, #tpu.memory_space<vmem>>, vector<1x1x1xf32>
    %40 = vector.shape_cast %39 : vector<1x1x1xf32> to vector<1x1xf32>
    %41 = vector.shape_cast %38 : vector<1x1xf32> to vector<1x1x1xf32>
    tpu.vector_store %arg7[%c0_22, %c0_23, %c0_24], %41 {strides = array<i32>} : memref<1x4x3xf32, #tpu.memory_space<vmem>>, vector<1x1x1xf32>,
    %42 = arith.mulf %28, %37 : vector<1x1xf32>
    %c0_25 = arith.constant 0 : index
    %c0_26 = arith.constant 0 : index
    %c1 = arith.constant 1 : index
    %43 = vector.load %arg7[%c0_25, %c0_26, %c1] : memref<1x4x3xf32, #tpu.memory_space<vmem>>, vector<1x1x1xf32>
    %44 = vector.shape_cast %43 : vector<1x1x1xf32> to vector<1x1xf32>
    %45 = vector.shape_cast %42 : vector<1x1xf32> to vector<1x1x1xf32>
    tpu.vector_store %arg7[%c0_25, %c0_26, %c1], %45 {strides = array<i32>} : memref<1x4x3xf32, #tpu.memory_space<vmem>>, vector<1x1x1xf32>,
    %46 = arith.mulf %31, %37 : vector<1x1xf32>
    %c0_27 = arith.constant 0 : index
    %c0_28 = arith.constant 0 : index
    %c2 = arith.constant 2 : index
    %47 = vector.load %arg7[%c0_27, %c0_28, %c2] : memref<1x4x3xf32, #tpu.memory_space<vmem>>, vector<1x1x1xf32>
    %48 = vector.shape_cast %47 : vector<1x1x1xf32> to vector<1x1xf32>
    %49 = vector.shape_cast %46 : vector<1x1xf32> to vector<1x1x1xf32>
    tpu.vector_store %arg7[%c0_27, %c0_28, %c2], %49 {strides = array<i32>} : memref<1x4x3xf32, #tpu.memory_space<vmem>>, vector<1x1x1xf32>,
    %c0_29 = arith.constant 0 : index
    %c0_30 = arith.constant 0 : index
    %c0_31 = arith.constant 0 : index
    %50 = vector.load %arg8[%c0_29, %c0_30, %c0_31] : memref<1x4x1xf32, #tpu.memory_space<vmem>>, vector<1x1x1xf32>
    %51 = vector.shape_cast %50 : vector<1x1x1xf32> to vector<1x1xf32>
    %52 = vector.shape_cast %33 : vector<1x1xf32> to vector<1x1x1xf32>
    tpu.vector_store %arg8[%c0_29, %c0_30, %c0_31], %52 {strides = array<i32>} : memref<1x4x1xf32, #tpu.memory_space<vmem>>, vector<1x1x1xf32>,
    %c0_32 = arith.constant 0 : index
    %c8 = arith.constant 8 : index
    %53 = vector.load %arg2[%c0_32, %c8] : memref<32x32xbf16, #tpu.memory_space<vmem>>, vector<32x8xbf16>
    %c0_33 = arith.constant 0 : index
    %c8_34 = arith.constant 8 : index
    %54 = vector.load %arg3[%c0_33, %c8_34] : memref<1x32xf32, #tpu.memory_space<vmem>>, vector<1x8xf32>
    %cst_35 = arith.constant dense<0.000000e+00> : vector<256x8xf32>
    %55 = tpu.matmul %1, %53, %cst_35 {dimension_numbers = #tpu.dot_dimension_numbers<[1], [0], [0], [1], [0, 0, 1, 1], [], []>} : vector<256x32xbf16>, vector<32x8xbf16>, vector<256x8xf32> -> vector<256x8xf32>
    %56 = vector.broadcast %54 : vector<1x8xf32> to vector<256x8xf32>
    %57 = arith.addf %55, %56 : vector<256x8xf32>
    %cst_36 = arith.constant dense<0xFF800000> : vector<256xf32>
    %58 = vector.multi_reduction <maximumf>, %57, %cst_36 [1] : vector<256x8xf32> to vector<256xf32>
    %59 = vector.shape_cast %58 : vector<256xf32> to vector<256x1xf32>
    %cst_37 = arith.constant dense<0xFF800000> : vector<1xf32>
    %60 = vector.multi_reduction <maximumf>, %59, %cst_37 [0] : vector<256x1xf32> to vector<1xf32>
    %61 = vector.shape_cast %60 : vector<1xf32> to vector<1x1xf32>
    %62 = vector.broadcast %61 : vector<1x1xf32> to vector<256x8xf32>
    %63 = arith.subf %57, %62 : vector<256x8xf32>
    %64 = math.exp %63 : vector<256x8xf32>
    %cst_38 = arith.constant dense<0.000000e+00> : vector<256xf32>
    %65 = vector.multi_reduction <add>, %64, %cst_38 [1] : vector<256x8xf32> to vector<256xf32>
    %66 = vector.shape_cast %65 : vector<256xf32> to vector<256x1xf32>
    %cst_39 = arith.constant dense<0.000000e+00> : vector<8xf32>
    %67 = vector.multi_reduction <add>, %64, %cst_39 [0] : vector<256x8xf32> to vector<8xf32>
    %68 = vector.shape_cast %67 : vector<8xf32> to vector<1x8xf32>
    %cst_40 = arith.constant dense<0.000000e+00> : vector<1xf32>
    %69 = vector.multi_reduction <add>, %66, %cst_40 [0] : vector<256x1xf32> to vector<1xf32>
    %70 = vector.shape_cast %69 : vector<1xf32> to vector<1x1xf32>
    %71 = arith.mulf %66, %2 : vector<256x1xf32>
    %cst_41 = arith.constant dense<0.000000e+00> : vector<1xf32>
    %72 = vector.multi_reduction <add>, %71, %cst_41 [0] : vector<256x1xf32> to vector<1xf32>
    %73 = vector.shape_cast %72 : vector<1xf32> to vector<1x1xf32>
    %74 = arith.mulf %66, %3 : vector<256x1xf32>
    %cst_42 = arith.constant dense<0.000000e+00> : vector<1xf32>
    %75 = vector.multi_reduction <add>, %74, %cst_42 [0] : vector<256x1xf32> to vector<1xf32>
    %76 = vector.shape_cast %75 : vector<1xf32> to vector<1x1xf32>
    %77 = arith.mulf %68, %4 : vector<1x8xf32>
    %cst_43 = arith.constant dense<0.000000e+00> : vector<1xf32>
    %78 = vector.multi_reduction <add>, %77, %cst_43 [1] : vector<1x8xf32> to vector<1xf32>
    %79 = vector.shape_cast %78 : vector<1xf32> to vector<1x1xf32>
    %cst_44 = arith.constant 1.000000e+00 : f32
    %80 = vector.broadcast %cst_44 : f32 to vector<1x1xf32>
    %81 = arith.divf %80, %70 : vector<1x1xf32>
    %82 = arith.mulf %70, %81 : vector<1x1xf32>
    %cst_45 = arith.constant 1.000000e-07 : f32
    %83 = vector.broadcast %cst_45 : f32 to vector<1x1xf32>
    %84 = arith.addf %82, %83 : vector<1x1xf32>
    %85 = arith.divf %81, %84 : vector<1x1xf32>
    %86 = arith.mulf %73, %85 : vector<1x1xf32>
    %c0_46 = arith.constant 0 : index
    %c1_47 = arith.constant 1 : index
    %c0_48 = arith.constant 0 : index
    %87 = vector.load %arg7[%c0_46, %c1_47, %c0_48] : memref<1x4x3xf32, #tpu.memory_space<vmem>>, vector<1x1x1xf32>
    %88 = vector.shape_cast %87 : vector<1x1x1xf32> to vector<1x1xf32>
    %89 = vector.shape_cast %86 : vector<1x1xf32> to vector<1x1x1xf32>
    tpu.vector_store %arg7[%c0_46, %c1_47, %c0_48], %89 {strides = array<i32>} : memref<1x4x3xf32, #tpu.memory_space<vmem>>, vector<1x1x1xf32>,
    %90 = arith.mulf %76, %85 : vector<1x1xf32>
    %c0_49 = arith.constant 0 : index
    %c1_50 = arith.constant 1 : index
    %c1_51 = arith.constant 1 : index
    %91 = vector.load %arg7[%c0_49, %c1_50, %c1_51] : memref<1x4x3xf32, #tpu.memory_space<vmem>>, vector<1x1x1xf32>
    %92 = vector.shape_cast %91 : vector<1x1x1xf32> to vector<1x1xf32>
    %93 = vector.shape_cast %90 : vector<1x1xf32> to vector<1x1x1xf32>
    tpu.vector_store %arg7[%c0_49, %c1_50, %c1_51], %93 {strides = array<i32>} : memref<1x4x3xf32, #tpu.memory_space<vmem>>, vector<1x1x1xf32>,
    %94 = arith.mulf %79, %85 : vector<1x1xf32>
    %c0_52 = arith.constant 0 : index
    %c1_53 = arith.constant 1 : index
    %c2_54 = arith.constant 2 : index
    %95 = vector.load %arg7[%c0_52, %c1_53, %c2_54] : memref<1x4x3xf32, #tpu.memory_space<vmem>>, vector<1x1x1xf32>
    %96 = vector.shape_cast %95 : vector<1x1x1xf32> to vector<1x1xf32>
    %97 = vector.shape_cast %94 : vector<1x1xf32> to vector<1x1x1xf32>
    tpu.vector_store %arg7[%c0_52, %c1_53, %c2_54], %97 {strides = array<i32>} : memref<1x4x3xf32, #tpu.memory_space<vmem>>, vector<1x1x1xf32>,
    %c0_55 = arith.constant 0 : index
    %c1_56 = arith.constant 1 : index
    %c0_57 = arith.constant 0 : index
    %98 = vector.load %arg8[%c0_55, %c1_56, %c0_57] : memref<1x4x1xf32, #tpu.memory_space<vmem>>, vector<1x1x1xf32>
    %99 = vector.shape_cast %98 : vector<1x1x1xf32> to vector<1x1xf32>
    %100 = vector.shape_cast %81 : vector<1x1xf32> to vector<1x1x1xf32>
    tpu.vector_store %arg8[%c0_55, %c1_56, %c0_57], %100 {strides = array<i32>} : memref<1x4x1xf32, #tpu.memory_space<vmem>>, vector<1x1x1xf32>,
    %c0_58 = arith.constant 0 : index
    %c16 = arith.constant 16 : index
    %101 = vector.load %arg2[%c0_58, %c16] : memref<32x32xbf16, #tpu.memory_space<vmem>>, vector<32x8xbf16>
    %c0_59 = arith.constant 0 : index
    %c16_60 = arith.constant 16 : index
    %102 = vector.load %arg3[%c0_59, %c16_60] : memref<1x32xf32, #tpu.memory_space<vmem>>, vector<1x8xf32>
    %cst_61 = arith.constant dense<0.000000e+00> : vector<256x8xf32>
    %103 = tpu.matmul %1, %101, %cst_61 {dimension_numbers = #tpu.dot_dimension_numbers<[1], [0], [0], [1], [0, 0, 1, 1], [], []>} : vector<256x32xbf16>, vector<32x8xbf16>, vector<256x8xf32> -> vector<256x8xf32>
    %104 = vector.broadcast %102 : vector<1x8xf32> to vector<256x8xf32>
    %105 = arith.addf %103, %104 : vector<256x8xf32>
    %cst_62 = arith.constant dense<0xFF800000> : vector<256xf32>
    %106 = vector.multi_reduction <maximumf>, %105, %cst_62 [1] : vector<256x8xf32> to vector<256xf32>
    %107 = vector.shape_cast %106 : vector<256xf32> to vector<256x1xf32>
    %cst_63 = arith.constant dense<0xFF800000> : vector<1xf32>
    %108 = vector.multi_reduction <maximumf>, %107, %cst_63 [0] : vector<256x1xf32> to vector<1xf32>
    %109 = vector.shape_cast %108 : vector<1xf32> to vector<1x1xf32>
    %110 = vector.broadcast %109 : vector<1x1xf32> to vector<256x8xf32>
    %111 = arith.subf %105, %110 : vector<256x8xf32>
    %112 = math.exp %111 : vector<256x8xf32>
    %cst_64 = arith.constant dense<0.000000e+00> : vector<256xf32>
    %113 = vector.multi_reduction <add>, %112, %cst_64 [1] : vector<256x8xf32> to vector<256xf32>
    %114 = vector.shape_cast %113 : vector<256xf32> to vector<256x1xf32>
    %cst_65 = arith.constant dense<0.000000e+00> : vector<8xf32>
    %115 = vector.multi_reduction <add>, %112, %cst_65 [0] : vector<256x8xf32> to vector<8xf32>
    %116 = vector.shape_cast %115 : vector<8xf32> to vector<1x8xf32>
    %cst_66 = arith.constant dense<0.000000e+00> : vector<1xf32>
    %117 = vector.multi_reduction <add>, %114, %cst_66 [0] : vector<256x1xf32> to vector<1xf32>
    %118 = vector.shape_cast %117 : vector<1xf32> to vector<1x1xf32>
    %119 = arith.mulf %114, %2 : vector<256x1xf32>
    %cst_67 = arith.constant dense<0.000000e+00> : vector<1xf32>
    %120 = vector.multi_reduction <add>, %119, %cst_67 [0] : vector<256x1xf32> to vector<1xf32>
    %121 = vector.shape_cast %120 : vector<1xf32> to vector<1x1xf32>
    %122 = arith.mulf %114, %3 : vector<256x1xf32>
    %cst_68 = arith.constant dense<0.000000e+00> : vector<1xf32>
    %123 = vector.multi_reduction <add>, %122, %cst_68 [0] : vector<256x1xf32> to vector<1xf32>
    %124 = vector.shape_cast %123 : vector<1xf32> to vector<1x1xf32>
    %125 = arith.mulf %116, %4 : vector<1x8xf32>
    %cst_69 = arith.constant dense<0.000000e+00> : vector<1xf32>
    %126 = vector.multi_reduction <add>, %125, %cst_69 [1] : vector<1x8xf32> to vector<1xf32>
    %127 = vector.shape_cast %126 : vector<1xf32> to vector<1x1xf32>
    %cst_70 = arith.constant 1.000000e+00 : f32
    %128 = vector.broadcast %cst_70 : f32 to vector<1x1xf32>
    %129 = arith.divf %128, %118 : vector<1x1xf32>
    %130 = arith.mulf %118, %129 : vector<1x1xf32>
    %cst_71 = arith.constant 1.000000e-07 : f32
    %131 = vector.broadcast %cst_71 : f32 to vector<1x1xf32>
    %132 = arith.addf %130, %131 : vector<1x1xf32>
    %133 = arith.divf %129, %132 : vector<1x1xf32>
    %134 = arith.mulf %121, %133 : vector<1x1xf32>
    %c0_72 = arith.constant 0 : index
    %c2_73 = arith.constant 2 : index
    %c0_74 = arith.constant 0 : index
    %135 = vector.load %arg7[%c0_72, %c2_73, %c0_74] : memref<1x4x3xf32, #tpu.memory_space<vmem>>, vector<1x1x1xf32>
    %136 = vector.shape_cast %135 : vector<1x1x1xf32> to vector<1x1xf32>
    %137 = vector.shape_cast %134 : vector<1x1xf32> to vector<1x1x1xf32>
    tpu.vector_store %arg7[%c0_72, %c2_73, %c0_74], %137 {strides = array<i32>} : memref<1x4x3xf32, #tpu.memory_space<vmem>>, vector<1x1x1xf32>,
    %138 = arith.mulf %124, %133 : vector<1x1xf32>
    %c0_75 = arith.constant 0 : index
    %c2_76 = arith.constant 2 : index
    %c1_77 = arith.constant 1 : index
    %139 = vector.load %arg7[%c0_75, %c2_76, %c1_77] : memref<1x4x3xf32, #tpu.memory_space<vmem>>, vector<1x1x1xf32>
    %140 = vector.shape_cast %139 : vector<1x1x1xf32> to vector<1x1xf32>
    %141 = vector.shape_cast %138 : vector<1x1xf32> to vector<1x1x1xf32>
    tpu.vector_store %arg7[%c0_75, %c2_76, %c1_77], %141 {strides = array<i32>} : memref<1x4x3xf32, #tpu.memory_space<vmem>>, vector<1x1x1xf32>,
    %142 = arith.mulf %127, %133 : vector<1x1xf32>
    %c0_78 = arith.constant 0 : index
    %c2_79 = arith.constant 2 : index
    %c2_80 = arith.constant 2 : index
    %143 = vector.load %arg7[%c0_78, %c2_79, %c2_80] : memref<1x4x3xf32, #tpu.memory_space<vmem>>, vector<1x1x1xf32>
    %144 = vector.shape_cast %143 : vector<1x1x1xf32> to vector<1x1xf32>
    %145 = vector.shape_cast %142 : vector<1x1xf32> to vector<1x1x1xf32>
    tpu.vector_store %arg7[%c0_78, %c2_79, %c2_80], %145 {strides = array<i32>} : memref<1x4x3xf32, #tpu.memory_space<vmem>>, vector<1x1x1xf32>,
    %c0_81 = arith.constant 0 : index
    %c2_82 = arith.constant 2 : index
    %c0_83 = arith.constant 0 : index
    %146 = vector.load %arg8[%c0_81, %c2_82, %c0_83] : memref<1x4x1xf32, #tpu.memory_space<vmem>>, vector<1x1x1xf32>
    %147 = vector.shape_cast %146 : vector<1x1x1xf32> to vector<1x1xf32>
    %148 = vector.shape_cast %129 : vector<1x1xf32> to vector<1x1x1xf32>
    tpu.vector_store %arg8[%c0_81, %c2_82, %c0_83], %148 {strides = array<i32>} : memref<1x4x1xf32, #tpu.memory_space<vmem>>, vector<1x1x1xf32>,
    %c0_84 = arith.constant 0 : index
    %c24 = arith.constant 24 : index
    %149 = vector.load %arg2[%c0_84, %c24] : memref<32x32xbf16, #tpu.memory_space<vmem>>, vector<32x8xbf16>
    %c0_85 = arith.constant 0 : index
    %c24_86 = arith.constant 24 : index
    %150 = vector.load %arg3[%c0_85, %c24_86] : memref<1x32xf32, #tpu.memory_space<vmem>>, vector<1x8xf32>
    %cst_87 = arith.constant dense<0.000000e+00> : vector<256x8xf32>
    %151 = tpu.matmul %1, %149, %cst_87 {dimension_numbers = #tpu.dot_dimension_numbers<[1], [0], [0], [1], [0, 0, 1, 1], [], []>} : vector<256x32xbf16>, vector<32x8xbf16>, vector<256x8xf32> -> vector<256x8xf32>
    %152 = vector.broadcast %150 : vector<1x8xf32> to vector<256x8xf32>
    %153 = arith.addf %151, %152 : vector<256x8xf32>
    %cst_88 = arith.constant dense<0xFF800000> : vector<256xf32>
    %154 = vector.multi_reduction <maximumf>, %153, %cst_88 [1] : vector<256x8xf32> to vector<256xf32>
    %155 = vector.shape_cast %154 : vector<256xf32> to vector<256x1xf32>
    %cst_89 = arith.constant dense<0xFF800000> : vector<1xf32>
    %156 = vector.multi_reduction <maximumf>, %155, %cst_89 [0] : vector<256x1xf32> to vector<1xf32>
    %157 = vector.shape_cast %156 : vector<1xf32> to vector<1x1xf32>
    %158 = vector.broadcast %157 : vector<1x1xf32> to vector<256x8xf32>
    %159 = arith.subf %153, %158 : vector<256x8xf32>
    %160 = math.exp %159 : vector<256x8xf32>
    %cst_90 = arith.constant dense<0.000000e+00> : vector<256xf32>
    %161 = vector.multi_reduction <add>, %160, %cst_90 [1] : vector<256x8xf32> to vector<256xf32>
    %162 = vector.shape_cast %161 : vector<256xf32> to vector<256x1xf32>
    %cst_91 = arith.constant dense<0.000000e+00> : vector<8xf32>
    %163 = vector.multi_reduction <add>, %160, %cst_91 [0] : vector<256x8xf32> to vector<8xf32>
    %164 = vector.shape_cast %163 : vector<8xf32> to vector<1x8xf32>
    %cst_92 = arith.constant dense<0.000000e+00> : vector<1xf32>
    %165 = vector.multi_reduction <add>, %162, %cst_92 [0] : vector<256x1xf32> to vector<1xf32>
    %166 = vector.shape_cast %165 : vector<1xf32> to vector<1x1xf32>
    %167 = arith.mulf %162, %2 : vector<256x1xf32>
    %cst_93 = arith.constant dense<0.000000e+00> : vector<1xf32>
    %168 = vector.multi_reduction <add>, %167, %cst_93 [0] : vector<256x1xf32> to vector<1xf32>
    %169 = vector.shape_cast %168 : vector<1xf32> to vector<1x1xf32>
    %170 = arith.mulf %162, %3 : vector<256x1xf32>
    %cst_94 = arith.constant dense<0.000000e+00> : vector<1xf32>
    %171 = vector.multi_reduction <add>, %170, %cst_94 [0] : vector<256x1xf32> to vector<1xf32>
    %172 = vector.shape_cast %171 : vector<1xf32> to vector<1x1xf32>
    %173 = arith.mulf %164, %4 : vector<1x8xf32>
    %cst_95 = arith.constant dense<0.000000e+00> : vector<1xf32>
    %174 = vector.multi_reduction <add>, %173, %cst_95 [1] : vector<1x8xf32> to vector<1xf32>
    %175 = vector.shape_cast %174 : vector<1xf32> to vector<1x1xf32>
    %cst_96 = arith.constant 1.000000e+00 : f32
    %176 = vector.broadcast %cst_96 : f32 to vector<1x1xf32>
    %177 = arith.divf %176, %166 : vector<1x1xf32>
    %178 = arith.mulf %166, %177 : vector<1x1xf32>
    %cst_97 = arith.constant 1.000000e-07 : f32
    %179 = vector.broadcast %cst_97 : f32 to vector<1x1xf32>
    %180 = arith.addf %178, %179 : vector<1x1xf32>
    %181 = arith.divf %177, %180 : vector<1x1xf32>
    %182 = arith.mulf %169, %181 : vector<1x1xf32>
    %c0_98 = arith.constant 0 : index
    %c3 = arith.constant 3 : index
    %c0_99 = arith.constant 0 : index
    %183 = vector.load %arg7[%c0_98, %c3, %c0_99] : memref<1x4x3xf32, #tpu.memory_space<vmem>>, vector<1x1x1xf32>
    %184 = vector.shape_cast %183 : vector<1x1x1xf32> to vector<1x1xf32>
    %185 = vector.shape_cast %182 : vector<1x1xf32> to vector<1x1x1xf32>
    tpu.vector_store %arg7[%c0_98, %c3, %c0_99], %185 {strides = array<i32>} : memref<1x4x3xf32, #tpu.memory_space<vmem>>, vector<1x1x1xf32>,
    %186 = arith.mulf %172, %181 : vector<1x1xf32>
    %c0_100 = arith.constant 0 : index
    %c3_101 = arith.constant 3 : index
    %c1_102 = arith.constant 1 : index
    %187 = vector.load %arg7[%c0_100, %c3_101, %c1_102] : memref<1x4x3xf32, #tpu.memory_space<vmem>>, vector<1x1x1xf32>
    %188 = vector.shape_cast %187 : vector<1x1x1xf32> to vector<1x1xf32>
    %189 = vector.shape_cast %186 : vector<1x1xf32> to vector<1x1x1xf32>
    tpu.vector_store %arg7[%c0_100, %c3_101, %c1_102], %189 {strides = array<i32>} : memref<1x4x3xf32, #tpu.memory_space<vmem>>, vector<1x1x1xf32>,
    %190 = arith.mulf %175, %181 : vector<1x1xf32>
    %c0_103 = arith.constant 0 : index
    %c3_104 = arith.constant 3 : index
    %c2_105 = arith.constant 2 : index
    %191 = vector.load %arg7[%c0_103, %c3_104, %c2_105] : memref<1x4x3xf32, #tpu.memory_space<vmem>>, vector<1x1x1xf32>
    %192 = vector.shape_cast %191 : vector<1x1x1xf32> to vector<1x1xf32>
    %193 = vector.shape_cast %190 : vector<1x1xf32> to vector<1x1x1xf32>
    tpu.vector_store %arg7[%c0_103, %c3_104, %c2_105], %193 {strides = array<i32>} : memref<1x4x3xf32, #tpu.memory_space<vmem>>, vector<1x1x1xf32>,
    %c0_106 = arith.constant 0 : index
    %c3_107 = arith.constant 3 : index
    %c0_108 = arith.constant 0 : index
    %194 = vector.load %arg8[%c0_106, %c3_107, %c0_108] : memref<1x4x1xf32, #tpu.memory_space<vmem>>, vector<1x1x1xf32>
    %195 = vector.shape_cast %194 : vector<1x1x1xf32> to vector<1x1xf32>
    %196 = vector.shape_cast %177 : vector<1x1xf32> to vector<1x1x1xf32>
    tpu.vector_store %arg8[%c0_106, %c3_107, %c0_108], %196 {strides = array<i32>} : memref<1x4x1xf32, #tpu.memory_space<vmem>>, vector<1x1x1xf32>,
    return
  }
  func.func @transform_0(%arg0: i32) -> (i32, i32, i32) {
    %c0_i32 = arith.constant 0 : i32
    %c0_i32_0 = arith.constant 0 : i32
    %c0_i32_1 = arith.constant 0 : i32
    return %arg0, %c0_i32, %c0_i32_0 : i32, i32, i32
  }
  func.func @transform_1(%arg0: i32) -> (i32, i32) {
    %c0_i32 = arith.constant 0 : i32
    %c0_i32_0 = arith.constant 0 : i32
    %c0_i32_1 = arith.constant 0 : i32
    return %c0_i32, %c0_i32_0 : i32, i32
  }
  func.func @transform_2(%arg0: i32) -> (i32, i32) {
    %c0_i32 = arith.constant 0 : i32
    %c0_i32_0 = arith.constant 0 : i32
    %c0_i32_1 = arith.constant 0 : i32
    return %c0_i32, %c0_i32_0 : i32, i32
  }
  func.func @transform_3(%arg0: i32) -> (i32, i32) {
    %c0_i32 = arith.constant 0 : i32
    %c0_i32_0 = arith.constant 0 : i32
    %c0_i32_1 = arith.constant 0 : i32
    return %c0_i32, %c0_i32_0 : i32, i32
  }
  func.func @transform_4(%arg0: i32) -> (i32, i32) {
    %c0_i32 = arith.constant 0 : i32
    %c0_i32_0 = arith.constant 0 : i32
    %c0_i32_1 = arith.constant 0 : i32
    return %c0_i32, %c0_i32_0 : i32, i32
  }
  func.func @transform_5(%arg0: i32) -> (i32, i32) {
    %c0_i32 = arith.constant 0 : i32
    %c0_i32_0 = arith.constant 0 : i32
    %c0_i32_1 = arith.constant 0 : i32
    return %c0_i32, %c0_i32_0 : i32, i32
  }
  func.func @transform_6(%arg0: i32) -> (i32, i32, i32) {
    %c0_i32 = arith.constant 0 : i32
    %c0_i32_0 = arith.constant 0 : i32
    %c0_i32_1 = arith.constant 0 : i32
    return %arg0, %c0_i32, %c0_i32_0 : i32, i32, i32
  }
  func.func @transform_7(%arg0: i32) -> (i32, i32, i32) {
    %c0_i32 = arith.constant 0 : i32
    %c0_i32_0 = arith.constant 0 : i32
    %c0_i32_1 = arith.constant 0 : i32
    return %arg0, %c0_i32, %c0_i32_0 : i32, i32, i32
  }
}

</mosaic_0001>

<bundles_post_ra>
// kernel: _lambda_.3
= control target key start
LH: loop header
LB: loop body
LE: loop exit
PB: predicated region body
PF: predicated region fallthrough
CT: control target
= control target key end

     0   :  { %vm204_vm0 = vcmask 261120   ;;  %s550_s1 = inlined_call_operand.vmem [shape: bf16[288,128], index: 1, kind: input, shape index: {}]   ;;  %s551_s0 = inlined_call_operand.vmem [shape: bf16[32,288], index: 0, kind: input, shape index: {}]   ;;  %s552_s2 = inlined_call_operand.vmem [shape: f32[1,128], index: 2, kind: input, shape index: {}]   ;;  %s553_s3 = inlined_call_operand.vmem [shape: bf16[32,128], index: 3, kind: output, shape index: {}]  }
   0x1   :  { %v423_v0 = vld [vmem:[%s550_s1 + $0x40] sm:$0xff]   ;;  %v425_v2 = vld [vmem:[%s550_s1 + $0x48] sm:$0xff]   ;;  %v427_v4 = vld [vmem:[%s550_s1 + $0x50] sm:$0xff]  }
   0x2   :  { %v424_v1 = vld [vmem:[%s550_s1] sm:$0xff]   ;;  %383 = vmatprep.subr.bf16.mxu0 %v423_v0  ;;  %v426_v3 = vld [vmem:[%s550_s1 + $0x8] sm:$0xff]   ;;  %v428_v5 = vld [vmem:[%s550_s1 + $0x10] sm:$0xff]  }
   0x3   :  { %384 = vmatpush3.bf16.msra.mxu0 %v424_v1  ;;  %v429_v6 = vld [vmem:[%s550_s1 + $0x58] sm:$0xff]   ;;  %v431_v8 = vld [vmem:[%s550_s1 + $0x60] sm:$0xff]   ;;  %v433_v11 = vld [vmem:[%s550_s1 + $0x68] sm:$0xff]  }
   0x4   :  { %385 = vmatprep.subr.bf16.mxu0 %v425_v2  ;;  %v430_v7 = vld [vmem:[%s550_s1 + $0x18] sm:$0xff]   ;;  %v432_v9 = vld [vmem:[%s550_s1 + $0x20] sm:$0xff]   ;;  %v434_v12 = vld [vmem:[%s550_s1 + $0x28] sm:$0xff]  }
   0x5   :  { %v438_v10 = vld [vmem:[%s550_s1 + $0x80] sm:$0xff]   ;;  %v435_v13 = vld [vmem:[%s550_s1 + $0x70] sm:$0xff]   ;;  %v443_v15 = vld [vmem:[%s550_s1 + $0x88] sm:$0xff]  }
   0x6   :  { %415 = vmatprep.subr.bf16.mxu1 %v438_v10  ;;  %v442_v14 = vld [vmem:[%s551_s0 + $0x4] ss:$12 sps:$4 sm:$0xff]   ;;  %v444_v16 = vld [vmem:[%s551_s0 + $0x8] ss:$12 sps:$4 sm:$0xff]   ;;  %v445_v17 = vld [vmem:[%s551_s0 + $0x20] ss:$12 sps:$4 sm:$0xff]  }
   0x7   :  { %386 = vmatpush3.bf16.msra.mxu0 %v426_v3  ;;  %416 = vmatpush3.bf16.msra.mxu1 %v438_v10  ;;  %v436_v18 = vld [vmem:[%s550_s1 + $0x30] sm:$0xff]   ;;  %v437_v19 = vld [vmem:[%s550_s1 + $0x78] sm:$0xff]   ;;  %v440_v21 = vld [vmem:[%s551_s0] ss:$12 sps:$4 sm:$0xff]  }
   0x8   :  { %387 = vmatprep.subr.bf16.mxu0 %v427_v4  ;;  %243 = vmatprep.mubr.bf16.mxu0 %v442_v14  ;;  %v439_v20 = vld [vmem:[%s550_s1 + $0x38] sm:$0xff]   ;;  %v337_v30 = vld [vmem:[%s552_s2] ss:$0 sm:$0xff] }
   0x9   :  { %417 = vmatprep.subr.bf16.mxu1 %v443_v15  ;;  %419 = vmatprep.mubr.msk.bf16.mxu1 %vm204_vm0, %v444_v16  ;;  %v446_v22 = vld [vmem:[%s551_s0 + $0x1c] ss:$12 sps:$4 sm:$0xff]   ;;  %v448_v23 = vld [vmem:[%s551_s0 + $0x18] ss:$12 sps:$4 sm:$0xff]  }
   0xb   :  { %388 = vmatpush3.bf16.msra.mxu0 %v428_v5  ;;  %418 = vmatpush3.bf16.msra.mxu1 %v443_v15 }
   0xc   :  { %389 = vmatprep.subr.bf16.mxu0 %v429_v6 }
   0xe   :  { %420 = vmatmul.mubr.msk.bf16.vlgmr.msra.gmra.mrb[0].mxu1 %vm204_vm0, %v445_v17 }
   0xf   :  { %390 = vmatpush3.bf16.msra.mxu0 %v430_v7 }
  0x10   :  { %391 = vmatprep.subr.bf16.mxu0 %v431_v8 }
  0x13   :  { %392 = vmatpush3.bf16.msra.mxu0 %v432_v9 }
  0x14   :  { %393 = vmatprep.subr.bf16.mxu0 %v433_v11 }
  0x17   :  { %394 = vmatpush3.bf16.msra.mxu0 %v434_v12 }
  0x18   :  { %395 = vmatprep.subr.bf16.mxu0 %v435_v13 }
  0x1b   :  { %396 = vmatpush3.bf16.msra.mxu0 %v436_v18 }
  0x1c   :  { %397 = vmatprep.subr.bf16.mxu0 %v437_v19 }
  0x1f   :  { %398 = vmatpush3.bf16.msra.mxu0 %v439_v20 }
  0x22   :  { %244 = vmatmul.mubr.bf16.vlgmr.msra.gmra.mrb[0].mxu0 %v440_v21 }
  0x23   :  { %251 = vmatprep.mubr.bf16.mxu0 %v446_v22 }
  0x2a   :  { %252 = vmatmul.mubr.bf16.gmra.mrb[4].mxu0 %v448_v23 }
  0xe1   :  { %v421_v24 = vpop.f32.mrb[0].mxu1 }
  0xe2   :  { %v294_v25 = vpop.f32.mrb[1].mxu1 }
  0xe3   :  { %v422_v26 = vpop.f32.mrb[2].mxu1 }
  0xe4   :  { %v297_v27 = vpop.f32.mrb[3].mxu1 }
  0xf5   :  { %v399_v28 = vpop.f32.mrb[0].mxu0 }
  0xf6   :  { %v400_v29 = vpop.f32.mrb[1].mxu0 }
  0xf7   :  { %v401_v31 = vadd.f32 %v400_v29, %v399_v28  ;;  %v402_v32 = vpop.f32.mrb[2].mxu0 }
  0xf8   :  { %v403_v33 = vpop.f32.mrb[3].mxu0 }
  0xf9   :  { %v404_v34 = vadd.f32 %v403_v33, %v402_v32  ;;  %v246_v35 = vadd.f32 %v401_v31, %v337_v30 }
  0xfb   :  { %v295_v36 = vadd.f32 %v294_v25, %v246_v35  ;;  %v249_v37 = vadd.f32 %v404_v34, %v337_v30 }
  0xfd   :  { %v298_v38 = vadd.f32 %v297_v27, %v249_v37  ;;  %v405_v39 = vpop.f32.mrb[4].mxu0  ;;  %v309_v41 = vmax.f32 %v295_v36, 0.0 }
  0xfe   :  { %v406_v40 = vpop.f32.mrb[5].mxu0 }
  0xff   :  { %v310_v42 = vmax.f32 %v298_v38, 0.0  ;;  %v407_v43 = vadd.f32 %v406_v40, %v405_v39  ;;  %v408_v44 = vpop.f32.mrb[6].mxu0 }
 0x100   :  { %v409_v45 = vpop.f32.mrb[7].mxu0 }
 0x101   :  { %v375_v46 = vpack.c.bf16 %v310_v42, %v309_v41  ;;  %v254_v47 = vadd.f32 %v407_v43, %v337_v30  ;;  %v410_v48 = vadd.f32 %v409_v45, %v408_v44 }
 0x103   :  { %376 = vst [vmem:[%s553_s3] sm:$0xff] %v375_v46   ;;  %v303_v49 = vadd.f32 %v421_v24, %v254_v47  ;;  %v257_v50 = vadd.f32 %v410_v48, %v337_v30 }
 0x105   :  { %v306_v51 = vadd.f32 %v422_v26, %v257_v50  ;;  %v311_v52 = vmax.f32 %v303_v49, 0.0 }
 0x107   :  { %v312_v53 = vmax.f32 %v306_v51, 0.0 }
 0x109   :  { %v380_v54 = vpack.c.bf16 %v312_v53, %v311_v52 }
 0x10b   :  { %382 = vst [vmem:[%s553_s3 + $0x8] sm:$0xff] %v380_v54  }

// kernel: _lambda_.4
= control target key start
LH: loop header
LB: loop body
LE: loop exit
PB: predicated region body
PF: predicated region fallthrough
CT: control target
= control target key end

     0   :  { %vm318_vm0 = vcmask 261120   ;;  %s1138_s1 = inlined_call_operand.vmem [shape: bf16[288,128], index: 1, kind: input, shape index: {}]   ;;  %s1139_s0 = inlined_call_operand.vmem [shape: bf16[128,288], index: 0, kind: input, shape index: {}]   ;;  %s1140_s2 = inlined_call_operand.vmem [shape: f32[1,128], index: 2, kind: input, shape index: {}]   ;;  %s1141_s3 = inlined_call_operand.vmem [shape: bf16[128,128], index: 3, kind: output, shape index: {}]  }
   0x1   :  { %v877_v0 = vld [vmem:[%s1138_s1 + $0x40] sm:$0xff]   ;;  %v879_v2 = vld [vmem:[%s1138_s1 + $0x48] sm:$0xff]   ;;  %v881_v4 = vld [vmem:[%s1138_s1 + $0x50] sm:$0xff]  }
   0x2   :  { %v878_v1 = vld [vmem:[%s1138_s1] sm:$0xff]   ;;  %767 = vmatprep.subr.bf16.mxu0 %v877_v0  ;;  %861 = vmatprep.subr.bf16.mxu1 %v877_v0  ;;  %v880_v3 = vld [vmem:[%s1138_s1 + $0x8] sm:$0xff]   ;;  %v882_v5 = vld [vmem:[%s1138_s1 + $0x10] sm:$0xff]  }
   0x3   :  { %768 = vmatpush3.bf16.msra.mxu0 %v878_v1  ;;  %869 = vmatpush3.bf16.msra.mxu1 %v878_v1  ;;  %v883_v6 = vld [vmem:[%s1138_s1 + $0x58] sm:$0xff]   ;;  %v885_v8 = vld [vmem:[%s1138_s1 + $0x60] sm:$0xff]   ;;  %v887_v10 = vld [vmem:[%s1138_s1 + $0x68] sm:$0xff]  }
   0x4   :  { %769 = vmatprep.subr.bf16.mxu0 %v879_v2  ;;  %862 = vmatprep.subr.bf16.mxu1 %v879_v2  ;;  %v884_v7 = vld [vmem:[%s1138_s1 + $0x18] sm:$0xff]   ;;  %v886_v9 = vld [vmem:[%s1138_s1 + $0x20] sm:$0xff]   ;;  %v888_v13 = vld [vmem:[%s1138_s1 + $0x28] sm:$0xff]  }
   0x5   :  { %v895_v11 = vld [vmem:[%s1139_s0 + $0x4] ss:$12 sps:$4 sm:$0xff]   ;;  %v898_v12 = vld [vmem:[%s1139_s0 + $0x94] ss:$12 sps:$4 sm:$0xff]   ;;  %v891_v16 = vld [vmem:[%s1138_s1 + $0x78] sm:$0xff]  }
   0x6   :  { %v889_v14 = vld [vmem:[%s1138_s1 + $0x70] sm:$0xff]   ;;  %375 = vmatprep.mubr.bf16.mxu0 %v895_v11  ;;  %423 = vmatprep.mubr.bf16.mxu1 %v898_v12  ;;  %v892_v17 = vld [vmem:[%s1138_s1 + $0x38] sm:$0xff]   ;;  %v893_v18 = vld [vmem:[%s1139_s0] ss:$12 sps:$4 sm:$0xff]  }
   0x7   :  { %770 = vmatpush3.bf16.msra.mxu0 %v880_v3  ;;  %870 = vmatpush3.bf16.msra.mxu1 %v880_v3  ;;  %v890_v15 = vld [vmem:[%s1138_s1 + $0x30] sm:$0xff]   ;;  %v899_v19 = vld [vmem:[%s1138_s1 + $0x80] sm:$0xff]   ;;  %v900_v21 = vld [vmem:[%s1139_s0 + $0x1c] ss:$12 sps:$4 sm:$0xff]  }
   0x8   :  { %771 = vmatprep.subr.bf16.mxu0 %v881_v4  ;;  %863 = vmatprep.subr.bf16.mxu1 %v881_v4  ;;  %v896_v20 = vld [vmem:[%s1139_s0 + $0x90] ss:$12 sps:$4 sm:$0xff]   ;;  %v902_v22 = vld [vmem:[%s1139_s0 + $0xac] ss:$12 sps:$4 sm:$0xff]   ;;  %v905_v25 = vld [vmem:[%s1139_s0 + $0xa8] ss:$12 sps:$4 sm:$0xff]  }
   0x9   :  { %v906_v23 = vld [vmem:[%s1138_s1 + $0x88] sm:$0xff]   ;;  %v904_v24 = vld [vmem:[%s1139_s0 + $0x18] ss:$12 sps:$4 sm:$0xff]   ;;  %v907_v26 = vld [vmem:[%s1139_s0 + $0x34] ss:$12 sps:$4 sm:$0xff]  }
   0xa   :  { %v909_v27 = vld [vmem:[%s1139_s0 + $0x8] ss:$12 sps:$4 sm:$0xff]   ;;  %v910_v28 = vld [vmem:[%s1139_s0 + $0x30] ss:$12 sps:$4 sm:$0xff]   ;;  %v911_v29 = vld [vmem:[%s1139_s0 + $0x20] ss:$12 sps:$4 sm:$0xff]  }
   0xb   :  { %772 = vmatpush3.bf16.msra.mxu0 %v882_v5  ;;  %871 = vmatpush3.bf16.msra.mxu1 %v882_v5  ;;  %v912_v30 = vld [vmem:[%s1139_s0 + $0x4c] ss:$12 sps:$4 sm:$0xff]   ;;  %v915_v32 = vld [vmem:[%s1139_s0 + $0x48] ss:$12 sps:$4 sm:$0xff]   ;;  %v916_v33 = vld [vmem:[%s1139_s0 + $0x50] ss:$12 sps:$4 sm:$0xff]  }
   0xc   :  { %773 = vmatprep.subr.bf16.mxu0 %v883_v6  ;;  %864 = vmatprep.subr.bf16.mxu1 %v883_v6  ;;  %v914_v31 = vld [vmem:[%s1139_s0 + $0x38] ss:$12 sps:$4 sm:$0xff]   ;;  %v919_v35 = vld [vmem:[%s1139_s0 + $0x68] ss:$12 sps:$4 sm:$0xff]   ;;  %v920_v36 = vld [vmem:[%s1139_s0 + $0x60] ss:$12 sps:$4 sm:$0xff]  }
   0xd   :  { %v917_v34 = vld [vmem:[%s1139_s0 + $0x64] ss:$12 sps:$4 sm:$0xff]   ;;  %v921_v37 = vld [vmem:[%s1139_s0 + $0x80] ss:$12 sps:$4 sm:$0xff]   ;;  %v922_v38 = vld [vmem:[%s1139_s0 + $0x7c] ss:$12 sps:$4 sm:$0xff]  }
   0xe   :  { %v924_v39 = vld [vmem:[%s1139_s0 + $0x98] ss:$12 sps:$4 sm:$0xff]   ;;  %v926_v41 = vld [vmem:[%s1139_s0 + $0xb0] ss:$12 sps:$4 sm:$0xff]   ;;  %v1092_v2 = vld [vmem:[%s1140_s2] ss:$0 sm:$0xff] }
   0xf   :  { %774 = vmatpush3.bf16.msra.mxu0 %v884_v7  ;;  %872 = vmatpush3.bf16.msra.mxu1 %v884_v7  ;;  %v925_v40 = vld [vmem:[%s1139_s0 + $0x78] ss:$12 sps:$4 sm:$0xff]  }
  0x10   :  { %775 = vmatprep.subr.bf16.mxu0 %v885_v8  ;;  %865 = vmatprep.subr.bf16.mxu1 %v885_v8 }
  0x13   :  { %776 = vmatpush3.bf16.msra.mxu0 %v886_v9  ;;  %873 = vmatpush3.bf16.msra.mxu1 %v886_v9 }
  0x14   :  { %777 = vmatprep.subr.bf16.mxu0 %v887_v10  ;;  %866 = vmatprep.subr.bf16.mxu1 %v887_v10 }
  0x17   :  { %778 = vmatpush3.bf16.msra.mxu0 %v888_v13  ;;  %874 = vmatpush3.bf16.msra.mxu1 %v888_v13 }
  0x18   :  { %779 = vmatprep.subr.bf16.mxu0 %v889_v14  ;;  %867 = vmatprep.subr.bf16.mxu1 %v889_v14 }
  0x1b   :  { %780 = vmatpush3.bf16.msra.mxu0 %v890_v15  ;;  %875 = vmatpush3.bf16.msra.mxu1 %v890_v15 }
  0x1c   :  { %781 = vmatprep.subr.bf16.mxu0 %v891_v16  ;;  %868 = vmatprep.subr.bf16.mxu1 %v891_v16 }
  0x1f   :  { %782 = vmatpush3.bf16.msra.mxu0 %v892_v17  ;;  %876 = vmatpush3.bf16.msra.mxu1 %v892_v17 }
  0x20   :  { %841 = vmatprep.subr.bf16.mxu1 %v899_v19 }
  0x22   :  { %376 = vmatmul.mubr.bf16.vlgmr.msra.gmra.mrb[0].mxu0 %v893_v18  ;;  %424 = vmatmul.mubr.bf16.vlgmr.msra.gmra.mrb[0].mxu1 %v896_v20 }
  0x23   :  { %842 = vmatpush3.bf16.msra.mxu1 %v899_v19  ;;  %383 = vmatprep.mubr.bf16.mxu0 %v900_v21 }
  0x24   :  { %431 = vmatprep.mubr.bf16.mxu1 %v902_v22  ;;  %843 = vmatprep.subr.bf16.mxu1 %v906_v23 }
  0x27   :  { %844 = vmatpush3.bf16.msra.mxu1 %v906_v23 }
  0x2a   :  { %384 = vmatmul.mubr.bf16.gmra.mrb[4].mxu0 %v904_v24  ;;  %432 = vmatmul.mubr.bf16.gmra.mrb[4].mxu1 %v905_v25 }
  0x2b   :  { %391 = vmatprep.mubr.bf16.mxu0 %v907_v26  ;;  %845 = vmatprep.mubr.msk.bf16.mxu1 %vm318_vm0, %v909_v27 }
  0x32   :  { %392 = vmatmul.mubr.bf16.gmra.mrb[8].mxu0 %v910_v28  ;;  %846 = vmatmul.mubr.msk.bf16.vlgmr.msra.gmra.mrb[8].mxu1 %vm318_vm0, %v911_v29 }
  0x33   :  { %399 = vmatprep.mubr.bf16.mxu0 %v912_v30  ;;  %849 = vmatprep.mubr.msk.bf16.mxu1 %vm318_vm0, %v914_v31 }
  0x3a   :  { %400 = vmatmul.mubr.bf16.gmra.mrb[12].mxu0 %v915_v32  ;;  %850 = vmatmul.mubr.msk.bf16.gmra.mrb[12].mxu1 %vm318_vm0, %v916_v33 }
  0x3b   :  { %407 = vmatprep.mubr.bf16.mxu0 %v917_v34  ;;  %853 = vmatprep.mubr.msk.bf16.mxu1 %vm318_vm0, %v919_v35 }
  0x42   :  { %408 = vmatmul.mubr.bf16.gmra.mrb[16].mxu0 %v920_v36  ;;  %854 = vmatmul.mubr.msk.bf16.gmra.mrb[16].mxu1 %vm318_vm0, %v921_v37 }
  0x43   :  { %415 = vmatprep.mubr.bf16.mxu0 %v922_v38  ;;  %857 = vmatprep.mubr.msk.bf16.mxu1 %vm318_vm0, %v924_v39 }
  0x4a   :  { %416 = vmatmul.mubr.bf16.gmra.mrb[20].mxu0 %v925_v40  ;;  %858 = vmatmul.mubr.msk.bf16.gmra.mrb[20].mxu1 %vm318_vm0, %v926_v41 }
  0xf5   :  { %v783_v42 = vpop.f32.mrb[0].mxu0  ;;  %v819_v43 = vpop.f32.mrb[0].mxu1 }
  0xf6   :  { %v784_v44 = vpop.f32.mrb[1].mxu0  ;;  %v820_v45 = vpop.f32.mrb[1].mxu1 }
  0xf7   :  { %v785_v46 = vadd.f32 %v784_v44, %v783_v42  ;;  %v786_v47 = vpop.f32.mrb[2].mxu0  ;;  %v1081_v48 = vadd.f32 %v820_v45, %v819_v43  ;;  %v822_v49 = vpop.f32.mrb[2].mxu1 }
  0xf8   :  { %v787_v50 = vpop.f32.mrb[3].mxu0  ;;  %v823_v51 = vpop.f32.mrb[3].mxu1 }
  0xf9   :  { %v788_v52 = vadd.f32 %v787_v50, %v786_v47  ;;  %v1083_v53 = vadd.f32 %v823_v51, %v822_v49  ;;  %v378_v6 = vadd.f32 %v785_v46, %v1092_v2 }
  0xfb   :  { %v381_v15 = vadd.f32 %v788_v52, %v1092_v2 }
  0xfd   :  { %v789_v54 = vpop.f32.mrb[4].mxu0  ;;  %v825_v55 = vpop.f32.mrb[4].mxu1 }
  0xfe   :  { %v790_v56 = vpop.f32.mrb[5].mxu0  ;;  %v826_v57 = vpop.f32.mrb[5].mxu1 }
  0xff   :  { %v791_v58 = vadd.f32 %v790_v56, %v789_v54  ;;  %v792_v59 = vpop.f32.mrb[6].mxu0  ;;  %v1085_v60 = vadd.f32 %v826_v57, %v825_v55  ;;  %v828_v61 = vpop.f32.mrb[6].mxu1 }
 0x100   :  { %v793_v62 = vpop.f32.mrb[7].mxu0  ;;  %v829_v63 = vpop.f32.mrb[7].mxu1 }
 0x101   :  { %v794_v0 = vadd.f32 %v793_v62, %v792_v59  ;;  %v1087_v1 = vadd.f32 %v829_v63, %v828_v61  ;;  %v386_v3 = vadd.f32 %v791_v58, %v1092_v2 }
 0x103   :  { %v389_v10 = vadd.f32 %v794_v0, %v1092_v2 }
 0x105   :  { %v795_v4 = vpop.f32.mrb[8].mxu0  ;;  %v847_v5 = vpop.f32.mrb[8].mxu1 }
 0x106   :  { %v483_v7 = vadd.f32 %v847_v5, %v386_v3  ;;  %v796_v8 = vpop.f32.mrb[9].mxu0  ;;  %v474_v9 = vpop.f32.mrb[9].mxu1  ;;  %v434_v5 = vadd.f32 %v1085_v60, %v1092_v2 }
 0x107   :  { %v797_v11 = vadd.f32 %v796_v8, %v795_v4  ;;  %v475_v12 = vadd.f32 %v474_v9, %v378_v6  ;;  %v798_v13 = vpop.f32.mrb[10].mxu0  ;;  %v848_v14 = vpop.f32.mrb[10].mxu1  ;;  %v426_v9 = vadd.f32 %v1081_v48, %v1092_v2 }
 0x108   :  { %v486_v16 = vadd.f32 %v848_v14, %v389_v10  ;;  %v799_v17 = vpop.f32.mrb[11].mxu0  ;;  %v477_v18 = vpop.f32.mrb[11].mxu1  ;;  %v539_v21 = vmax.f32 %v483_v7, 0.0 }
 0x109   :  { %v800_v19 = vadd.f32 %v799_v17, %v798_v13  ;;  %v478_v20 = vadd.f32 %v477_v18, %v381_v15  ;;  %v537_v23 = vmax.f32 %v475_v12, 0.0  ;;  %v394_v29 = vadd.f32 %v797_v11, %v1092_v2 }
 0x10a   :  { %v540_v22 = vmax.f32 %v486_v16, 0.0  ;;  %v437_v13 = vadd.f32 %v1087_v1, %v1092_v2 }
 0x10b   :  { %v538_v24 = vmax.f32 %v478_v20, 0.0  ;;  %v397_v36 = vadd.f32 %v800_v19, %v1092_v2 }
 0x10c   :  { %v728_v25 = vpack.c.bf16 %v540_v22, %v539_v21  ;;  %v429_v21 = vadd.f32 %v1083_v53, %v1092_v2 }
 0x10d   :  { %v723_v26 = vpack.c.bf16 %v538_v24, %v537_v23  ;;  %v801_v27 = vpop.f32.mrb[12].mxu0  ;;  %v851_v28 = vpop.f32.mrb[12].mxu1 }
 0x10e   :  { %760 = vst [vmem:[%s1141_s3 + $0x8] sm:$0xff] %v728_v25   ;;  %v802_v30 = vpop.f32.mrb[13].mxu0  ;;  %v490_v31 = vpop.f32.mrb[13].mxu1 }
 0x10f   :  { %724 = vst [vmem:[%s1141_s3] sm:$0xff] %v723_v26   ;;  %v803_v32 = vadd.f32 %v802_v30, %v801_v27  ;;  %v491_v33 = vadd.f32 %v490_v31, %v394_v29  ;;  %v804_v34 = vpop.f32.mrb[14].mxu0  ;;  %v852_v35 = vpop.f32.mrb[14].mxu1 }
 0x110   :  { %v805_v37 = vpop.f32.mrb[15].mxu0  ;;  %v493_v38 = vpop.f32.mrb[15].mxu1 }
 0x111   :  { %v402_v39 = vadd.f32 %v803_v32, %v1092_v2  ;;  %v806_v40 = vadd.f32 %v805_v37, %v804_v34  ;;  %v494_v41 = vadd.f32 %v493_v38, %v397_v36  ;;  %v541_v43 = vmax.f32 %v491_v33, 0.0 }
 0x113   :  { %v499_v42 = vadd.f32 %v851_v28, %v402_v39  ;;  %v405_v44 = vadd.f32 %v806_v40, %v1092_v2  ;;  %v542_v45 = vmax.f32 %v494_v41, 0.0 }
 0x115   :  { %v502_v46 = vadd.f32 %v852_v35, %v405_v44  ;;  %v733_v47 = vpack.c.bf16 %v542_v45, %v541_v43  ;;  %v807_v49 = vpop.f32.mrb[16].mxu0  ;;  %v855_v50 = vpop.f32.mrb[16].mxu1  ;;  %v543_v54 = vmax.f32 %v499_v42, 0.0 }
 0x116   :  { %v808_v51 = vpop.f32.mrb[17].mxu0  ;;  %v506_v52 = vpop.f32.mrb[17].mxu1 }
 0x117   :  { %v544_v55 = vmax.f32 %v502_v46, 0.0  ;;  %761 = vst [vmem:[%s1141_s3 + $0x10] sm:$0xff] %v733_v47   ;;  %v809_v56 = vadd.f32 %v808_v51, %v807_v49  ;;  %v810_v57 = vpop.f32.mrb[18].mxu0  ;;  %v856_v58 = vpop.f32.mrb[18].mxu1 }
 0x118   :  { %v811_v59 = vpop.f32.mrb[19].mxu0  ;;  %v509_v61 = vpop.f32.mrb[19].mxu1 }
 0x119   :  { %v738_v62 = vpack.c.bf16 %v544_v55, %v543_v54  ;;  %v410_v63 = vadd.f32 %v809_v56, %v1092_v2  ;;  %v812_v0 = vadd.f32 %v811_v59, %v810_v57 }
 0x11b   :  { %762 = vst [vmem:[%s1141_s3 + $0x18] sm:$0xff] %v738_v62   ;;  %v507_v3 = vadd.f32 %v506_v52, %v410_v63  ;;  %v413_v4 = vadd.f32 %v812_v0, %v1092_v2 }
 0x11d   :  { %v510_v6 = vadd.f32 %v509_v61, %v413_v4  ;;  %v813_v7 = vpop.f32.mrb[20].mxu0  ;;  %v859_v8 = vpop.f32.mrb[20].mxu1  ;;  %v545_v14 = vmax.f32 %v507_v3, 0.0 }
 0x11e   :  { %v531_v10 = vadd.f32 %v859_v8, %v434_v5  ;;  %v814_v11 = vpop.f32.mrb[21].mxu0  ;;  %v522_v12 = vpop.f32.mrb[21].mxu1 }
 0x11f   :  { %v546_v15 = vmax.f32 %v510_v6, 0.0  ;;  %v815_v16 = vadd.f32 %v814_v11, %v813_v7  ;;  %v523_v17 = vadd.f32 %v522_v12, %v426_v9  ;;  %v816_v18 = vpop.f32.mrb[22].mxu0  ;;  %v860_v19 = vpop.f32.mrb[22].mxu1 }
 0x120   :  { %v534_v20 = vadd.f32 %v860_v19, %v437_v13  ;;  %v817_v60 = vpop.f32.mrb[23].mxu0  ;;  %v525_v22 = vpop.f32.mrb[23].mxu1  ;;  %v551_v25 = vmax.f32 %v531_v10, 0.0 }
 0x121   :  { %v743_v23 = vpack.c.bf16 %v546_v15, %v545_v14  ;;  %v418_v48 = vadd.f32 %v815_v16, %v1092_v2  ;;  %v818_v24 = vadd.f32 %v817_v60, %v816_v18  ;;  %v526_v27 = vadd.f32 %v525_v22, %v429_v21 }
 0x122   :  { %v552_v26 = vmax.f32 %v534_v20, 0.0  ;;  %v549_v29 = vmax.f32 %v523_v17, 0.0 }
 0x123   :  { %763 = vst [vmem:[%s1141_s3 + $0x20] sm:$0xff] %v743_v23   ;;  %v515_v1 = vadd.f32 %v855_v50, %v418_v48  ;;  %v421_v28 = vadd.f32 %v818_v24, %v1092_v2  ;;  %v550_v31 = vmax.f32 %v526_v27, 0.0 }
 0x124   :  { %v758_v30 = vpack.c.bf16 %v552_v26, %v551_v25 }
 0x125   :  { %v518_v32 = vadd.f32 %v856_v58, %v421_v28  ;;  %v753_v53 = vpack.c.bf16 %v550_v31, %v549_v29  ;;  %v547_v33 = vmax.f32 %v515_v1, 0.0 }
 0x126   :  { %766 = vst [vmem:[%s1141_s3 + $0x38] sm:$0xff] %v758_v30  }
 0x127   :  { %v548_v34 = vmax.f32 %v518_v32, 0.0  ;;  %765 = vst [vmem:[%s1141_s3 + $0x30] sm:$0xff] %v753_v53  }
 0x129   :  { %v748_v35 = vpack.c.bf16 %v548_v34, %v547_v33 }
 0x12b   :  { %764 = vst [vmem:[%s1141_s3 + $0x28] sm:$0xff] %v748_v35  }

// kernel: _lambda_.5
= control target key start
LH: loop header
LB: loop body
LE: loop exit
PB: predicated region body
PF: predicated region fallthrough
CT: control target
= control target key end

     0   :  { %s4600_s24 = smov 0   ;;  %s8325_s0 = inlined_call_operand.vmem [shape: bf16[2,256,32], index: 0, kind: input, shape index: {}]   ;;  %s8326_s1 = inlined_call_operand.vmem [shape: bf16[32,32], index: 1, kind: input, shape index: {}]   ;;  %s8327_s2 = inlined_call_operand.vmem [shape: f32[1,32], index: 2, kind: input, shape index: {}]   ;;  %s8328_s3 = inlined_call_operand.vmem [shape: f32[256,1], index: 3, kind: input, shape index: {}]   ;;  %s8329_s4 = inlined_call_operand.vmem [shape: f32[256,1], index: 4, kind: input, shape index: {}]   ;;  %s8330_s5 = inlined_call_operand.vmem [shape: f32[1,8], index: 5, kind: input, shape index: {}]   ;;  %s8331_s6 = inlined_call_operand.vmem [shape: f32[2,4,3], index: 6, kind: output, shape index: {0}]   ;;  %s8332_s7 = inlined_call_operand.vmem [shape: f32[2,4,1], index: 7, kind: output, shape index: {1}]  }
   0x1 LB: > { %s3847_s25 = sadd.s32 4294967295, %s4554_s24   ;;  %p3851_p0 = scmp.ge.s32.totalorder %s4554_s24, 1  ;;  %s4554_s24 = sphi %s4600_s24, %s18_s24  }
   0x2   : > { %p240_p1 = scmp.lt.s32.totalorder %s4554_s24, 3 }
   0x4   : > { %p241_p2 = pnand %p3851_p0, %p240_p1 }
   0x6   : > { %244 = sbr.rel (%p241_p2) target bundleno = 1184 (0x4a0), region = 44 }
   0xd   : > { %v4179_v0 = vld [vmem:[%s8326_s1] sm:$0xff]   ;;  %s4556_s30 = smov 112   ;;  %p275_p3 = scmp.lt.s32.totalorder %s3847_s25, 1  ;;  %v4182_v3 = vld [vmem:[%s8326_s1 + $0x8] sm:$0xff]   ;;  %vm489_vm0 = vcmask 261120   ;;  %vm699_vm1 = vcmask 64512  }
   0xe   : > { %v4180_v1 = vld [vmem:[%s8326_s1] sm:$0xff]   ;;  %2159 = vrot.lane.b32.xlu1 %v4179_v0, %s4556_s30  ;;  %s4557_s10 = smov 120   ;;  %v4183_v4 = vld [vmem:[%s8326_s1 + $0x8] sm:$0xff]   ;;  %s4558_s27 = smov 104   ;;  %vm1303_vm2 = vcmask 57344   ;;  %vm1131_vm3 = vcmask 7168  }
   0xf   : > { %v4181_v2 = vld [vmem:[%s8326_s1] sm:$0xff]   ;;  %1347 = vrot.lane.b32.xlu0 %v4180_v1, %s4557_s10  ;;  %s8860_s25 = smov (!%p275_p3, %s3847_s25), 1  ;;  %v4185_v5 = vld [vmem:[%s8326_s1 + $0x8] sm:$0xff]   ;;  %vm1314_vm4 = vcmask 0   ;;  %s4559_s12 = smov 1   ;;  %vm1321_vm5 = vcmask 8200  }
  0x10   : > { %4023 = vmatprep.subr.bf16.mxu0 %v4181_v2  ;;  %s3950_s17 = sshll.u32 %s8860_s25, 7  ;;  %v4199_v6 = vld [vmem:[%s8326_s1] sm:$0xff]   ;;  %v4202_v7 = vld [vmem:[%s8326_s1 + $0x8] sm:$0xff]   ;;  %s3854_s11 = sshll.u32 %s8860_s25, 2  ;;  %vm1324_vm6 = vcmask 16400  }
  0x11   : > { %4024 = vmatpush3.bf16.msra.mxu0 %v4181_v2  ;;  %s4638_s22 = scalar_lea.vmem %s8325_s0, %s3950_s17  ;;  %v4726_v23 = vld [vmem:[%s8327_s2] ss:$0 sm:$0xff]  ;;  %s7300_s14 = scalar_lea.vmem %s8332_s7, %s3854_s11 }
  0x12   : > { %4025 = vmatprep.subr.bf16.mxu0 %v4183_v4  ;;  %v4644_v8 = vld [vmem:[%s4638_s22] sm:$0xff]   ;;  %2971 = vrot.lane.b32.xlu1 %v4199_v6, %s4558_s27  ;;  %v4648_v9 = vld [vmem:[%s4638_s22 + $0x8] sm:$0xff]   ;;  %v4653_v10 = vld [vmem:[%s4638_s22 + $0x10] sm:$0xff]   ;;  %s7389_s17 = scalar_lea.vmem %s8331_s6, %s3854_s11 }
  0x13   : > { %1349 = vrot.lane.b32.xlu0 %v4182_v3, %s4557_s10  ;;  %4027 = vmatprep.mubr.msk.bf16.mxu0 %vm489_vm0, %v4644_v8  ;;  %v4664_v11 = vld [vmem:[%s4638_s22 + $0x18] sm:$0xff]   ;;  %v4667_v12 = vld [vmem:[%s4638_s22 + $0x20] sm:$0xff]   ;;  %v4674_v13 = vld [vmem:[%s4638_s22 + $0x28] sm:$0xff]  }
  0x14   : > { %4063 = vmatprep.mubr.msk.bf16.mxu1 %vm489_vm0, %v4644_v8  ;;  %v4677_v14 = vld [vmem:[%s4638_s22 + $0x30] sm:$0xff]   ;;  %v4684_v15 = vld [vmem:[%s4638_s22 + $0x38] sm:$0xff]   ;;  %v4687_v16 = vld [vmem:[%s4638_s22 + $0x40] sm:$0xff]  }
  0x15   : > { %4026 = vmatpush3.bf16.msra.mxu0 %v4183_v4  ;;  %v4694_v17 = vld [vmem:[%s4638_s22 + $0x48] sm:$0xff]   ;;  %v4697_v18 = vld [vmem:[%s4638_s22 + $0x50] sm:$0xff]   ;;  %v4704_v19 = vld [vmem:[%s4638_s22 + $0x58] sm:$0xff]  }
  0x16   : > { %2973 = vrot.lane.b32.xlu1 %v4202_v7, %s4558_s27  ;;  %v4707_v20 = vld [vmem:[%s4638_s22 + $0x60] sm:$0xff]   ;;  %v4714_v21 = vld [vmem:[%s4638_s22 + $0x68] sm:$0xff]   ;;  %v4717_v22 = vld [vmem:[%s4638_s22 + $0x70] sm:$0xff]  }
  0x17   : > { %2161 = vrot.lane.b32.xlu0 %v4185_v5, %s4556_s30  ;;  %v4733_v24 = vld [vmem:[%s4638_s22 + $0x78] sm:$0xff]  }
  0x18   : > { %4028 = vmatmul.mubr.msk.bf16.vlgmr.msra.gmra.mrb[0].mxu0 %vm489_vm0, %v4648_v9 }
  0x19   : > { %4031 = vmatprep.mubr.msk.bf16.mxu0 %vm489_vm0, %v4653_v10 }
  0x1a   : > { %1353 = vrot.lane.b32.xlu1 %v4726_v23, %s4557_s10 }
  0x1b   : > { %2165 = vrot.lane.b32.xlu0 %v4726_v23, %s4556_s30 }
  0x1e   : > { %2977 = vrot.lane.b32.xlu1 %v4726_v23, %s4558_s27 }
  0x20   : > { %4032 = vmatmul.mubr.msk.bf16.gmra.mrb[4].mxu0 %vm489_vm0, %v4664_v11 }
  0x21   : > { %4035 = vmatprep.mubr.msk.bf16.mxu0 %vm489_vm0, %v4667_v12 }
  0x28   : > { %4036 = vmatmul.mubr.msk.bf16.gmra.mrb[8].mxu0 %vm489_vm0, %v4674_v13 }
  0x29   : > { %4039 = vmatprep.mubr.msk.bf16.mxu0 %vm489_vm0, %v4677_v14 }
  0x30   : > { %4040 = vmatmul.mubr.msk.bf16.gmra.mrb[12].mxu0 %vm489_vm0, %v4684_v15 }
  0x31   : > { %4043 = vmatprep.mubr.msk.bf16.mxu0 %vm489_vm0, %v4687_v16 }
  0x38   : > { %4044 = vmatmul.mubr.msk.bf16.gmra.mrb[16].mxu0 %vm489_vm0, %v4694_v17 }
  0x39   : > { %4047 = vmatprep.mubr.msk.bf16.mxu0 %vm489_vm0, %v4697_v18 }
  0x40   : > { %4048 = vmatmul.mubr.msk.bf16.gmra.mrb[20].mxu0 %vm489_vm0, %v4704_v19 }
  0x41   : > { %4051 = vmatprep.mubr.msk.bf16.mxu0 %vm489_vm0, %v4707_v20 }
  0x48   : > { %4052 = vmatmul.mubr.msk.bf16.gmra.mrb[24].mxu0 %vm489_vm0, %v4714_v21 }
  0x49   : > { %4055 = vmatprep.mubr.msk.bf16.mxu0 %vm489_vm0, %v4717_v22 }
  0x50   : > { %4056 = vmatmul.mubr.msk.bf16.gmra.mrb[28].mxu0 %vm489_vm0, %v4733_v24 }
  0x51   : > { %4099 = vmatprep.mubr.msk.bf16.mxu0 %vm489_vm0, %v4644_v8 }
  0x80   : > { %v2160_v25 = vpop.permute.xlu1 %2159 }
  0x81   : > { %v1348_v26 = vpop.permute.xlu0 %1347  ;;  %4095 = vmatprep.subr.bf16.mxu0 %v2160_v25 }
  0x82   : > { %4059 = vmatprep.subr.bf16.mxu1 %v1348_v26  ;;  %4096 = vmatpush3.bf16.msra.mxu0 %v2160_v25 }
  0x83   : > { %4060 = vmatpush3.bf16.msra.mxu1 %v1348_v26 }
  0x84   : > { %v2972_v28 = vpop.permute.xlu1 %2971 }
  0x85   : > { %v1350_v27 = vpop.permute.xlu0 %1349 }
  0x86   : > { %4061 = vmatprep.subr.bf16.mxu1 %v1350_v27 }
  0x87   : > { %4062 = vmatpush3.bf16.msra.mxu1 %v1350_v27 }
  0x88   : > { %4131 = vmatprep.subr.bf16.mxu1 %v2972_v28  ;;  %v2974_v30 = vpop.permute.xlu1 %2973 }
  0x89   : > { %v2162_v29 = vpop.permute.xlu0 %2161 }
  0x8a   : > { %4064 = vmatmul.mubr.msk.bf16.vlgmr.msra.gmra.mrb[0].mxu1 %vm489_vm0, %v4648_v9  ;;  %4097 = vmatprep.subr.bf16.mxu0 %v2162_v29 }
  0x8b   : > { %4098 = vmatpush3.bf16.msra.mxu0 %v2162_v29  ;;  %4067 = vmatprep.mubr.msk.bf16.mxu1 %vm489_vm0, %v4653_v10 }
  0x8c   : > { %4132 = vmatpush3.bf16.msra.mxu1 %v2972_v28 }
  0x8d   : > { %4133 = vmatprep.subr.bf16.mxu1 %v2974_v30 }
  0x8e   : > { %4100 = vmatmul.mubr.msk.bf16.vlgmr.msra.gmra.mrb[32].mxu0 %vm489_vm0, %v4648_v9 }
  0x8f   : > { %4103 = vmatprep.mubr.msk.bf16.mxu0 %vm489_vm0, %v4653_v10 }
  0x90   : > { %4134 = vmatpush3.bf16.msra.mxu1 %v2974_v30 }
  0x92   : > { %4068 = vmatmul.mubr.msk.bf16.gmra.mrb[4].mxu1 %vm489_vm0, %v4664_v11 }
  0x93   : > { %4071 = vmatprep.mubr.msk.bf16.mxu1 %vm489_vm0, %v4667_v12 }
  0x96   : > { %4104 = vmatmul.mubr.msk.bf16.gmra.mrb[36].mxu0 %vm489_vm0, %v4664_v11 }
  0x97   : > { %4107 = vmatprep.mubr.msk.bf16.mxu0 %vm489_vm0, %v4667_v12 }
  0x9a   : > { %4072 = vmatmul.mubr.msk.bf16.gmra.mrb[8].mxu1 %vm489_vm0, %v4674_v13 }
  0x9b   : > { %4075 = vmatprep.mubr.msk.bf16.mxu1 %vm489_vm0, %v4677_v14 }
  0x9e   : > { %4108 = vmatmul.mubr.msk.bf16.gmra.mrb[40].mxu0 %vm489_vm0, %v4674_v13 }
  0x9f   : > { %4111 = vmatprep.mubr.msk.bf16.mxu0 %vm489_vm0, %v4677_v14 }
  0xa2   : > { %4076 = vmatmul.mubr.msk.bf16.gmra.mrb[12].mxu1 %vm489_vm0, %v4684_v15 }
  0xa3   : > { %4079 = vmatprep.mubr.msk.bf16.mxu1 %vm489_vm0, %v4687_v16 }
  0xa6   : > { %4112 = vmatmul.mubr.msk.bf16.gmra.mrb[44].mxu0 %vm489_vm0, %v4684_v15 }
  0xa7   : > { %4115 = vmatprep.mubr.msk.bf16.mxu0 %vm489_vm0, %v4687_v16 }
  0xaa   : > { %4080 = vmatmul.mubr.msk.bf16.gmra.mrb[16].mxu1 %vm489_vm0, %v4694_v17 }
  0xab   : > { %4083 = vmatprep.mubr.msk.bf16.mxu1 %vm489_vm0, %v4697_v18 }
  0xae   : > { %4116 = vmatmul.mubr.msk.bf16.gmra.mrb[48].mxu0 %vm489_vm0, %v4694_v17 }
  0xaf   : > { %4119 = vmatprep.mubr.msk.bf16.mxu0 %vm489_vm0, %v4697_v18 }
  0xb2   : > { %4084 = vmatmul.mubr.msk.bf16.gmra.mrb[20].mxu1 %vm489_vm0, %v4704_v19 }
  0xb3   : > { %4087 = vmatprep.mubr.msk.bf16.mxu1 %vm489_vm0, %v4707_v20 }
  0xb6   : > { %4120 = vmatmul.mubr.msk.bf16.gmra.mrb[52].mxu0 %vm489_vm0, %v4704_v19 }
  0xb7   : > { %4123 = vmatprep.mubr.msk.bf16.mxu0 %vm489_vm0, %v4707_v20 }
  0xba   : > { %4088 = vmatmul.mubr.msk.bf16.gmra.mrb[24].mxu1 %vm489_vm0, %v4714_v21 }
  0xbb   : > { %4091 = vmatprep.mubr.msk.bf16.mxu1 %vm489_vm0, %v4717_v22 }
  0xbe   : > { %4124 = vmatmul.mubr.msk.bf16.gmra.mrb[56].mxu0 %vm489_vm0, %v4714_v21 }
  0xbf   : > { %4127 = vmatprep.mubr.msk.bf16.mxu0 %vm489_vm0, %v4717_v22 }
  0xc2   : > { %4092 = vmatmul.mubr.msk.bf16.gmra.mrb[28].mxu1 %vm489_vm0, %v4733_v24 }
  0xc3   : > { %4135 = vmatprep.mubr.msk.bf16.mxu1 %vm489_vm0, %v4644_v8 }
  0xc6   : > { %4128 = vmatmul.mubr.msk.bf16.gmra.mrb[60].mxu0 %vm489_vm0, %v4733_v24 }
  0xca   : > { %4136 = vmatmul.mubr.msk.bf16.vlgmr.msra.gmra.mrb[32].mxu1 %vm489_vm0, %v4648_v9 }
  0xcb   : > { %4139 = vmatprep.mubr.msk.bf16.mxu1 %vm489_vm0, %v4653_v10 }
  0xd2   : > { %4140 = vmatmul.mubr.msk.bf16.gmra.mrb[36].mxu1 %vm489_vm0, %v4664_v11 }
  0xd3   : > { %4143 = vmatprep.mubr.msk.bf16.mxu1 %vm489_vm0, %v4667_v12 }
  0xda   : > { %4144 = vmatmul.mubr.msk.bf16.gmra.mrb[40].mxu1 %vm489_vm0, %v4674_v13 }
  0xdb   : > { %4147 = vmatprep.mubr.msk.bf16.mxu1 %vm489_vm0, %v4677_v14 }
  0xe2   : > { %4148 = vmatmul.mubr.msk.bf16.gmra.mrb[44].mxu1 %vm489_vm0, %v4684_v15 }
  0xe3   : > { %4151 = vmatprep.mubr.msk.bf16.mxu1 %vm489_vm0, %v4687_v16 }
  0xea   : > { %4152 = vmatmul.mubr.msk.bf16.gmra.mrb[48].mxu1 %vm489_vm0, %v4694_v17 }
  0xeb   : > { %v4029_v31 = vpop.f32.mrb[0].mxu0  ;;  %4155 = vmatprep.mubr.msk.bf16.mxu1 %vm489_vm0, %v4697_v18 }
  0xec   : > { %v4824_v32 = vadd.f32 %v4029_v31, %v4726_v23  ;;  %v572_v33 = vpop.f32.mrb[1].mxu0 }
  0xed   : > { %v4827_v34 = vadd.f32 %v4726_v23, %v572_v33  ;;  %v4030_v35 = vpop.f32.mrb[2].mxu0 }
  0xee   : > { %v706_v36 = vsel %vm699_vm1, %v4824_v32, -inf  ;;  %v575_v37 = vpop.f32.mrb[3].mxu0  ;;  %v4835_v39 = vadd.f32 %v4030_v35, %v4726_v23 }
  0xef   : > { %707 = vmax.xlane.f32.xlu0 %v706_v36  ;;  %v4832_v38 = vadd.f32 %v4726_v23, %v575_v37  ;;  %v700_v40 = vsel %vm699_vm1, %v4827_v34, -inf }
  0xf0   : > { %v709_v45 = vsel %vm699_vm1, %v4835_v39, -inf }
  0xf1   : > { %v703_v41 = vsel %vm699_vm1, %v4832_v38, -inf }
  0xf2   : > { %4156 = vmatmul.mubr.msk.bf16.gmra.mrb[52].mxu1 %vm489_vm0, %v4704_v19  ;;  %704 = vmax.xlane.f32.xlu1 %v703_v41 }
  0xf3   : > { %701 = vmax.xlane.f32.xlu0 %v700_v40  ;;  %v4033_v42 = vpop.f32.mrb[4].mxu0  ;;  %4159 = vmatprep.mubr.msk.bf16.mxu1 %vm489_vm0, %v4707_v20 }
  0xf4   : > { %v4846_v43 = vadd.f32 %v4033_v42, %v4726_v23  ;;  %v588_v44 = vpop.f32.mrb[5].mxu0 }
  0xf5   : > { %v4851_v46 = vadd.f32 %v4726_v23, %v588_v44  ;;  %v4034_v47 = vpop.f32.mrb[6].mxu0 }
  0xf6   : > { %8481 = vst [vmem:[#allocation2_spill] sm:$0xff] %v4846_v43  ;;  %v4854_v48 = vadd.f32 %v4034_v47, %v4726_v23  ;;  %v591_v49 = vpop.f32.mrb[7].mxu0  ;;  %v718_v50 = vsel %vm699_vm1, %v4846_v43, -inf }
  0xf7   : > { %710 = vmax.xlane.f32.xlu0 %v709_v45  ;;  %719 = vmax.xlane.f32.xlu1 %v718_v50  ;;  %v4859_v51 = vadd.f32 %v4726_v23, %v591_v49  ;;  %v712_v53 = vsel %vm699_vm1, %v4851_v46, -inf }
  0xf8   : > { %8482 = vst [vmem:[#allocation3_spill] sm:$0xff] %v4854_v48  ;;  %v721_v52 = vsel %vm699_vm1, %v4854_v48, -inf }
  0xf9   : > { %8483 = vst [vmem:[#allocation4_spill] sm:$0xff] %v4859_v51  ;;  %v715_v57 = vsel %vm699_vm1, %v4859_v51, -inf }
  0xfa   : > { %4160 = vmatmul.mubr.msk.bf16.gmra.mrb[56].mxu1 %vm489_vm0, %v4714_v21 }
  0xfb   : > { %722 = vmax.xlane.f32.xlu0 %v721_v52  ;;  %v4037_v54 = vpop.f32.mrb[8].mxu0  ;;  %713 = vmax.xlane.f32.xlu1 %v712_v53 }
  0xfc   : > { %v4868_v55 = vadd.f32 %v4037_v54, %v4726_v23  ;;  %v604_v56 = vpop.f32.mrb[9].mxu0  ;;  %4163 = vmatprep.mubr.msk.bf16.mxu1 %vm489_vm0, %v4717_v22 }
  0xfd   : > { %v4875_v58 = vadd.f32 %v4726_v23, %v604_v56  ;;  %v4038_v59 = vpop.f32.mrb[10].mxu0 }
  0xfe   : > { %8484 = vst [vmem:[#allocation5_spill] sm:$0xff] %v4868_v55  ;;  %v4878_v60 = vadd.f32 %v4038_v59, %v4726_v23  ;;  %v607_v61 = vpop.f32.mrb[11].mxu0  ;;  %v730_v62 = vsel %vm699_vm1, %v4868_v55, -inf }
  0xff   : > { %8485 = vst [vmem:[#allocation6_spill] sm:$0xff] %v4875_v58  ;;  %716 = vmax.xlane.f32.xlu0 %v715_v57  ;;  %731 = vmax.xlane.f32.xlu1 %v730_v62  ;;  %v4883_v63 = vadd.f32 %v4726_v23, %v607_v61  ;;  %v724_v1 = vsel %vm699_vm1, %v4875_v58, -inf }
 0x100   : > { %8486 = vst [vmem:[#allocation7_spill] sm:$0xff] %v4878_v60  ;;  %v733_v0 = vsel %vm699_vm1, %v4878_v60, -inf }
 0x101   : > { %8487 = vst [vmem:[#allocation8_spill] sm:$0xff] %v4883_v63  ;;  %v727_v5 = vsel %vm699_vm1, %v4883_v63, -inf }
 0x102   : > { %4164 = vmatmul.mubr.msk.bf16.gmra.mrb[60].mxu1 %vm489_vm0, %v4733_v24 }
 0x103   : > { %734 = vmax.xlane.f32.xlu0 %v733_v0  ;;  %v4041_v2 = vpop.f32.mrb[12].mxu0  ;;  %725 = vmax.xlane.f32.xlu1 %v724_v1 }
 0x104   : > { %v4892_v3 = vadd.f32 %v4041_v2, %v4726_v23  ;;  %v620_v4 = vpop.f32.mrb[13].mxu0 }
 0x105   : > { %v4897_v6 = vadd.f32 %v4726_v23, %v620_v4  ;;  %v4042_v7 = vpop.f32.mrb[14].mxu0 }
 0x106   : > { %8488 = vst [vmem:[#allocation9_spill] sm:$0xff] %v4892_v3  ;;  %v4900_v8 = vadd.f32 %v4042_v7, %v4726_v23  ;;  %v623_v9 = vpop.f32.mrb[15].mxu0  ;;  %v742_v10 = vsel %vm699_vm1, %v4892_v3, -inf }
 0x107   : > { %8489 = vst [vmem:[#allocation10_spill] sm:$0xff] %v4897_v6  ;;  %728 = vmax.xlane.f32.xlu0 %v727_v5  ;;  %743 = vmax.xlane.f32.xlu1 %v742_v10  ;;  %v4905_v11 = vadd.f32 %v4726_v23, %v623_v9  ;;  %v736_v13 = vsel %vm699_vm1, %v4897_v6, -inf }
 0x108   : > { %8490 = vst [vmem:[#allocation11_spill] sm:$0xff] %v4900_v8  ;;  %v745_v12 = vsel %vm699_vm1, %v4900_v8, -inf }
 0x109   : > { %8491 = vst [vmem:[#allocation12_spill] sm:$0xff] %v4905_v11  ;;  %v739_v17 = vsel %vm699_vm1, %v4905_v11, -inf }
 0x10b   : > { %746 = vmax.xlane.f32.xlu0 %v745_v12  ;;  %v4045_v14 = vpop.f32.mrb[16].mxu0  ;;  %737 = vmax.xlane.f32.xlu1 %v736_v13 }
 0x10c   : > { %v4912_v15 = vadd.f32 %v4045_v14, %v4726_v23  ;;  %v636_v16 = vpop.f32.mrb[17].mxu0 }
 0x10d   : > { %v4917_v18 = vadd.f32 %v4726_v23, %v636_v16  ;;  %v4046_v19 = vpop.f32.mrb[18].mxu0 }
 0x10e   : > { %8492 = vst [vmem:[#allocation13_spill] sm:$0xff] %v4912_v15  ;;  %v4920_v20 = vadd.f32 %v4046_v19, %v4726_v23  ;;  %v639_v21 = vpop.f32.mrb[19].mxu0  ;;  %v754_v22 = vsel %vm699_vm1, %v4912_v15, -inf }
 0x10f   : > { %8493 = vst [vmem:[#allocation14_spill] sm:$0xff] %v4917_v18  ;;  %740 = vmax.xlane.f32.xlu0 %v739_v17  ;;  %755 = vmax.xlane.f32.xlu1 %v754_v22  ;;  %v4925_v24 = vadd.f32 %v4726_v23, %v639_v21  ;;  %v748_v26 = vsel %vm699_vm1, %v4917_v18, -inf  ;;  %v4993_v17 = vpop.permute.xlu1 %1353  ;;  %v4998_v22 = vpop.permute.xlu0 %2165 }
 0x110   : > { %8494 = vst [vmem:[#allocation15_spill] sm:$0xff] %v4920_v20  ;;  %v757_v25 = vsel %vm699_vm1, %v4920_v20, -inf }
 0x111   : > { %8495 = vst [vmem:[#allocation16_spill] sm:$0xff] %v4925_v24  ;;  %v751_v30 = vsel %vm699_vm1, %v4925_v24, -inf }
 0x113   : > { %758 = vmax.xlane.f32.xlu0 %v757_v25  ;;  %v4049_v27 = vpop.f32.mrb[20].mxu0  ;;  %749 = vmax.xlane.f32.xlu1 %v748_v26 }
 0x114   : > { %v4932_v28 = vadd.f32 %v4049_v27, %v4726_v23  ;;  %v652_v29 = vpop.f32.mrb[21].mxu0 }
 0x115   : > { %v4937_v31 = vadd.f32 %v4726_v23, %v652_v29  ;;  %v4050_v33 = vpop.f32.mrb[22].mxu0 }
 0x116   : > { %8496 = vst [vmem:[#allocation17_spill] sm:$0xff] %v4932_v28  ;;  %v4940_v35 = vadd.f32 %v4050_v33, %v4726_v23  ;;  %v655_v36 = vpop.f32.mrb[23].mxu0  ;;  %v766_v37 = vsel %vm699_vm1, %v4932_v28, -inf }
 0x117   : > { %8497 = vst [vmem:[#allocation18_spill] sm:$0xff] %v4937_v31  ;;  %752 = vmax.xlane.f32.xlu0 %v751_v30  ;;  %767 = vmax.xlane.f32.xlu1 %v766_v37  ;;  %v4945_v40 = vadd.f32 %v4726_v23, %v655_v36  ;;  %v760_v42 = vsel %vm699_vm1, %v4937_v31, -inf }
 0x118   : > { %8498 = vst [vmem:[#allocation19_spill] sm:$0xff] %v4940_v35  ;;  %v769_v41 = vsel %vm699_vm1, %v4940_v35, -inf }
 0x119   : > { %8499 = vst [vmem:[#allocation20_spill] sm:$0xff] %v4945_v40  ;;  %v763_v49 = vsel %vm699_vm1, %v4945_v40, -inf }
 0x11b   : > { %770 = vmax.xlane.f32.xlu0 %v769_v41  ;;  %v4053_v44 = vpop.f32.mrb[24].mxu0  ;;  %761 = vmax.xlane.f32.xlu1 %v760_v42 }
 0x11c   : > { %v4952_v45 = vadd.f32 %v4053_v44, %v4726_v23  ;;  %v668_v47 = vpop.f32.mrb[25].mxu0 }
 0x11d   : > { %v4957_v50 = vadd.f32 %v4726_v23, %v668_v47  ;;  %v4054_v52 = vpop.f32.mrb[26].mxu0 }
 0x11e   : > { %8500 = vst [vmem:[#allocation21_spill] sm:$0xff] %v4952_v45  ;;  %v4960_v53 = vadd.f32 %v4054_v52, %v4726_v23  ;;  %v671_v54 = vpop.f32.mrb[27].mxu0  ;;  %v778_v56 = vsel %vm699_vm1, %v4952_v45, -inf }
 0x11f   : > { %8501 = vst [vmem:[#allocation22_spill] sm:$0xff] %v4957_v50  ;;  %764 = vmax.xlane.f32.xlu0 %v763_v49  ;;  %779 = vmax.xlane.f32.xlu1 %v778_v56  ;;  %v4965_v57 = vadd.f32 %v4726_v23, %v671_v54  ;;  %v772_v61 = vsel %vm699_vm1, %v4957_v50, -inf }
 0x120   : > { %8502 = vst [vmem:[#allocation23_spill] sm:$0xff] %v4960_v53  ;;  %v781_v59 = vsel %vm699_vm1, %v4960_v53, -inf }
 0x121   : > { %8503 = vst [vmem:[#allocation24_spill] sm:$0xff] %v4965_v57  ;;  %v775_v2 = vsel %vm699_vm1, %v4965_v57, -inf }
 0x123   : > { %782 = vmax.xlane.f32.xlu0 %v781_v59  ;;  %v4057_v62 = vpop.f32.mrb[28].mxu0  ;;  %773 = vmax.xlane.f32.xlu1 %v772_v61 }
 0x124   : > { %v4972_v0 = vadd.f32 %v4057_v62, %v4726_v23  ;;  %v684_v1 = vpop.f32.mrb[29].mxu0 }
 0x125   : > { %v4977_v4 = vadd.f32 %v4726_v23, %v684_v1  ;;  %v4058_v5 = vpop.f32.mrb[30].mxu0 }
 0x126   : > { %8504 = vst [vmem:[#allocation25_spill] sm:$0xff] %v4972_v0  ;;  %v4980_v7 = vadd.f32 %v4058_v5, %v4726_v23  ;;  %v687_v9 = vpop.f32.mrb[31].mxu0  ;;  %v790_v10 = vsel %vm699_vm1, %v4972_v0, -inf }
 0x127   : > { %8505 = vst [vmem:[#allocation26_spill] sm:$0xff] %v4977_v4  ;;  %776 = vmax.xlane.f32.xlu0 %v775_v2  ;;  %791 = vmax.xlane.f32.xlu1 %v790_v10  ;;  %v4985_v12 = vadd.f32 %v4726_v23, %v687_v9  ;;  %v784_v14 = vsel %vm699_vm1, %v4977_v4, -inf }
 0x128   : > { %8506 = vst [vmem:[#allocation27_spill] sm:$0xff] %v4980_v7  ;;  %v793_v13 = vsel %vm699_vm1, %v4980_v7, -inf }
 0x129   : > { %8507 = vst [vmem:[#allocation28_spill] sm:$0xff] %v4985_v12  ;;  %v787_v16 = vsel %vm699_vm1, %v4985_v12, -inf }
 0x12b   : > { %794 = vmax.xlane.f32.xlu0 %v793_v13  ;;  %785 = vmax.xlane.f32.xlu1 %v784_v14 }
 0x12f   : > { %788 = vmax.xlane.f32.xlu0 %v787_v16 }
 0x15d   : > { %v4065_v19 = vpop.f32.mrb[0].mxu1 }
 0x15e   : > { %v4996_v21 = vadd.f32 %v4065_v19, %v4993_v17  ;;  %v1390_v23 = vpop.f32.mrb[1].mxu1 }
 0x15f   : > { %v4066_v25 = vpop.f32.mrb[2].mxu1  ;;  %v5009_v41 = vadd.f32 %v1390_v23, %v4993_v17 }
 0x160   : > { %8508 = vst [vmem:[#allocation29_spill] sm:$0xff] %v4996_v21  ;;  %v1523_v26 = vsel %vm699_vm1, %v4996_v21, -inf  ;;  %v1393_v27 = vpop.f32.mrb[3].mxu1  ;;  %v5029_v13 = vadd.f32 %v4066_v25, %v4993_v17 }
 0x161   : > { %v4101_v29 = vpop.f32.mrb[32].mxu0  ;;  %1524 = vmax.xlane.f32.xlu0 %v1523_v26  ;;  %8511 = vst [vmem:[#allocation32_spill] sm:$0xff] %v5009_v41  ;;  %v5014_v49 = vadd.f32 %v1393_v27, %v4993_v17  ;;  %v1517_v61 = vsel %vm699_vm1, %v5009_v41, -inf }
 0x162   : > { %v5003_v30 = vadd.f32 %v4101_v29, %v4998_v22  ;;  %v2202_v33 = vpop.f32.mrb[33].mxu0  ;;  %8515 = vst [vmem:[#allocation36_spill] sm:$0xff] %v5029_v13  ;;  %v1526_v25 = vsel %vm699_vm1, %v5029_v13, -inf }
 0x163   : > { %v4102_v36 = vpop.f32.mrb[34].mxu0  ;;  %8512 = vst [vmem:[#allocation33_spill] sm:$0xff] %v5014_v49  ;;  %v5019_v59 = vadd.f32 %v2202_v33, %v4998_v22  ;;  %v1520_v5 = vsel %vm699_vm1, %v5014_v49, -inf }
 0x164   : > { %8509 = vst [vmem:[#allocation30_spill] sm:$0xff] %v5003_v30  ;;  %v5006_v37 = vadd.f32 %v4102_v36, %v4998_v22  ;;  %v2335_v42 = vsel %vm699_vm1, %v5003_v30, -inf  ;;  %v2205_v44 = vpop.f32.mrb[35].mxu0 }
 0x165   : > { %2336 = vmax.xlane.f32.xlu1 %v2335_v42  ;;  %v4069_v47 = vpop.f32.mrb[4].mxu1  ;;  %8513 = vst [vmem:[#allocation34_spill] sm:$0xff] %v5019_v59  ;;  %v5024_v2 = vadd.f32 %v2205_v44, %v4998_v22  ;;  %v2329_v14 = vsel %vm699_vm1, %v5019_v59, -inf  ;;  %v5084_v59 = vpop.permute.xlu1 %2977 }
 0x166   : > { %8510 = vst [vmem:[#allocation31_spill] sm:$0xff] %v5006_v37  ;;  %v2338_v52 = vsel %vm699_vm1, %v5006_v37, -inf  ;;  %v1406_v54 = vpop.f32.mrb[5].mxu1  ;;  %v5034_v23 = vadd.f32 %v4069_v47, %v4993_v17  ;;  %8523 = vst [vmem:[#allocation44_spill] sm:$0xff] %v5084_v59 }
 0x167   : > { %2339 = vmax.xlane.f32.xlu0 %v2338_v52  ;;  %v4070_v56 = vpop.f32.mrb[6].mxu1  ;;  %8514 = vst [vmem:[#allocation35_spill] sm:$0xff] %v5024_v2  ;;  %v2332_v26 = vsel %vm699_vm1, %v5024_v2, -inf  ;;  %v5048_v44 = vadd.f32 %v1406_v54, %v4993_v17 }
 0x168   : > { %v1409_v62 = vpop.f32.mrb[7].mxu1  ;;  %8516 = vst [vmem:[#allocation37_spill] sm:$0xff] %v5034_v23  ;;  %v1535_v47 = vsel %vm699_vm1, %v5034_v23, -inf }
 0x169   : > { %1518 = vmax.xlane.f32.xlu1 %v1517_v61  ;;  %v4105_v1 = vpop.f32.mrb[36].mxu0  ;;  %8518 = vst [vmem:[#allocation39_spill] sm:$0xff] %v5048_v44  ;;  %v1529_v54 = vsel %vm699_vm1, %v5048_v44, -inf }
 0x16a   : > { %v2218_v9 = vpop.f32.mrb[37].mxu0  ;;  %v5041_v33 = vadd.f32 %v4105_v1, %v4998_v22 }
 0x16b   : > { %1521 = vmax.xlane.f32.xlu0 %v1520_v5  ;;  %v4106_v10 = vpop.f32.mrb[38].mxu0  ;;  %v5053_v5 = vadd.f32 %v2218_v9, %v4998_v22  ;;  %v5069_v9 = vadd.f32 %v4070_v56, %v4993_v17 }
 0x16c   : > { %v2221_v16 = vpop.f32.mrb[39].mxu0  ;;  %8517 = vst [vmem:[#allocation38_spill] sm:$0xff] %v5041_v33  ;;  %v2347_v1 = vsel %vm699_vm1, %v5041_v33, -inf }
 0x16d   : > { %2330 = vmax.xlane.f32.xlu1 %v2329_v14  ;;  %v4073_v19 = vpop.f32.mrb[8].mxu1  ;;  %8519 = vst [vmem:[#allocation40_spill] sm:$0xff] %v5053_v5  ;;  %8521 = vst [vmem:[#allocation42_spill] sm:$0xff] %v5069_v9  ;;  %v2341_v33 = vsel %vm699_vm1, %v5053_v5, -inf  ;;  %v5091_v5 = vadd.f32 %v1409_v62, %v4993_v17 }
 0x16e   : > { %v1422_v27 = vpop.f32.mrb[9].mxu1 }
 0x16f   : > { %2333 = vmax.xlane.f32.xlu0 %v2332_v26  ;;  %v5038_v29 = vpop.f32.mrb[10].mxu1  ;;  %8524 = vst [vmem:[#allocation45_spill] sm:$0xff] %v5091_v5 }
 0x170   : > { %v5045_v36 = vpop.f32.mrb[11].mxu1 }
 0x171   : > { %1527 = vmax.xlane.f32.xlu1 %v1526_v25  ;;  %v4109_v42 = vpop.f32.mrb[40].mxu0  ;;  %v5060_v25 = vadd.f32 %v4106_v10, %v4998_v22  ;;  %v5078_v10 = vadd.f32 %v2221_v16, %v4998_v22 }
 0x172   : > { %v2234_v52 = vpop.f32.mrb[41].mxu0 }
 0x173   : > { %1536 = vmax.xlane.f32.xlu0 %v1535_v47  ;;  %v4110_v61 = vpop.f32.mrb[42].mxu0  ;;  %8520 = vst [vmem:[#allocation41_spill] sm:$0xff] %v5060_v25  ;;  %8522 = vst [vmem:[#allocation43_spill] sm:$0xff] %v5078_v10  ;;  %v2350_v2 = vsel %vm699_vm1, %v5060_v25, -inf  ;;  %v5100_v25 = vadd.f32 %v4073_v19, %v4993_v17 }
 0x174   : > { %v2237_v14 = vpop.f32.mrb[43].mxu0 }
 0x175   : > { %2348 = vmax.xlane.f32.xlu1 %v2347_v1  ;;  %v5057_v26 = vpop.f32.mrb[12].mxu1  ;;  %8525 = vst [vmem:[#allocation46_spill] sm:$0xff] %v5100_v25 }
 0x176   : > { %v5064_v37 = vpop.f32.mrb[13].mxu1 }
 0x177   : > { %1530 = vmax.xlane.f32.xlu0 %v1529_v54  ;;  %v5066_v47 = vpop.f32.mrb[14].mxu1 }
 0x178   : > { %v5073_v1 = vpop.f32.mrb[15].mxu1 }
 0x179   : > { %2342 = vmax.xlane.f32.xlu1 %v2341_v33  ;;  %v5075_v30 = vpop.f32.mrb[44].mxu0  ;;  %v1538_v33 = vsel %vm699_vm1, %v5069_v9, -inf  ;;  %v5113_v9 = vadd.f32 %v4109_v42, %v4998_v22 }
 0x17a   : > { %v5082_v54 = vpop.f32.mrb[45].mxu0 }
 0x17b   : > { %2351 = vmax.xlane.f32.xlu0 %v2350_v2  ;;  %v5086_v56 = vpop.f32.mrb[46].mxu0  ;;  %v2344_v2 = vsel %vm699_vm1, %v5078_v10, -inf  ;;  %8526 = vst [vmem:[#allocation47_spill] sm:$0xff] %v5113_v9  ;;  %v5122_v10 = vadd.f32 %v1422_v27, %v4993_v17 }
 0x17c   : > { %v5088_v23 = vpop.xlane.xlu0 %707  ;;  %v5095_v16 = vpop.f32.mrb[47].mxu0 }
 0x17d   : > { %1539 = vmax.xlane.f32.xlu1 %v1538_v33  ;;  %v5097_v44 = vpop.f32.mrb[16].mxu1  ;;  %v1532_v33 = vsel %vm699_vm1, %v5091_v5, -inf  ;;  %8527 = vst [vmem:[#allocation48_spill] sm:$0xff] %v5122_v10  ;;  %v5133_v5 = vadd.f32 %v2234_v52, %v4998_v22 }
 0x17e   : > { %v5104_v13 = vpop.f32.mrb[17].mxu1 }
 0x17f   : > { %2345 = vmax.xlane.f32.xlu0 %v2344_v2  ;;  %v5106_v21 = vpop.xlane.xlu1 %704  ;;  %v5108_v62 = vpop.f32.mrb[18].mxu1  ;;  %v1547_v2 = vsel %vm699_vm1, %v5100_v25, -inf  ;;  %8528 = vst [vmem:[#allocation49_spill] sm:$0xff] %v5133_v5  ;;  %v5144_v25 = vadd.f32 %v4110_v61, %v4998_v22  ;;  %v2353_v45 = vsel %vm699_vm1, %v5133_v5, -inf  ;;  %v5177_v5 = vadd.f32 %v5045_v36, %v4993_v17 }
 0x180   : > { %v5110_v49 = vpop.xlane.xlu0 %701  ;;  %v5117_v19 = vpop.f32.mrb[19].mxu1 }
 0x181   : > { %1533 = vmax.xlane.f32.xlu1 %v1532_v33  ;;  %v5119_v41 = vpop.f32.mrb[48].mxu0  ;;  %v2359_v33 = vsel %vm699_vm1, %v5113_v9, -inf  ;;  %8529 = vst [vmem:[#allocation50_spill] sm:$0xff] %v5144_v25  ;;  %v5154_v9 = vadd.f32 %v5038_v29, %v4993_v17  ;;  %v2362_v50 = vsel %vm699_vm1, %v5144_v25, -inf  ;;  %8532 = vst [vmem:[#allocation53_spill] sm:$0xff] %v5177_v5  ;;  %v1544_v15 = vsel %vm699_vm1, %v5177_v5, -inf }
 0x182   : > { %v5126_v7 = vpop.f32.mrb[49].mxu0  ;;  %v5225_v5 = vadd.f32 %v5075_v30, %v4998_v22 }
 0x183   : > { %1548 = vmax.xlane.f32.xlu0 %v1547_v2  ;;  %v5128_v0 = vpop.f32.mrb[50].mxu0  ;;  %v1541_v2 = vsel %vm699_vm1, %v5122_v10, -inf  ;;  %8530 = vst [vmem:[#allocation51_spill] sm:$0xff] %v5154_v9  ;;  %v1550_v28 = vsel %vm699_vm1, %v5154_v9, -inf  ;;  %v5201_v9 = vadd.f32 %v5057_v26, %v4993_v17 }
 0x184   : > { %v5130_v42 = vpop.xlane.xlu0 %710  ;;  %v5137_v12 = vpop.xlane.xlu1 %719  ;;  %8536 = vst [vmem:[#allocation57_spill] sm:$0xff] %v5225_v5 }
 0x185   : > { %2360 = vmax.xlane.f32.xlu1 %v2359_v33  ;;  %v5139_v27 = vpop.f32.mrb[20].mxu1  ;;  %v5141_v4 = vpop.f32.mrb[51].mxu0  ;;  %8534 = vst [vmem:[#allocation55_spill] sm:$0xff] %v5201_v9  ;;  %v1559_v3 = vsel %vm699_vm1, %v5201_v9, -inf  ;;  %v5249_v9 = vadd.f32 %v5082_v54, %v4998_v22 }
 0x186   : > { %v5148_v53 = vpop.f32.mrb[21].mxu1 }
 0x187   : > { %1542 = vmax.xlane.f32.xlu0 %v1541_v2  ;;  %v5150_v52 = vpop.f32.mrb[22].mxu1  ;;  %v5167_v2 = vadd.f32 %v2237_v14, %v4998_v22  ;;  %8538 = vst [vmem:[#allocation59_spill] sm:$0xff] %v5249_v9 }
 0x188   : > { %v5156_v33 = vpop.xlane.xlu0 %722  ;;  %v5160_v57 = vpop.xlane.xlu1 %713 }
 0x189   : > { %2354 = vmax.xlane.f32.xlu1 %v2353_v45  ;;  %v5162_v61 = vpop.f32.mrb[52].mxu0  ;;  %v5164_v10 = vpop.f32.mrb[23].mxu1  ;;  %8531 = vst [vmem:[#allocation52_spill] sm:$0xff] %v5167_v2  ;;  %v2356_v36 = vsel %vm699_vm1, %v5167_v2, -inf }
 0x18a   : > { %v5171_v29 = vpop.f32.mrb[53].mxu0 }
 0x18b   : > { %2363 = vmax.xlane.f32.xlu0 %v2362_v50  ;;  %v5173_v35 = vpop.f32.mrb[54].mxu0  ;;  %v5191_v50 = vadd.f32 %v5064_v37, %v4993_v17 }
 0x18c   : > { %v5179_v45 = vpop.xlane.xlu0 %716  ;;  %v5183_v40 = vpop.xlane.xlu1 %731 }
 0x18d   : > { %1551 = vmax.xlane.f32.xlu1 %v1550_v28  ;;  %v5185_v14 = vpop.f32.mrb[24].mxu1  ;;  %v5187_v25 = vpop.f32.mrb[55].mxu0  ;;  %8533 = vst [vmem:[#allocation54_spill] sm:$0xff] %v5191_v50  ;;  %v1553_v26 = vsel %vm699_vm1, %v5191_v50, -inf }
 0x18e   : > { %v5195_v31 = vpop.f32.mrb[25].mxu1 }
 0x18f   : > { %2357 = vmax.xlane.f32.xlu0 %v2356_v36  ;;  %v5197_v20 = vpop.f32.mrb[26].mxu1  ;;  %v5215_v36 = vadd.f32 %v5066_v47, %v4993_v17 }
 0x190   : > { %v5203_v28 = vpop.xlane.xlu0 %734  ;;  %v5207_v24 = vpop.xlane.xlu1 %725 }
 0x191   : > { %1545 = vmax.xlane.f32.xlu1 %v1544_v15  ;;  %v5209_v37 = vpop.f32.mrb[56].mxu0  ;;  %v5211_v2 = vpop.f32.mrb[27].mxu1  ;;  %8535 = vst [vmem:[#allocation56_spill] sm:$0xff] %v5215_v36  ;;  %v1562_v30 = vsel %vm699_vm1, %v5215_v36, -inf  ;;  %v5263_v36 = vadd.f32 %v5095_v16, %v4998_v22  ;;  %v2365_v16 = vsel %vm699_vm1, %v5249_v9, -inf }
 0x192   : > { %v5219_v18 = vpop.f32.mrb[57].mxu0 }
 0x193   : > { %1554 = vmax.xlane.f32.xlu0 %v1553_v26  ;;  %v5221_v8 = vpop.f32.mrb[58].mxu0  ;;  %v5239_v26 = vadd.f32 %v5086_v56, %v4998_v22  ;;  %v2371_v56 = vsel %vm699_vm1, %v5225_v5, -inf  ;;  %8539 = vst [vmem:[#allocation60_spill] sm:$0xff] %v5263_v36  ;;  %v5273_v5 = vadd.f32 %v5073_v1, %v4993_v17 }
 0x194   : > { %v5227_v15 = vpop.xlane.xlu0 %728  ;;  %v5231_v11 = vpop.f32.mrb[59].mxu0 }
 0x195   : > { %v5233_v47 = vpop.f32.mrb[28].mxu1  ;;  %1560 = vmax.xlane.f32.xlu1 %v1559_v3  ;;  %v5235_v50 = vpop.xlane.xlu1 %743  ;;  %8537 = vst [vmem:[#allocation58_spill] sm:$0xff] %v5239_v26  ;;  %v2374_v54 = vsel %vm699_vm1, %v5239_v26, -inf  ;;  %8541 = vst [vmem:[#allocation62_spill] sm:$0xff] %v5273_v5  ;;  %v5285_v26 = vadd.f32 %v5097_v44, %v4993_v17  ;;  %v1556_v9 = vsel %vm699_vm1, %v5273_v5, -inf  ;;  %v798_v44 = vmax.f32 %v5088_v23, %v5137_v12 }
 0x196   : > { %v5241_v6 = vpop.f32.mrb[29].mxu1  ;;  %v796_v5 = vmax.f32 %v5110_v49, %v5160_v57  ;;  %v5327_v57 = vadd.f32 %v5128_v0, %v4998_v22 }
 0x197   : > { %v5245_v60 = vpop.f32.mrb[30].mxu1  ;;  %1563 = vmax.xlane.f32.xlu0 %v1562_v30  ;;  %8544 = vst [vmem:[#allocation65_spill] sm:$0xff] %v5285_v26 }
 0x198   : > { %v5251_v55 = vpop.xlane.xlu0 %746  ;;  %v5253_v3 = vpop.f32.mrb[31].mxu1  ;;  %8549 = vst [vmem:[#allocation70_spill] sm:$0xff] %v5327_v57 }
 0x199   : > { %v5257_v63 = vpop.f32.mrb[60].mxu0  ;;  %2372 = vmax.xlane.f32.xlu1 %v2371_v56  ;;  %v5259_v58 = vpop.xlane.xlu1 %737 }
 0x19a   : > { %v5265_v30 = vpop.f32.mrb[61].mxu0 }
 0x19b   : > { %8540 = vst [vmem:[#allocation61_spill] sm:$0xff] %v5265_v30  ;;  %v5269_v59 = vpop.f32.mrb[62].mxu0  ;;  %2375 = vmax.xlane.f32.xlu0 %v2374_v54  ;;  %v2368_v54 = vsel %vm699_vm1, %v5263_v36, -inf  ;;  %v799_v36 = vmax.f32 %v5130_v42, %v5156_v33 }
 0x19c   : > { %v5275_v48 = vpop.xlane.xlu0 %740  ;;  %v5277_v56 = vpop.f32.mrb[63].mxu0 }
 0x19d   : > { %8542 = vst [vmem:[#allocation63_spill] sm:$0xff] %v5277_v56  ;;  %2366 = vmax.xlane.f32.xlu1 %v2365_v16  ;;  %v756_v43 = vpop.xlane.xlu1 %755  ;;  %v5281_v30 = vpop.f32.mrb[32].mxu1  ;;  %v5295_v56 = vadd.f32 %v5119_v41, %v4998_v22  ;;  %v1571_v41 = vsel %vm699_vm1, %v5285_v26, -inf  ;;  %v803_v42 = vmax.f32 %v799_v36, %v5203_v28 }
 0x19e   : > { %8543 = vst [vmem:[#allocation64_spill] sm:$0xff] %v5281_v30  ;;  %v5289_v1 = vpop.f32.mrb[33].mxu1 }
 0x19f   : > { %8545 = vst [vmem:[#allocation66_spill] sm:$0xff] %v5289_v1  ;;  %2369 = vmax.xlane.f32.xlu0 %v2368_v54  ;;  %v5291_v51 = vpop.f32.mrb[34].mxu1  ;;  %8546 = vst [vmem:[#allocation67_spill] sm:$0xff] %v5295_v56  ;;  %v5307_v1 = vadd.f32 %v5104_v13, %v4993_v17  ;;  %v2383_v23 = vsel %vm699_vm1, %v5295_v56, -inf  ;;  %v802_v13 = vmax.f32 %v798_v44, %v5183_v40 }
 0x1a0   : > { %v759_v16 = vpop.xlane.xlu0 %758  ;;  %v5299_v30 = vpop.f32.mrb[35].mxu1  ;;  %v5338_v40 = vadd.f32 %v5108_v62, %v4993_v17  ;;  %v2386_v62 = vsel %vm699_vm1, %v5327_v57, -inf  ;;  %v5356_v56 = vadd.f32 %v5117_v19, %v4993_v17 }
 0x1a1   : > { %8547 = vst [vmem:[#allocation68_spill] sm:$0xff] %v5299_v30  ;;  %1557 = vmax.xlane.f32.xlu1 %v1556_v9  ;;  %v750_v54 = vpop.xlane.xlu1 %749  ;;  %v5315_v30 = vadd.f32 %v5126_v7, %v4998_v22  ;;  %v797_v9 = vmax.f32 %v5106_v21, %v5179_v45  ;;  %v1565_v7 = vsel %vm699_vm1, %v5307_v1, -inf  ;;  %v806_v44 = vmax.f32 %v802_v13, %v5235_v50 }
 0x1a3   : > { %1572 = vmax.xlane.f32.xlu0 %v1571_v41  ;;  %8548 = vst [vmem:[#allocation69_spill] sm:$0xff] %v5315_v30  ;;  %v800_v41 = vmax.f32 %v796_v5, %v5207_v24  ;;  %v2377_v28 = vsel %vm699_vm1, %v5315_v30, -inf  ;;  %v801_v36 = vmax.f32 %v797_v9, %v5227_v15  ;;  %v5349_v5 = vadd.f32 %v5141_v4, %v4998_v22  ;;  %v8592_v30 = vld [vmem:[#allocation12_spill] sm:$0xff] }
 0x1a4   : > { %v753_v12 = vpop.xlane.xlu0 %752  ;;  %v810_v9 = vmax.f32 %v806_v44, %v756_v43  ;;  %v5375_v43 = vadd.f32 %v5162_v61, %v4998_v22 }
 0x1a5   : > { %2384 = vmax.xlane.f32.xlu1 %v2383_v23  ;;  %v768_v33 = vpop.xlane.xlu1 %767  ;;  %v5323_v26 = vpop.f32.mrb[36].mxu1  ;;  %v807_v23 = vmax.f32 %v803_v42, %v5251_v55  ;;  %8550 = vst [vmem:[#allocation71_spill] sm:$0xff] %v5349_v5  ;;  %v1574_v55 = vsel %vm699_vm1, %v5338_v40, -inf  ;;  %v805_v50 = vmax.f32 %v801_v36, %v5275_v48  ;;  %v2380_v19 = vsel %vm699_vm1, %v5349_v5, -inf }
 0x1a6   : > { %v5331_v49 = vpop.f32.mrb[37].mxu1  ;;  %8551 = vst [vmem:[#allocation72_spill] sm:$0xff] %v5375_v43  ;;  %v814_v44 = vmax.f32 %v810_v9, %v768_v33 }
 0x1a7   : > { %1566 = vmax.xlane.f32.xlu0 %v1565_v7  ;;  %v5334_v21 = vpop.f32.mrb[38].mxu1  ;;  %v804_v7 = vmax.f32 %v800_v41, %v5259_v58  ;;  %v811_v13 = vmax.f32 %v807_v23, %v759_v16  ;;  %v5365_v58 = vadd.f32 %v5139_v27, %v4993_v17  ;;  %v1568_v27 = vsel %vm699_vm1, %v5356_v56, -inf }
 0x1a8   : > { %v771_v45 = vpop.xlane.xlu0 %770  ;;  %v5342_v0 = vpop.f32.mrb[39].mxu1  ;;  %v809_v36 = vmax.f32 %v805_v50, %v753_v12  ;;  %v2395_v12 = vsel %vm699_vm1, %v5375_v43, -inf }
 0x1a9   : > { %2378 = vmax.xlane.f32.xlu1 %v2377_v28  ;;  %v762_v24 = vpop.xlane.xlu1 %761  ;;  %v808_v28 = vmax.f32 %v804_v7, %v750_v54  ;;  %v815_v23 = vmax.f32 %v811_v13, %v771_v45  ;;  %v5383_v54 = vadd.f32 %v5148_v53, %v4993_v17  ;;  %v1583_v7 = vsel %vm699_vm1, %v5365_v58, -inf }
 0x1aa   : > { %v5397_v13 = vadd.f32 %v5173_v35, %v4998_v22 }
 0x1ab   : > { %2387 = vmax.xlane.f32.xlu0 %v2386_v62  ;;  %v812_v61 = vmax.f32 %v808_v28, %v762_v24 }
 0x1ac   : > { %v765_v15 = vpop.xlane.xlu0 %764  ;;  %8553 = vst [vmem:[#allocation74_spill] sm:$0xff] %v5397_v13 }
 0x1ad   : > { %v5361_v4 = vpop.f32.mrb[40].mxu1  ;;  %1575 = vmax.xlane.f32.xlu1 %v1574_v55  ;;  %v780_v42 = vpop.xlane.xlu1 %779  ;;  %v813_v33 = vmax.f32 %v809_v36, %v765_v15  ;;  %v5407_v15 = vadd.f32 %v5150_v52, %v4993_v17 }
 0x1ae   : > { %v5367_v41 = vpop.f32.mrb[41].mxu1  ;;  %v818_v45 = vmax.f32 %v814_v44, %v780_v42 }
 0x1af   : > { %v5371_v62 = vpop.f32.mrb[42].mxu1  ;;  %2381 = vmax.xlane.f32.xlu0 %v2380_v19  ;;  %v5389_v19 = vadd.f32 %v5171_v29, %v4998_v22  ;;  %v1577_v29 = vsel %vm699_vm1, %v5383_v54, -inf  ;;  %8554 = vst [vmem:[#allocation75_spill] sm:$0xff] %v5407_v15 }
 0x1b0   : > { %v783_v48 = vpop.xlane.xlu0 %782  ;;  %v5377_v16 = vpop.f32.mrb[43].mxu1 }
 0x1b1   : > { %1569 = vmax.xlane.f32.xlu1 %v1568_v27  ;;  %v774_v55 = vpop.xlane.xlu1 %773  ;;  %8552 = vst [vmem:[#allocation73_spill] sm:$0xff] %v5389_v19  ;;  %v819_v50 = vmax.f32 %v815_v23, %v783_v48  ;;  %v2389_v35 = vsel %vm699_vm1, %v5389_v19, -inf  ;;  %v8571_v19 = vld [vmem:[#allocation61_spill] sm:$0xff] }
 0x1b2   : > { %v816_v28 = vmax.f32 %v812_v61, %v774_v55  ;;  %v5415_v55 = vadd.f32 %v5187_v25, %v4998_v22  ;;  %v2398_v61 = vsel %vm699_vm1, %v5397_v13, -inf  ;;  %v5429_v25 = vadd.f32 %v5185_v14, %v4993_v17 }
 0x1b3   : > { %1584 = vmax.xlane.f32.xlu0 %v1583_v7  ;;  %v5553_v5 = vadd.f32 %v8571_v19, %v4998_v22  ;;  %v8576_v19 = vld [vmem:[#allocation3_spill] sm:$0xff] }
 0x1b4   : > { %v777_v57 = vpop.xlane.xlu0 %776  ;;  %8555 = vst [vmem:[#allocation76_spill] sm:$0xff] %v5415_v55  ;;  %8556 = vst [vmem:[#allocation77_spill] sm:$0xff] %v5429_v25 }
 0x1b5   : > { %v5393_v9 = vpop.f32.mrb[44].mxu1  ;;  %2396 = vmax.xlane.f32.xlu1 %v2395_v12  ;;  %v792_v53 = vpop.xlane.xlu1 %791  ;;  %v817_v36 = vmax.f32 %v813_v33, %v777_v57  ;;  %v5421_v12 = vadd.f32 %v5164_v10, %v4993_v17  ;;  %v1586_v57 = vsel %vm699_vm1, %v5407_v15, -inf }
 0x1b6   : > { %v5399_v24 = vpop.f32.mrb[45].mxu1  ;;  %v822_v44 = vmax.f32 %v818_v45, %v792_v53 }
 0x1b7   : > { %v5403_v27 = vpop.f32.mrb[46].mxu1  ;;  %1578 = vmax.xlane.f32.xlu0 %v1577_v29 }
 0x1b8   : > { %v795_v42 = vpop.xlane.xlu0 %794  ;;  %v5409_v48 = vpop.f32.mrb[47].mxu1 }
 0x1b9   : > { %v823_v23 = vmax.f32 %v819_v50, %v795_v42  ;;  %2390 = vmax.xlane.f32.xlu1 %v2389_v35  ;;  %v786_v7 = vpop.xlane.xlu1 %785  ;;  %v5439_v35 = vadd.f32 %v5209_v37, %v4998_v22  ;;  %v5453_v37 = vadd.f32 %v5219_v18, %v4998_v22  ;;  %v5471_v18 = vadd.f32 %v5197_v20, %v4993_v17 }
 0x1ba   : > { %v820_v52 = vmax.f32 %v816_v28, %v786_v7  ;;  %v2392_v28 = vsel %vm699_vm1, %v5415_v55, -inf  ;;  %v1595_v7 = vsel %vm699_vm1, %v5429_v25, -inf  ;;  %v5485_v20 = vadd.f32 %v5211_v2, %v4993_v17 }
 0x1bb   : > { %2399 = vmax.xlane.f32.xlu0 %v2398_v61  ;;  %v825_v33 = vmax.f32 %v822_v44, %v823_v23  ;;  %8557 = vst [vmem:[#allocation78_spill] sm:$0xff] %v5439_v35  ;;  %v1580_v44 = vsel %vm699_vm1, %v5421_v12, -inf  ;;  %v5447_v23 = vadd.f32 %v5195_v31, %v4993_v17  ;;  %8559 = vst [vmem:[#allocation80_spill] sm:$0xff] %v5453_v37 }
 0x1bc   : > { %v789_v29 = vpop.xlane.xlu0 %788  ;;  %v5461_v31 = vadd.f32 %v5221_v8, %v4998_v22  ;;  %8561 = vst [vmem:[#allocation82_spill] sm:$0xff] %v5471_v18  ;;  %8563 = vst [vmem:[#allocation84_spill] sm:$0xff] %v5485_v20  ;;  %v5505_v2 = vadd.f32 %v5245_v60, %v4993_v17 }
 0x1bd   : > { %v821_v45 = vmax.f32 %v817_v36, %v789_v29  ;;  %v5425_v50 = vpop.f32.mrb[48].mxu1  ;;  %1587 = vmax.xlane.f32.xlu1 %v1586_v57  ;;  %8558 = vst [vmem:[#allocation79_spill] sm:$0xff] %v5447_v23 }
 0x1be   : > { %v5431_v53 = vpop.f32.mrb[49].mxu1  ;;  %8560 = vst [vmem:[#allocation81_spill] sm:$0xff] %v5461_v31  ;;  %8565 = vst [vmem:[#allocation86_spill] sm:$0xff] %v5505_v2 }
 0x1bf   : > { %v824_v10 = vmax.f32 %v820_v52, %v821_v45  ;;  %v5435_v42 = vpop.f32.mrb[50].mxu1  ;;  %2393 = vmax.xlane.f32.xlu0 %v2392_v28  ;;  %v2407_v52 = vsel %vm699_vm1, %v5439_v35, -inf  ;;  %v1589_v45 = vsel %vm699_vm1, %v5447_v23, -inf }
 0x1c0   : > { %v5441_v36 = vpop.f32.mrb[51].mxu1 }
 0x1c1   : > { %v826_v14 = vmax.f32 %v824_v10, %v825_v33  ;;  %1581 = vmax.xlane.f32.xlu1 %v1580_v44 }
 0x1c3   : > { %v827_v61 = vrot.slane %v826_v14, 4  ;;  %1596 = vmax.xlane.f32.xlu0 %v1595_v7  ;;  %v5479_v7 = vadd.f32 %v5231_v11, %v4998_v22 }
 0x1c5   : > { %v828_v29 = vmax.f32 %v826_v14, %v827_v61  ;;  %v5457_v57 = vpop.f32.mrb[52].mxu1  ;;  %2408 = vmax.xlane.f32.xlu1 %v2407_v52  ;;  %v2401_v14 = vsel %vm699_vm1, %v5453_v37, -inf  ;;  %8562 = vst [vmem:[#allocation83_spill] sm:$0xff] %v5479_v7  ;;  %v2410_v61 = vsel %vm699_vm1, %v5461_v31, -inf }
 0x1c6   : > { %v5463_v33 = vpop.f32.mrb[53].mxu1 }
 0x1c7   : > { %v829_v28 = vrot.slane %v828_v29, 2  ;;  %v5467_v10 = vpop.f32.mrb[54].mxu1  ;;  %1590 = vmax.xlane.f32.xlu0 %v1589_v45  ;;  %v1598_v45 = vsel %vm699_vm1, %v5471_v18, -inf }
 0x1c8   : > { %v5473_v44 = vpop.f32.mrb[55].mxu1 }
 0x1c9   : > { %v830_v8 = vmax.f32 %v828_v29, %v829_v28  ;;  %2402 = vmax.xlane.f32.xlu1 %v2401_v14  ;;  %v5493_v29 = vadd.f32 %v5233_v47, %v4993_v17  ;;  %v2404_v28 = vsel %vm699_vm1, %v5479_v7, -inf  ;;  %v1592_v47 = vsel %vm699_vm1, %v5485_v20, -inf }
 0x1ca   : > { %v1610_v7 = vsel %vm699_vm1, %v5505_v2, -inf }
 0x1cb   : > { %v831_v52 = vrot.slane %v830_v8, 1  ;;  %2411 = vmax.xlane.f32.xlu0 %v2410_v61  ;;  %8564 = vst [vmem:[#allocation85_spill] sm:$0xff] %v5493_v29 }
 0x1cd   : > { %v5489_v35 = vpop.f32.mrb[56].mxu1  ;;  %1599 = vmax.xlane.f32.xlu1 %v1598_v45  ;;  %v5499_v14 = vmax.f32 %v830_v8, %v831_v52  ;;  %v5513_v45 = vadd.f32 %v5257_v63, %v4998_v22  ;;  %v1607_v8 = vsel %vm699_vm1, %v5493_v29, -inf }
 0x1ce   : > { %v5495_v11 = vpop.f32.mrb[57].mxu1 }
 0x1cf   : > { %v5501_v61 = vpop.f32.mrb[58].mxu1  ;;  %2405 = vmax.xlane.f32.xlu0 %v2404_v28  ;;  %8566 = vst [vmem:[#allocation87_spill] sm:$0xff] %v5513_v45  ;;  %v833_v52 = vsub.f32 %v4827_v34, %v5499_v14  ;;  %v834_v60 = vsub.f32 %v4832_v38, %v5499_v14  ;;  %v835_v28 = vsub.f32 %v4824_v32, %v5499_v14 }
 0x1d0   : > { %v5507_v31 = vpop.f32.mrb[59].mxu1  ;;  %v836_v63 = vsub.f32 %v4835_v39, %v5499_v14  ;;  %v5535_v34 = vadd.f32 %v5241_v6, %v4993_v17  ;;  %v837_v32 = vsub.f32 %v4851_v46, %v5499_v14  ;;  %v5545_v39 = vadd.f32 %v5253_v3, %v4993_v17  ;;  %v8573_v17 = vld [vmem:[#allocation2_spill] sm:$0xff] }
 0x1d1   : > { %1593 = vmax.xlane.f32.xlu1 %v1592_v47  ;;  %v5525_v47 = vadd.f32 %v5269_v59, %v4998_v22  ;;  %v2419_v59 = vsel %vm699_vm1, %v5513_v45, -inf  ;;  %v867_v13 = vmul.f32 1.442695, %v834_v60  ;;  %v869_v43 = vmul.f32 1.442695, %v835_v28 }
 0x1d2   : > { %8568 = vst [vmem:[#allocation89_spill] sm:$0xff] %v5535_v34  ;;  %8569 = vst [vmem:[#allocation90_spill] sm:$0xff] %v5545_v39  ;;  %v871_v55 = vmul.f32 1.442695, %v836_v63  ;;  %v839_v3 = vsub.f32 %v8573_v17, %v5499_v14  ;;  %v1601_v60 = vsel %vm699_vm1, %v5535_v34, -inf  ;;  %v1604_v28 = vsel %vm699_vm1, %v5545_v39, -inf }
 0x1d3   : > { %1608 = vmax.xlane.f32.xlu0 %v1607_v8  ;;  %8567 = vst [vmem:[#allocation88_spill] sm:$0xff] %v5525_v47  ;;  %v865_v8 = vmul.f32 1.442695, %v833_v52  ;;  %v2422_v46 = vsel %vm699_vm1, %v5525_v47, -inf  ;;  %v873_v52 = vmul.f32 1.442695, %v837_v32 }
 0x1d4   : > { %v8574_v63 = vld [vmem:[#allocation63_spill] sm:$0xff]  ;;  %v8577_v32 = vld [vmem:[#allocation44_spill] sm:$0xff] }
 0x1d5   : > { %v5531_v37 = vpop.f32.mrb[60].mxu1  ;;  %1611 = vmax.xlane.f32.xlu1 %v1610_v7  ;;  %v8570_v7 = vld [vmem:[#allocation4_spill] sm:$0xff]  ;;  %4203 = vpow2.f32 %v865_v8  ;;  %v840_v8 = vsub.f32 %v8576_v19, %v5499_v14  ;;  %v5633_v2 = vadd.f32 %v5342_v0, %v8577_v32 }
 0x1d6   : > { %v5539_v38 = vpop.f32.mrb[61].mxu1  ;;  %v838_v6 = vsub.f32 %v8570_v7, %v5499_v14  ;;  %8572 = vst [vmem:[#allocation4_spill] sm:$0xff] %v5553_v5  ;;  %4205 = vpow2.f32 %v867_v13  ;;  %v2413_v13 = vsel %vm699_vm1, %v5553_v5, -inf }
 0x1d7   : > { %2420 = vmax.xlane.f32.xlu0 %v2419_v59  ;;  %4207 = vpow2.f32 %v869_v43  ;;  %v5563_v59 = vadd.f32 %v8574_v63, %v4998_v22  ;;  %v5571_v43 = vadd.f32 %v5291_v51, %v8577_v32  ;;  %v8580_v22 = vld [vmem:[#allocation64_spill] sm:$0xff] }
 0x1d8   : > { %4209 = vpow2.f32 %v871_v55  ;;  %v875_v7 = vmul.f32 1.442695, %v838_v6  ;;  %v5577_v63 = vadd.f32 %v8580_v22, %v8577_v32  ;;  %v8582_v55 = vld [vmem:[#allocation8_spill] sm:$0xff] }
 0x1d9   : > { %2423 = vmax.xlane.f32.xlu1 %v2422_v46  ;;  %8575 = vst [vmem:[#allocation61_spill] sm:$0xff] %v5563_v59  ;;  %8578 = vst [vmem:[#allocation2_spill] sm:$0xff] %v5571_v43  ;;  %v8579_v46 = vld [vmem:[#allocation6_spill] sm:$0xff]  ;;  %4211 = vpow2.f32 %v873_v52  ;;  %v842_v6 = vsub.f32 %v8582_v55, %v5499_v14  ;;  %v2416_v19 = vsel %vm699_vm1, %v5563_v59, -inf  ;;  %v8583_v51 = vld [vmem:[#allocation68_spill] sm:$0xff] }
 0x1da   : > { %v841_v17 = vsub.f32 %v8579_v46, %v5499_v14  ;;  %8581 = vst [vmem:[#allocation63_spill] sm:$0xff] %v5577_v63  ;;  %4213 = vpow2.f32 %v875_v7  ;;  %v5585_v47 = vadd.f32 %v8583_v51, %v8577_v32  ;;  %v5587_v46 = vpop.f32.mrb[62].mxu1  ;;  %v8586_v55 = vld [vmem:[#allocation66_spill] sm:$0xff]  ;;  %v3147_v51 = vsel %vm699_vm1, %v5577_v63, -inf  ;;  %v8588_v59 = vld [vmem:[#allocation7_spill] sm:$0xff]  ;;  %8593 = vst [vmem:[#allocation8_spill] sm:$0xff] %v5633_v2 }
 0x1db   : > { %1602 = vmax.xlane.f32.xlu0 %v1601_v60  ;;  %v877_v60 = vmul.f32 1.442695, %v839_v3  ;;  %v8585_v3 = vld [vmem:[#allocation5_spill] sm:$0xff]  ;;  %v5591_v22 = vpop.f32.mrb[63].mxu1  ;;  %v5597_v45 = vadd.f32 %v8586_v55, %v8577_v32 }
 0x1dc   : > { %8584 = vst [vmem:[#allocation3_spill] sm:$0xff] %v5585_v47  ;;  %v843_v52 = vsub.f32 %v8585_v3, %v5499_v14  ;;  %v844_v3 = vsub.f32 %v8588_v59, %v5499_v14  ;;  %v8590_v59 = vld [vmem:[#allocation10_spill] sm:$0xff] }
 0x1dd   : > { %1605 = vmax.xlane.f32.xlu1 %v1604_v28  ;;  %v879_v28 = vmul.f32 1.442695, %v840_v8  ;;  %4215 = vpow2.f32 %v877_v60  ;;  %v3150_v8 = vsel %vm699_vm1, %v5571_v43, -inf  ;;  %8587 = vst [vmem:[#allocation44_spill] sm:$0xff] %v5597_v45  ;;  %v5608_v43 = vadd.f32 %v5334_v21, %v8577_v32 }
 0x1de   : > { %v5621_v21 = vadd.f32 %v5323_v26, %v8577_v32 }
 0x1df   : > { %2414 = vmax.xlane.f32.xlu0 %v2413_v13  ;;  %v881_v13 = vmul.f32 1.442695, %v841_v17  ;;  %v4204_v7 = vpop.eup %4203  ;;  %4217 = vpow2.f32 %v879_v28  ;;  %v883_v17 = vmul.f32 1.442695, %v842_v6  ;;  %8589 = vst [vmem:[#allocation6_spill] sm:$0xff] %v5608_v43  ;;  %v845_v28 = vsub.f32 %v8590_v59, %v5499_v14 }
 0x1e0   : > { %v5604_v60 = vsel %vm699_vm1, %v4204_v7, 0.0  ;;  %v885_v6 = vmul.f32 1.442695, %v843_v52  ;;  %8591 = vst [vmem:[#allocation64_spill] sm:$0xff] %v5621_v21  ;;  %v846_v59 = vsub.f32 %v8592_v30, %v5499_v14  ;;  %v887_v52 = vmul.f32 1.442695, %v844_v3 }
 0x1e1   : > { %2417 = vmax.xlane.f32.xlu1 %v2416_v19  ;;  %v4206_v19 = vpop.eup %4205  ;;  %4219 = vpow2.f32 %v881_v13  ;;  %v3162_v26 = vsel %vm699_vm1, %v5608_v43, -inf  ;;  %v889_v30 = vmul.f32 1.442695, %v845_v28  ;;  %v5655_v28 = vadd.f32 %v5371_v62, %v8577_v32 }
 0x1e2   : > { %v4208_v5 = vpop.eup %4207  ;;  %v5613_v55 = vsel %vm699_vm1, %v4206_v19, 0.0  ;;  %4221 = vpow2.f32 %v883_v17  ;;  %v5645_v17 = vadd.f32 %v5331_v49, %v8577_v32  ;;  %v3156_v49 = vsel %vm699_vm1, %v5633_v2, -inf }
 0x1e3   : > { %3151 = vmax.xlane.f32.xlu0 %v3150_v8  ;;  %v3144_v8 = vsel %vm699_vm1, %v5585_v47, -inf  ;;  %v4210_v63 = vpop.eup %4209  ;;  %v1025_v7 = vadd.f32 %v5613_v55, %v5604_v60  ;;  %v5626_v19 = vsel %vm699_vm1, %v4208_v5, 0.0  ;;  %4223 = vpow2.f32 %v885_v6  ;;  %8596 = vst [vmem:[#allocation5_spill] sm:$0xff] %v5655_v28 }
 0x1e4   : > { %v4212_v47 = vpop.eup %4211  ;;  %8595 = vst [vmem:[#allocation68_spill] sm:$0xff] %v5645_v17  ;;  %4225 = vpow2.f32 %v887_v52  ;;  %v8597_v52 = vld [vmem:[#allocation11_spill] sm:$0xff]  ;;  %v5672_v43 = vadd.f32 %v5361_v4, %v8577_v32  ;;  %v8600_v4 = vld [vmem:[#allocation14_spill] sm:$0xff] }
 0x1e5   : > { %3148 = vmax.xlane.f32.xlu1 %v3147_v51  ;;  %v3141_v51 = vsel %vm699_vm1, %v5597_v45, -inf  ;;  %v1026_v13 = vadd.f32 %v1025_v7, %v5626_v19  ;;  %v4214_v5 = vpop.eup %4213  ;;  %v8594_v45 = vld [vmem:[#allocation9_spill] sm:$0xff]  ;;  %v5648_v0 = vsel %vm699_vm1, %v4212_v47, 0.0  ;;  %4227 = vpow2.f32 %v889_v30 }
 0x1e6   : > { %v847_v29 = vsub.f32 %v8594_v45, %v5499_v14  ;;  %v5660_v6 = vsel %vm699_vm1, %v4214_v5, 0.0  ;;  %8598 = vst [vmem:[#allocation66_spill] sm:$0xff] %v5672_v43  ;;  %v3153_v5 = vsel %vm699_vm1, %v5645_v17, -inf }
 0x1e7   : > { %3145 = vmax.xlane.f32.xlu0 %v3144_v8  ;;  %v5638_v8 = vsel %vm699_vm1, %v4210_v63, 0.0  ;;  %v4216_v7 = vpop.eup %4215  ;;  %v891_v63 = vmul.f32 1.442695, %v846_v59  ;;  %v848_v59 = vsub.f32 %v8597_v52, %v5499_v14 }
 0x1e8   : > { %v1027_v3 = vadd.f32 %v1026_v13, %v5638_v8  ;;  %v893_v13 = vmul.f32 1.442695, %v847_v29  ;;  %v5668_v62 = vsel %vm699_vm1, %v4216_v7, 0.0  ;;  %v5679_v29 = vadd.f32 %v5377_v16, %v8577_v32 }
 0x1e9   : > { %3142 = vmax.xlane.f32.xlu1 %v3141_v51  ;;  %v3159_v51 = vsel %vm699_vm1, %v5621_v21, -inf  ;;  %v4218_v47 = vpop.eup %4217  ;;  %4229 = vpow2.f32 %v891_v63  ;;  %v3174_v7 = vsel %vm699_vm1, %v5655_v28, -inf  ;;  %v849_v63 = vsub.f32 %v8600_v4, %v5499_v14 }
 0x1ea   : > { %v1028_v45 = vadd.f32 %v1027_v3, %v5648_v0  ;;  %8599 = vst [vmem:[#allocation7_spill] sm:$0xff] %v5679_v29  ;;  %4231 = vpow2.f32 %v893_v13  ;;  %v895_v52 = vmul.f32 1.442695, %v848_v59  ;;  %v5696_v28 = vadd.f32 %v5367_v41, %v8577_v32 }
 0x1eb   : > { %3163 = vmax.xlane.f32.xlu0 %v3162_v26  ;;  %v3171_v4 = vsel %vm699_vm1, %v5672_v43, -inf  ;;  %v5705_v13 = vadd.f32 %v5403_v27, %v8577_v32  ;;  %v897_v17 = vmul.f32 1.442695, %v849_v63 }
 0x1ec   : > { %v1029_v3 = vadd.f32 %v1028_v45, %v5660_v6  ;;  %v5684_v45 = vsel %vm699_vm1, %v4218_v47, 0.0  ;;  %8601 = vst [vmem:[#allocation10_spill] sm:$0xff] %v5696_v28  ;;  %4233 = vpow2.f32 %v895_v52  ;;  %v5731_v52 = vadd.f32 %v5409_v48, %v8577_v32 }
 0x1ed   : > { %3160 = vmax.xlane.f32.xlu1 %v3159_v51  ;;  %v4220_v51 = vpop.eup %4219  ;;  %8602 = vst [vmem:[#allocation12_spill] sm:$0xff] %v5705_v13  ;;  %4235 = vpow2.f32 %v897_v17  ;;  %v5757_v17 = vadd.f32 %v5435_v42, %v8577_v32 }
 0x1ee   : > { %v5664_v26 = vpop.xlane.xlu0 %1524  ;;  %v1030_v30 = vadd.f32 %v1029_v3, %v5668_v62  ;;  %v5692_v16 = vsel %vm699_vm1, %v4220_v51, 0.0  ;;  %v3168_v51 = vsel %vm699_vm1, %v5679_v29, -inf  ;;  %v5722_v29 = vadd.f32 %v5393_v9, %v8577_v32  ;;  %8605 = vst [vmem:[#allocation11_spill] sm:$0xff] %v5731_v52 }
 0x1ef   : > { %3157 = vmax.xlane.f32.xlu0 %v3156_v49  ;;  %v4222_v49 = vpop.eup %4221 }
 0x1f0   : > { %v1031_v3 = vadd.f32 %v1030_v30, %v5684_v45  ;;  %v5710_v30 = vsel %vm699_vm1, %v4222_v49, 0.0  ;;  %8604 = vst [vmem:[#allocation9_spill] sm:$0xff] %v5722_v29 }
 0x1f1   : > { %3154 = vmax.xlane.f32.xlu1 %v3153_v5  ;;  %v4224_v5 = vpop.eup %4223 }
 0x1f2   : > { %v5688_v21 = vpop.xlane.xlu1 %2336  ;;  %v1032_v59 = vadd.f32 %v1031_v3, %v5692_v16  ;;  %v4226_v41 = vpop.eup %4225  ;;  %v5718_v27 = vsel %vm699_vm1, %v4224_v5, 0.0  ;;  %v3186_v5 = vsel %vm699_vm1, %v5705_v13, -inf  ;;  %v5748_v13 = vadd.f32 %v5399_v24, %v8577_v32  ;;  %v8609_v24 = vld [vmem:[#allocation15_spill] sm:$0xff] }
 0x1f3   : > { %3175 = vmax.xlane.f32.xlu0 %v3174_v7  ;;  %v8603_v7 = vld [vmem:[#allocation16_spill] sm:$0xff] }
 0x1f4   : > { %v5698_v47 = vpop.xlane.xlu0 %2339  ;;  %v850_v2 = vsub.f32 %v8603_v7, %v5499_v14  ;;  %v1033_v3 = vadd.f32 %v1032_v59, %v5710_v30  ;;  %v3165_v7 = vsel %vm699_vm1, %v5696_v28, -inf  ;;  %v5736_v59 = vsel %vm699_vm1, %v4226_v41, 0.0  ;;  %8607 = vst [vmem:[#allocation14_spill] sm:$0xff] %v5748_v13  ;;  %8608 = vst [vmem:[#allocation16_spill] sm:$0xff] %v5757_v17 }
 0x1f5   : > { %3172 = vmax.xlane.f32.xlu1 %v3171_v4  ;;  %v4228_v4 = vpop.eup %4227 }
 0x1f6   : > { %v5714_v43 = vpop.xlane.xlu1 %1518  ;;  %v1034_v63 = vadd.f32 %v1033_v3, %v5718_v27  ;;  %v4230_v9 = vpop.eup %4229  ;;  %v899_v34 = vmul.f32 1.442695, %v850_v2  ;;  %v5744_v48 = vsel %vm699_vm1, %v4228_v4, 0.0  ;;  %v3180_v4 = vsel %vm699_vm1, %v5731_v52, -inf }
 0x1f7   : > { %3169 = vmax.xlane.f32.xlu0 %v3168_v51  ;;  %v8606_v51 = vld [vmem:[#allocation13_spill] sm:$0xff] }
 0x1f8   : > { %v5724_v49 = vpop.xlane.xlu0 %1521  ;;  %v851_v39 = vsub.f32 %v8606_v51, %v5499_v14  ;;  %v1035_v3 = vadd.f32 %v1034_v63, %v5736_v59  ;;  %v3183_v51 = vsel %vm699_vm1, %v5722_v29, -inf  ;;  %v5762_v63 = vsel %vm699_vm1, %v4230_v9, 0.0 }
 0x1f9   : > { %3166 = vmax.xlane.f32.xlu1 %v3165_v7  ;;  %v4232_v7 = vpop.eup %4231  ;;  %4237 = vpow2.f32 %v899_v34  ;;  %v5774_v29 = vadd.f32 %v5425_v50, %v8577_v32 }
 0x1fa   : > { %v5740_v28 = vpop.xlane.xlu1 %2330  ;;  %v1036_v2 = vadd.f32 %v1035_v3, %v5744_v48  ;;  %v901_v18 = vmul.f32 1.442695, %v851_v39  ;;  %v5770_v42 = vsel %vm699_vm1, %v4232_v7, 0.0  ;;  %v5783_v39 = vadd.f32 %v5441_v36, %v8577_v32 }
 0x1fb   : > { %3187 = vmax.xlane.f32.xlu0 %v3186_v5  ;;  %v852_v5 = vsub.f32 %v8609_v24, %v5499_v14  ;;  %8610 = vst [vmem:[#allocation13_spill] sm:$0xff] %v5774_v29  ;;  %v3177_v24 = vsel %vm699_vm1, %v5748_v13, -inf  ;;  %v3198_v13 = vsel %vm699_vm1, %v5757_v17, -inf  ;;  %v5815_v17 = vadd.f32 %v5467_v10, %v8577_v32 }
 0x1fc   : > { %v5750_v41 = vpop.xlane.xlu0 %2333  ;;  %v1037_v3 = vadd.f32 %v1036_v2, %v5762_v63  ;;  %8611 = vst [vmem:[#allocation15_spill] sm:$0xff] %v5783_v39  ;;  %v8612_v2 = vld [vmem:[#allocation18_spill] sm:$0xff]  ;;  %4239 = vpow2.f32 %v901_v18  ;;  %v3195_v18 = vsel %vm699_vm1, %v5774_v29, -inf  ;;  %v5826_v29 = vadd.f32 %v5457_v57, %v8577_v32 }
 0x1fd   : > { %3184 = vmax.xlane.f32.xlu1 %v3183_v51  ;;  %v4234_v51 = vpop.eup %4233  ;;  %v903_v50 = vmul.f32 1.442695, %v852_v5 }
 0x1fe   : > { %v5766_v25 = vpop.xlane.xlu1 %1527  ;;  %v1038_v34 = vadd.f32 %v1037_v3, %v5770_v42  ;;  %v5796_v36 = vsel %vm699_vm1, %v4234_v51, 0.0  ;;  %v4236_v20 = vpop.eup %4235  ;;  %v8614_v51 = vld [vmem:[#allocation20_spill] sm:$0xff]  ;;  %8616 = vst [vmem:[#allocation91_spill] sm:$0xff] %v5826_v29 }
 0x1ff   : > { %3181 = vmax.xlane.f32.xlu0 %v3180_v4  ;;  %v853_v4 = vsub.f32 %v8612_v2, %v5499_v14  ;;  %v854_v3 = vsub.f32 %v8614_v51, %v5499_v14  ;;  %4241 = vpow2.f32 %v903_v50  ;;  %8615 = vst [vmem:[#allocation20_spill] sm:$0xff] %v5815_v17  ;;  %v5835_v51 = vadd.f32 %v5473_v44, %v8577_v32 }
 0x200   : > { %v5776_v9 = vpop.xlane.xlu0 %1536  ;;  %v1039_v5 = vadd.f32 %v1038_v34, %v5796_v36 }
 0x201   : > { %3178 = vmax.xlane.f32.xlu1 %v3177_v24  ;;  %v5800_v24 = vadd.f32 %v5431_v53, %v8577_v32  ;;  %v905_v53 = vmul.f32 1.442695, %v853_v4  ;;  %8617 = vst [vmem:[#allocation92_spill] sm:$0xff] %v5835_v51  ;;  %v907_v57 = vmul.f32 1.442695, %v854_v3  ;;  %v3207_v3 = vsel %vm699_vm1, %v5826_v29, -inf }
 0x202   : > { %v5789_v52 = vpop.xlane.xlu1 %2348 }
 0x203   : > { %3199 = vmax.xlane.f32.xlu0 %v3198_v13  ;;  %8613 = vst [vmem:[#allocation18_spill] sm:$0xff] %v5800_v24  ;;  %v3192_v13 = vsel %vm699_vm1, %v5783_v39, -inf  ;;  %v4238_v7 = vpop.eup %4237  ;;  %v3189_v10 = vsel %vm699_vm1, %v5800_v24, -inf  ;;  %4243 = vpow2.f32 %v905_v53  ;;  %v3210_v24 = vsel %vm699_vm1, %v5815_v17, -inf }
 0x204   : > { %v5802_v2 = vpop.xlane.xlu0 %1530  ;;  %v5848_v44 = vsel %vm699_vm1, %v4238_v7, 0.0  ;;  %4245 = vpow2.f32 %v907_v57 }
 0x205   : > { %3196 = vmax.xlane.f32.xlu1 %v3195_v18  ;;  %v5822_v18 = vsel %vm699_vm1, %v4236_v20, 0.0 }
 0x206   : > { %v5817_v23 = vpop.xlane.xlu1 %2342  ;;  %v1040_v4 = vadd.f32 %v1039_v5, %v5822_v18  ;;  %v4240_v15 = vpop.eup %4239 }
 0x207   : > { %3193 = vmax.xlane.f32.xlu0 %v3192_v13  ;;  %v8618_v13 = vld [vmem:[#allocation17_spill] sm:$0xff] }
 0x208   : > { %v5828_v50 = vpop.xlane.xlu0 %2351  ;;  %v855_v34 = vsub.f32 %v8618_v13, %v5499_v14  ;;  %v1041_v53 = vadd.f32 %v1040_v4, %v5848_v44  ;;  %v5868_v4 = vsel %vm699_vm1, %v4240_v15, 0.0 }
 0x209   : > { %v2428_v20 = vmax.f32 %v5698_v47, %v5828_v50  ;;  %3190 = vmax.xlane.f32.xlu1 %v3189_v10  ;;  %v5852_v47 = vadd.f32 %v5463_v33, %v8577_v32  ;;  %v5864_v33 = vadd.f32 %v5501_v61, %v8577_v32  ;;  %v8623_v61 = vld [vmem:[#allocation22_spill] sm:$0xff] }
 0x20a   : > { %v5841_v39 = vpop.xlane.xlu1 %1539  ;;  %v1042_v57 = vadd.f32 %v1041_v53, %v5868_v4  ;;  %v8626_v53 = vmax.f32 %v5688_v21, %v5789_v52  ;;  %v8628_v21 = vmax.f32 %v5714_v43, %v5802_v2 }
 0x20b   : > { %v1616_v5 = vmax.f32 %v5766_v25, %v5841_v39  ;;  %3211 = vmax.xlane.f32.xlu0 %v3210_v24  ;;  %8619 = vst [vmem:[#allocation17_spill] sm:$0xff] %v5852_v47  ;;  %v3204_v25 = vsel %vm699_vm1, %v5835_v51, -inf  ;;  %v8620_v39 = vld [vmem:[#allocation19_spill] sm:$0xff]  ;;  %v909_v24 = vmul.f32 1.442695, %v855_v34  ;;  %v3201_v34 = vsel %vm699_vm1, %v5852_v47, -inf }
 0x20c   : > { %v2346_v50 = vpop.xlane.xlu0 %2345  ;;  %v856_v7 = vsub.f32 %v8620_v39, %v5499_v14  ;;  %8621 = vst [vmem:[#allocation19_spill] sm:$0xff] %v5864_v33  ;;  %v857_v39 = vsub.f32 %v8623_v61, %v5499_v14  ;;  %v3222_v29 = vsel %vm699_vm1, %v5864_v33, -inf }
 0x20d   : > { %v2426_v10 = vmax.f32 %v5750_v41, %v2346_v50  ;;  %3208 = vmax.xlane.f32.xlu1 %v3207_v3  ;;  %v4242_v41 = vpop.eup %4241  ;;  %v5872_v50 = vadd.f32 %v5489_v35, %v8577_v32  ;;  %4247 = vpow2.f32 %v909_v24  ;;  %v5886_v35 = vadd.f32 %v5507_v31, %v8577_v32 }
 0x20e   : > { %v1534_v13 = vpop.xlane.xlu1 %1533  ;;  %v911_v15 = vmul.f32 1.442695, %v856_v7  ;;  %v5900_v7 = vadd.f32 %v5495_v11, %v8577_v32 }
 0x20f   : > { %v1614_v17 = vmax.f32 %v5724_v49, %v1534_v13  ;;  %3205 = vmax.xlane.f32.xlu0 %v3204_v25  ;;  %8622 = vst [vmem:[#allocation93_spill] sm:$0xff] %v5872_v50  ;;  %v8624_v49 = vmax.f32 %v5664_v26, %v5776_v9  ;;  %8625 = vst [vmem:[#allocation22_spill] sm:$0xff] %v5886_v35  ;;  %v5896_v26 = vsel %vm699_vm1, %v4242_v41, 0.0  ;;  %v4244_v9 = vpop.eup %4243  ;;  %v3219_v24 = vsel %vm699_vm1, %v5872_v50, -inf }
 0x210   : > { %v1549_v3 = vpop.xlane.xlu0 %1548  ;;  %8627 = vst [vmem:[#allocation94_spill] sm:$0xff] %v5900_v7  ;;  %4249 = vpow2.f32 %v911_v15  ;;  %v3216_v11 = vsel %vm699_vm1, %v5886_v35, -inf  ;;  %v5920_v43 = vsel %vm699_vm1, %v4244_v9, 0.0  ;;  %v4246_v2 = vpop.eup %4245  ;;  %v8703_v35 = vld [vmem:[#allocation67_spill] sm:$0xff] }
 0x211   : > { %v5882_v25 = vmax.f32 %v8624_v49, %v1549_v3  ;;  %3202 = vmax.xlane.f32.xlu1 %v3201_v34  ;;  %v1043_v3 = vadd.f32 %v1042_v57, %v5896_v26  ;;  %v913_v34 = vmul.f32 1.442695, %v857_v39  ;;  %v5933_v9 = vsel %vm699_vm1, %v4246_v2, 0.0 }
 0x212   : > { %v2361_v13 = vpop.xlane.xlu1 %2360 }
 0x213   : > { %v5893_v61 = vmax.f32 %v8626_v53, %v2361_v13  ;;  %3223 = vmax.xlane.f32.xlu0 %v3222_v29  ;;  %v8629_v29 = vld [vmem:[#allocation24_spill] sm:$0xff]  ;;  %v8630_v13 = vmax.f32 %v5740_v28, %v5817_v23  ;;  %v1044_v39 = vadd.f32 %v1043_v3, %v5920_v43  ;;  %4251 = vpow2.f32 %v913_v34 }
 0x214   : > { %v1543_v31 = vpop.xlane.xlu0 %1542  ;;  %v858_v41 = vsub.f32 %v8629_v29, %v5499_v14 }
 0x215   : > { %v5908_v52 = vmax.f32 %v8628_v21, %v1543_v31  ;;  %3220 = vmax.xlane.f32.xlu1 %v3219_v24  ;;  %v3213_v31 = vsel %vm699_vm1, %v5900_v7, -inf  ;;  %v8631_v24 = vld [vmem:[#allocation21_spill] sm:$0xff]  ;;  %v1045_v3 = vadd.f32 %v1044_v39, %v5933_v9  ;;  %v8633_v39 = vld [vmem:[#allocation26_spill] sm:$0xff] }
 0x216   : > { %v2355_v49 = vpop.xlane.xlu1 %2354  ;;  %v859_v21 = vsub.f32 %v8631_v24, %v5499_v14  ;;  %v915_v23 = vmul.f32 1.442695, %v858_v41  ;;  %v861_v24 = vsub.f32 %v8633_v39, %v5499_v14  ;;  %v8635_v39 = vld [vmem:[#allocation25_spill] sm:$0xff] }
 0x217   : > { %v5917_v53 = vmax.f32 %v8630_v13, %v2355_v49  ;;  %3217 = vmax.xlane.f32.xlu0 %v3216_v11  ;;  %v4248_v49 = vpop.eup %4247  ;;  %v8632_v13 = vld [vmem:[#allocation23_spill] sm:$0xff] }
 0x218   : > { %v2364_v57 = vpop.xlane.xlu0 %2363  ;;  %v860_v34 = vsub.f32 %v8632_v13, %v5499_v14  ;;  %4253 = vpow2.f32 %v915_v23  ;;  %v917_v41 = vmul.f32 1.442695, %v859_v21  ;;  %v921_v13 = vmul.f32 1.442695, %v861_v24 }
 0x219   : > { %v5925_v15 = vmax.f32 %v2428_v20, %v2364_v57  ;;  %3214 = vmax.xlane.f32.xlu1 %v3213_v31  ;;  %v863_v24 = vsub.f32 %v8635_v39, %v5499_v14 }
 0x21a   : > { %v1552_v28 = vpop.xlane.xlu1 %1551  ;;  %v4250_v2 = vpop.eup %4249  ;;  %4255 = vpow2.f32 %v917_v41 }
 0x21b   : > { %v5929_v29 = vmax.f32 %v1616_v5, %v1552_v28  ;;  %933 = vadd.xlane.f32.xlu0 %v5613_v55  ;;  %v5945_v55 = vsel %vm699_vm1, %v4248_v49, 0.0  ;;  %v5961_v23 = vsel %vm699_vm1, %v4250_v2, 0.0 }
 0x21c   : > { %v2358_v11 = vpop.xlane.xlu0 %2357 }
 0x21d   : > { %v5936_v20 = vmax.f32 %v2426_v10, %v2358_v11  ;;  %930 = vadd.xlane.f32.xlu1 %v5604_v60  ;;  %v1046_v10 = vadd.f32 %v1045_v3, %v5945_v55  ;;  %v4252_v28 = vpop.eup %4251  ;;  %v8634_v11 = vld [vmem:[#allocation28_spill] sm:$0xff] }
 0x21e   : > { %v1546_v5 = vpop.xlane.xlu1 %1545  ;;  %v862_v3 = vsub.f32 %v8634_v11, %v5499_v14  ;;  %v5975_v41 = vsel %vm699_vm1, %v4252_v28, 0.0 }
 0x21f   : > { %v5941_v57 = vmax.f32 %v1614_v17, %v1546_v5  ;;  %939 = vadd.xlane.f32.xlu0 %v5638_v8  ;;  %v919_v17 = vmul.f32 1.442695, %v860_v34 }
 0x220   : > { %v5947_v31 = vpop.xlane.xlu0 %1554 }
 0x221   : > { %936 = vadd.xlane.f32.xlu1 %v5626_v19  ;;  %v1047_v19 = vadd.f32 %v1046_v10, %v5961_v23  ;;  %4257 = vpow2.f32 %v919_v17  ;;  %v923_v17 = vmul.f32 1.442695, %v862_v3  ;;  %v925_v3 = vmul.f32 1.442695, %v863_v24 }
 0x222   : > { %v5955_v21 = vpop.xlane.xlu1 %1560  ;;  %v4254_v5 = vpop.eup %4253  ;;  %4259 = vpow2.f32 %v921_v13 }
 0x223   : > { %945 = vadd.xlane.f32.xlu0 %v5660_v6  ;;  %v1004_v28 = vsel %vm699_vm1, %v4254_v5, 0.0  ;;  %4261 = vpow2.f32 %v923_v17 }
 0x224   : > { %v5963_v49 = vpop.xlane.xlu0 %1563  ;;  %4263 = vpow2.f32 %v925_v3 }
 0x225   : > { %942 = vadd.xlane.f32.xlu1 %v5648_v0  ;;  %v1048_v0 = vadd.f32 %v1047_v19, %v5975_v41  ;;  %v4256_v19 = vpop.eup %4255 }
 0x226   : > { %v5969_v34 = vpop.xlane.xlu1 %2372 }
 0x227   : > { %951 = vadd.xlane.f32.xlu0 %v5684_v45  ;;  %v1049_v10 = vadd.f32 %v1048_v0, %v1004_v28  ;;  %v1007_v45 = vsel %vm699_vm1, %v4256_v19, 0.0 }
 0x228   : > { %v5977_v2 = vpop.xlane.xlu0 %2375 }
 0x229   : > { %948 = vadd.xlane.f32.xlu1 %v5668_v62  ;;  %v8636_v62 = vld [vmem:[#allocation27_spill] sm:$0xff]  ;;  %v1050_v5 = vadd.f32 %v1049_v10, %v1007_v45 }
 0x22a   : > { %v5985_v11 = vpop.xlane.xlu1 %2366  ;;  %v864_v39 = vsub.f32 %v8636_v62, %v5499_v14 }
 0x22b   : > { %957 = vadd.xlane.f32.xlu0 %v5710_v30  ;;  %v4258_v30 = vpop.eup %4257 }
 0x22c   : > { %v5991_v60 = vpop.xlane.xlu0 %2369  ;;  %v927_v0 = vmul.f32 1.442695, %v864_v39  ;;  %v1010_v14 = vsel %vm699_vm1, %v4258_v30, 0.0  ;;  %v4260_v24 = vpop.eup %4259 }
 0x22d   : > { %954 = vadd.xlane.f32.xlu1 %v5692_v16  ;;  %v4262_v10 = vpop.eup %4261 }
 0x22e   : > { %v5996_v13 = vpop.xlane.xlu1 %1557  ;;  %4265 = vpow2.f32 %v927_v0  ;;  %v1016_v3 = vsel %vm699_vm1, %v4262_v10, 0.0  ;;  %v4264_v30 = vpop.eup %4263 }
 0x22f   : > { %963 = vadd.xlane.f32.xlu0 %v5736_v59  ;;  %v1051_v59 = vadd.f32 %v1050_v5, %v1010_v14  ;;  %v1019_v0 = vsel %vm699_vm1, %v4264_v30, 0.0 }
 0x230   : > { %v6000_v6 = vpop.xlane.xlu0 %1572 }
 0x231   : > { %960 = vadd.xlane.f32.xlu1 %v5718_v27  ;;  %v1013_v27 = vsel %vm699_vm1, %v4260_v24, 0.0 }
 0x232   : > { %v6003_v16 = vpop.xlane.xlu1 %2384  ;;  %v1052_v39 = vadd.f32 %v1051_v59, %v1013_v27 }
 0x233   : > { %969 = vadd.xlane.f32.xlu0 %v5762_v63 }
 0x234   : > { %v6007_v17 = vpop.xlane.xlu0 %1566  ;;  %v1053_v5 = vadd.f32 %v1052_v39, %v1016_v3 }
 0x235   : > { %966 = vadd.xlane.f32.xlu1 %v5744_v48 }
 0x236   : > { %v6010_v19 = vpop.xlane.xlu1 %2378 }
 0x237   : > { %975 = vadd.xlane.f32.xlu0 %v5796_v36 }
 0x238   : > { %v6014_v62 = vpop.xlane.xlu0 %2387  ;;  %v4266_v24 = vpop.eup %4265 }
 0x239   : > { %972 = vadd.xlane.f32.xlu1 %v5770_v42  ;;  %v1054_v42 = vadd.f32 %v1053_v5, %v1019_v0  ;;  %v1022_v10 = vsel %vm699_vm1, %v4266_v24, 0.0 }
 0x23a   : > { %v1576_v63 = vpop.xlane.xlu1 %1575 }
 0x23b   : > { %981 = vadd.xlane.f32.xlu0 %v5848_v44 }
 0x23c   : > { %v6019_v48 = vpop.xlane.xlu0 %2381 }
 0x23d   : > { %978 = vadd.xlane.f32.xlu1 %v5822_v18  ;;  %v1055_v18 = vadd.f32 %v1054_v42, %v1022_v10 }
 0x23e   : > { %v6022_v36 = vpop.xlane.xlu1 %1569 }
 0x23f   : > { %987 = vadd.xlane.f32.xlu0 %v5896_v26  ;;  %v1056_v30 = vrot.slane %v1055_v18, 4 }
 0x240   : > { %v1585_v59 = vpop.xlane.xlu0 %1584 }
 0x241   : > { %984 = vadd.xlane.f32.xlu1 %v5868_v4 }
 0x242   : > { %v6027_v44 = vpop.xlane.xlu1 %2396 }
 0x243   : > { %993 = vadd.xlane.f32.xlu0 %v5933_v9  ;;  %v1057_v9 = vadd.f32 %v1056_v30, %v1055_v18 }
 0x244   : > { %v6031_v39 = vpop.xlane.xlu0 %1578 }
 0x245   : > { %990 = vadd.xlane.f32.xlu1 %v5920_v43  ;;  %v1058_v42 = vrot.slane %v1057_v9, 2 }
 0x246   : > { %v6034_v8 = vpop.xlane.xlu1 %2390 }
 0x247   : > { %999 = vadd.xlane.f32.xlu0 %v5961_v23  ;;  %v1059_v50 = vadd.f32 %v1058_v42, %v1057_v9 }
 0x248   : > { %v6037_v26 = vpop.xlane.xlu0 %2399 }
 0x249   : > { %996 = vadd.xlane.f32.xlu1 %v5945_v55  ;;  %v6047_v55 = vadd.f32 %v5531_v37, %v8577_v32  ;;  %v1060_v18 = vrot.slane %v1059_v50, 1  ;;  %v1624_v37 = vmax.f32 %v5929_v29, %v5963_v49  ;;  %v385_v29 = vld [vmem:[%s8330_s5] sm:$0x1] }
 0x24a   : > { %v1588_v4 = vpop.xlane.xlu1 %1587 }
 0x24b   : > { %1005 = vadd.xlane.f32.xlu0 %v1004_v28  ;;  %8637 = vst [vmem:[#allocation24_spill] sm:$0xff] %v6047_v55  ;;  %v1061_v30 = vadd.f32 %v1060_v18, %v1059_v50  ;;  %v1628_v42 = vmax.f32 %v1624_v37, %v1576_v63 }
 0x24c   : > { %v6040_v5 = vpop.xlane.xlu0 %2393 }
 0x24d   : > { %1002 = vadd.xlane.f32.xlu1 %v5975_v41  ;;  %v6053_v41 = vadd.f32 %v5587_v46, %v8577_v32  ;;  %v1302_v18 = vmul.f32 %v1061_v30, %v385_v29 }
 0x24e   : > { %v6043_v24 = vpop.xlane.xlu1 %1581 }
 0x24f   : > { %1011 = vadd.xlane.f32.xlu0 %v1010_v14  ;;  %8638 = vst [vmem:[#allocation21_spill] sm:$0xff] %v6053_v41 }
 0x250   : > { %v1597_v43 = vpop.xlane.xlu0 %1596 }
 0x251   : > { %1008 = vadd.xlane.f32.xlu1 %v1007_v45  ;;  %v6057_v45 = vadd.f32 %v5539_v38, %v8577_v32  ;;  %v8641_v38 = vmax.f32 %v5882_v25, %v5955_v21  ;;  %v8642_v25 = vmax.f32 %v5893_v61, %v5969_v34  ;;  %v8644_v61 = vmax.f32 %v5908_v52, %v5947_v31 }
 0x252   : > { %v2409_v33 = vpop.xlane.xlu1 %2408  ;;  %v8645_v31 = vmax.f32 %v5917_v53, %v5985_v11 }
 0x253   : > { %1017 = vadd.xlane.f32.xlu0 %v1016_v3  ;;  %8639 = vst [vmem:[#allocation23_spill] sm:$0xff] %v6057_v45  ;;  %v1627_v9 = vmax.f32 %v8641_v38, %v6000_v6  ;;  %v2439_v21 = vmax.f32 %v8642_v25, %v6003_v16  ;;  %v8643_v6 = vmax.f32 %v5925_v15, %v5977_v2  ;;  %v1304_v2 = vsel %vm1303_vm2, %v1302_v18, 0.0 }
 0x254   : > { %v1591_v23 = vpop.xlane.xlu0 %1590  ;;  %v1625_v34 = vmax.f32 %v8644_v61, %v6007_v17  ;;  %v2437_v17 = vmax.f32 %v8645_v31, %v6010_v19 }
 0x255   : > { %1014 = vadd.xlane.f32.xlu1 %v1013_v27  ;;  %v3231_v27 = vsel %vm699_vm1, %v6047_v55, -inf  ;;  %v2440_v63 = vmax.f32 %v8643_v6, %v6014_v62  ;;  %v2443_v30 = vmax.f32 %v2439_v21, %v6027_v44 }
 0x256   : > { %v6049_v28 = vpop.xlane.xlu1 %2402 }
 0x257   : > { %1023 = vadd.xlane.f32.xlu0 %v1022_v10  ;;  %v6065_v10 = vadd.f32 %v5591_v22, %v8577_v32  ;;  %v3225_v32 = vsel %vm699_vm1, %v6057_v45, -inf  ;;  %v1631_v22 = vmax.f32 %v1627_v9, %v1585_v59  ;;  %v2444_v38 = vmax.f32 %v2440_v63, %v6037_v26 }
 0x258   : > { %v2412_v14 = vpop.xlane.xlu0 %2411  ;;  %v2447_v62 = vmax.f32 %v2443_v30, %v2409_v33  ;;  %v1629_v26 = vmax.f32 %v1625_v34, %v6031_v39 }
 0x259   : > { %1020 = vadd.xlane.f32.xlu1 %v1019_v0  ;;  %8640 = vst [vmem:[#allocation26_spill] sm:$0xff] %v6065_v10  ;;  %v3234_v0 = vsel %vm699_vm1, %v6053_v41, -inf  ;;  %v3228_v50 = vsel %vm699_vm1, %v6065_v10, -inf  ;;  %v1635_v37 = vmax.f32 %v1631_v22, %v1597_v43  ;;  %v2448_v43 = vmax.f32 %v2444_v38, %v2412_v14 }
 0x25a   : > { %v1600_v3 = vpop.xlane.xlu1 %1599  ;;  %v1633_v14 = vmax.f32 %v1629_v26, %v1591_v23 }
 0x25b   : > { %3232 = vmax.xlane.f32.xlu0 %v3231_v27  ;;  %v1632_v27 = vmax.f32 %v1628_v42, %v1588_v4  ;;  %v1622_v4 = vmax.f32 %v5941_v57, %v5996_v13  ;;  %v2434_v13 = vmax.f32 %v5936_v20, %v5991_v60  ;;  %v2441_v20 = vmax.f32 %v2437_v17, %v6034_v8  ;;  %v8651_v17 = vld [vmem:[#allocation45_spill] sm:$0xff] }
 0x25c   : > { %v2406_v46 = vpop.xlane.xlu0 %2405 }
 0x25d   : > { %3235 = vmax.xlane.f32.xlu1 %v3234_v0  ;;  %v1636_v59 = vmax.f32 %v1632_v27, %v1600_v3  ;;  %v1626_v16 = vmax.f32 %v1622_v4, %v6022_v36  ;;  %v2438_v33 = vmax.f32 %v2434_v13, %v6019_v48 }
 0x25e   : > { %v1594_v49 = vpop.xlane.xlu1 %1593 }
 0x25f   : > { %3226 = vmax.xlane.f32.xlu0 %v3225_v32  ;;  %v2442_v60 = vmax.f32 %v2438_v33, %v6040_v5  ;;  %v8652_v33 = vld [vmem:[#allocation37_spill] sm:$0xff] }
 0x260   : > { %v1609_v41 = vpop.xlane.xlu0 %1608 }
 0x261   : > { %3229 = vmax.xlane.f32.xlu1 %v3228_v50  ;;  %v1639_v9 = vmax.f32 %v1635_v37, %v1609_v41  ;;  %v1630_v41 = vmax.f32 %v1626_v16, %v6043_v24  ;;  %v2445_v50 = vmax.f32 %v2441_v20, %v6049_v28  ;;  %v2446_v18 = vmax.f32 %v2442_v60, %v2406_v46  ;;  %v8655_v60 = vld [vmem:[#allocation53_spill] sm:$0xff] }
 0x262   : > { %v1612_v0 = vpop.xlane.xlu1 %1611 }
 0x263   : > { %v1640_v42 = vmax.f32 %v1636_v59, %v1612_v0  ;;  %v1634_v29 = vmax.f32 %v1630_v41, %v1594_v49  ;;  %v8649_v41 = vld [vmem:[#allocation36_spill] sm:$0xff] }
 0x264   : > { %v2421_v15 = vpop.xlane.xlu0 %2420 }
 0x265   : > { %v1642_v57 = vmax.f32 %v1639_v9, %v1640_v42  ;;  %1305 = vadd.xlane.f32.xlu1 %v1304_v2  ;;  %v2451_v3 = vmax.f32 %v2447_v62, %v2421_v15  ;;  %v8646_v2 = vld [vmem:[#allocation32_spill] sm:$0xff]  ;;  %v8647_v62 = vld [vmem:[#allocation33_spill] sm:$0xff] }
 0x266   : > { %v2424_v44 = vpop.xlane.xlu1 %2423 }
 0x267   : > { %v2452_v52 = vmax.f32 %v2448_v43, %v2424_v44 }
 0x268   : > { %v1603_v36 = vpop.xlane.xlu0 %1602 }
 0x269   : > { %v2454_v32 = vmax.f32 %v2451_v3, %v2452_v52  ;;  %v1637_v39 = vmax.f32 %v1633_v14, %v1603_v36  ;;  %v8650_v52 = vld [vmem:[#allocation39_spill] sm:$0xff] }
 0x26a   : > { %v1606_v22 = vpop.xlane.xlu1 %1605 }
 0x26b   : > { %v1638_v24 = vmax.f32 %v1634_v29, %v1606_v22  ;;  %v8653_v29 = vld [vmem:[#allocation42_spill] sm:$0xff]  ;;  %v8654_v22 = vld [vmem:[#allocation48_spill] sm:$0xff] }
 0x26c   : > { %v2415_v27 = vpop.xlane.xlu0 %2414 }
 0x26d   : > { %v1641_v25 = vmax.f32 %v1637_v39, %v1638_v24  ;;  %v2449_v19 = vmax.f32 %v2445_v50, %v2415_v27  ;;  %v8656_v24 = vld [vmem:[#allocation46_spill] sm:$0xff] }
 0x26e   : > { %v2418_v53 = vpop.xlane.xlu1 %2417 }
 0x26f   : > { %v1643_v11 = vmax.f32 %v1641_v25, %v1642_v57  ;;  %v2450_v21 = vmax.f32 %v2446_v18, %v2418_v53  ;;  %v8648_v57 = vld [vmem:[#allocation29_spill] sm:$0xff]  ;;  %v8657_v18 = vld [vmem:[#allocation51_spill] sm:$0xff]  ;;  %v8658_v53 = vld [vmem:[#allocation54_spill] sm:$0xff] }
 0x270   : > { %v6110_v48 = vpop.xlane.xlu0 %3151 }
 0x271   : > { %v1644_v23 = vrot.slane %v1643_v11, 4  ;;  %v2453_v49 = vmax.f32 %v2449_v19, %v2450_v21  ;;  %v8659_v19 = vld [vmem:[#allocation62_spill] sm:$0xff] }
 0x272   : > { %v6112_v6 = vpop.xlane.xlu1 %3148 }
 0x273   : > { %v1645_v8 = vmax.f32 %v1643_v11, %v1644_v23  ;;  %v2455_v63 = vmax.f32 %v2453_v49, %v2454_v32  ;;  %v8660_v23 = vld [vmem:[#allocation55_spill] sm:$0xff] }
 0x274   : > { %v6114_v5 = vpop.xlane.xlu0 %3145 }
 0x275   : > { %v1646_v37 = vrot.slane %v1645_v8, 2  ;;  %v2456_v59 = vrot.slane %v2455_v63, 4 }
 0x276   : > { %v6116_v4 = vpop.xlane.xlu1 %3142 }
 0x277   : > { %v1647_v28 = vmax.f32 %v1645_v8, %v1646_v37  ;;  %v2457_v46 = vmax.f32 %v2455_v63, %v2456_v59  ;;  %v8661_v8 = vld [vmem:[#allocation56_spill] sm:$0xff] }
 0x278   : > { %v6118_v0 = vpop.xlane.xlu0 %3163 }
 0x279   : > { %v1648_v30 = vrot.slane %v1647_v28, 1  ;;  %v2458_v38 = vrot.slane %v2457_v46, 2 }
 0x27a   : > { %v6120_v9 = vpop.xlane.xlu1 %3160 }
 0x27b   : > { %v6122_v42 = vmax.f32 %v1647_v28, %v1648_v30  ;;  %v6126_v34 = vmax.f32 %v2457_v46, %v2458_v38  ;;  %v8662_v28 = vld [vmem:[#allocation65_spill] sm:$0xff] }
 0x27c   : > { %v6124_v61 = vpop.xlane.xlu0 %3157 }
 0x27d   : > { %v1650_v16 = vsub.f32 %v8646_v2, %v6122_v42  ;;  %v1651_v43 = vsub.f32 %v8647_v62, %v6122_v42  ;;  %v1652_v13 = vsub.f32 %v8648_v57, %v6122_v42  ;;  %v1653_v3 = vsub.f32 %v8649_v41, %v6122_v42  ;;  %v8663_v57 = vld [vmem:[#allocation75_spill] sm:$0xff] }
 0x27e   : > { %v6138_v26 = vpop.xlane.xlu1 %3154  ;;  %v1654_v31 = vsub.f32 %v8650_v52, %v6122_v42  ;;  %v1655_v36 = vsub.f32 %v8651_v17, %v6122_v42  ;;  %v1656_v14 = vsub.f32 %v8652_v33, %v6122_v42  ;;  %v1657_v32 = vsub.f32 %v8653_v29, %v6122_v42  ;;  %v8664_v41 = vld [vmem:[#allocation79_spill] sm:$0xff]  ;;  %v8665_v17 = vld [vmem:[#allocation84_spill] sm:$0xff] }
 0x27f   : > { %v1658_v20 = vsub.f32 %v8654_v22, %v6122_v42  ;;  %v1659_v39 = vsub.f32 %v8655_v60, %v6122_v42  ;;  %v1660_v27 = vsub.f32 %v8656_v24, %v6122_v42  ;;  %v1661_v25 = vsub.f32 %v8657_v18, %v6122_v42  ;;  %v8668_v18 = vld [vmem:[#allocation89_spill] sm:$0xff] }
 0x280   : > { %v6156_v50 = vpop.xlane.xlu0 %3175  ;;  %v1662_v11 = vsub.f32 %v8658_v53, %v6122_v42  ;;  %v1663_v21 = vsub.f32 %v8659_v19, %v6122_v42  ;;  %v1664_v49 = vsub.f32 %v8660_v23, %v6122_v42  ;;  %v1665_v63 = vsub.f32 %v8661_v8, %v6122_v42  ;;  %v8669_v19 = vld [vmem:[#allocation90_spill] sm:$0xff]  ;;  %v8670_v8 = vld [vmem:[#allocation85_spill] sm:$0xff] }
 0x281   : > { %v1666_v37 = vsub.f32 %v5307_v1, %v6122_v42  ;;  %v1667_v59 = vsub.f32 %v5356_v56, %v6122_v42  ;;  %v1668_v46 = vsub.f32 %v8662_v28, %v6122_v42  ;;  %v1669_v38 = vsub.f32 %v5338_v40, %v6122_v42  ;;  %v8666_v40 = vld [vmem:[#allocation77_spill] sm:$0xff] }
 0x282   : > { %v6174_v30 = vpop.xlane.xlu1 %3172  ;;  %v1670_v2 = vsub.f32 %v5383_v54, %v6122_v42  ;;  %v1671_v62 = vsub.f32 %v5421_v12, %v6122_v42  ;;  %v1672_v1 = vsub.f32 %v5365_v58, %v6122_v42  ;;  %v1673_v56 = vsub.f32 %v8663_v57, %v6122_v42  ;;  %v8667_v54 = vld [vmem:[#allocation82_spill] sm:$0xff] }
 0x283   : > { %v1674_v52 = vsub.f32 %v8664_v41, %v6122_v42  ;;  %v1675_v33 = vsub.f32 %v8665_v17, %v6122_v42  ;;  %v1676_v29 = vsub.f32 %v8666_v40, %v6122_v42  ;;  %v1677_v12 = vsub.f32 %v8667_v54, %v6122_v42  ;;  %v8671_v17 = vld [vmem:[#allocation86_spill] sm:$0xff] }
 0x284   : > { %v6192_v22 = vpop.xlane.xlu0 %3169  ;;  %v1682_v60 = vmul.f32 1.442695, %v1650_v16  ;;  %v1684_v24 = vmul.f32 1.442695, %v1651_v43  ;;  %v1686_v58 = vmul.f32 1.442695, %v1652_v13  ;;  %v1678_v53 = vsub.f32 %v8668_v18, %v6122_v42 }
 0x285   : > { %v1679_v23 = vsub.f32 %v8669_v19, %v6122_v42  ;;  %v1680_v28 = vsub.f32 %v8670_v8, %v6122_v42  ;;  %v1688_v57 = vmul.f32 1.442695, %v1653_v3  ;;  %v1681_v40 = vsub.f32 %v8671_v17, %v6122_v42  ;;  %v8681_v17 = vld [vmem:[#allocation31_spill] sm:$0xff] }
 0x286   : > { %v3167_v41 = vpop.xlane.xlu1 %3166  ;;  %v1690_v44 = vmul.f32 1.442695, %v1654_v31  ;;  %4267 = vpow2.f32 %v1682_v60  ;;  %v3238_v16 = vmax.f32 %v6114_v5, %v6124_v61  ;;  %v1692_v43 = vmul.f32 1.442695, %v1655_v36 }
 0x287   : > { %v1694_v13 = vmul.f32 1.442695, %v1656_v14  ;;  %4269 = vpow2.f32 %v1684_v24  ;;  %v3237_v54 = vmax.f32 %v6116_v4, %v6138_v26  ;;  %v1696_v19 = vmul.f32 1.442695, %v1657_v32 }
 0x288   : > { %v6208_v18 = vpop.xlane.xlu0 %3187  ;;  %v1698_v8 = vmul.f32 1.442695, %v1658_v20  ;;  %v1700_v3 = vmul.f32 1.442695, %v1659_v39  ;;  %4271 = vpow2.f32 %v1686_v58  ;;  %v1702_v15 = vmul.f32 1.442695, %v1660_v27 }
 0x289   : > { %v1704_v55 = vmul.f32 1.442695, %v1661_v25  ;;  %v1706_v42 = vmul.f32 1.442695, %v1662_v11  ;;  %4273 = vpow2.f32 %v1688_v57  ;;  %v1708_v60 = vmul.f32 1.442695, %v1663_v21 }
 0x28a   : > { %v6210_v31 = vpop.xlane.xlu1 %3184  ;;  %v1710_v5 = vmul.f32 1.442695, %v1664_v49  ;;  %v1712_v61 = vmul.f32 1.442695, %v1665_v63  ;;  %4275 = vpow2.f32 %v1690_v44  ;;  %v1714_v36 = vmul.f32 1.442695, %v1666_v37 }
 0x28b   : > { %v1716_v14 = vmul.f32 1.442695, %v1667_v59  ;;  %v6212_v24 = vmul.f32 1.442695, %v1668_v46  ;;  %4277 = vpow2.f32 %v1692_v43  ;;  %v6216_v26 = vmul.f32 1.442695, %v1669_v38 }
 0x28c   : > { %v6214_v4 = vpop.xlane.xlu0 %3181  ;;  %v6218_v32 = vmul.f32 1.442695, %v1670_v2  ;;  %v6220_v20 = vmul.f32 1.442695, %v1671_v62  ;;  %4279 = vpow2.f32 %v1694_v13  ;;  %v6222_v39 = vmul.f32 1.442695, %v1672_v1 }
 0x28d   : > { %8672 = vst [vmem:[#allocation28_spill] sm:$0xff] %v6214_v4  ;;  %v6224_v27 = vmul.f32 1.442695, %v1673_v56  ;;  %v6226_v25 = vmul.f32 1.442695, %v1674_v52  ;;  %4281 = vpow2.f32 %v1696_v19  ;;  %v2460_v49 = vrot.slane %v6126_v34, 1 }
 0x28e   : > { %v6228_v44 = vpop.xlane.xlu1 %3178  ;;  %v6230_v11 = vmul.f32 1.442695, %v1675_v33  ;;  %v6232_v21 = vmul.f32 1.442695, %v1676_v29  ;;  %4283 = vpow2.f32 %v1698_v8  ;;  %v6235_v63 = vmul.f32 1.442695, %v1677_v12 }
 0x28f   : > { %v6237_v37 = vmul.f32 1.442695, %v1678_v53  ;;  %v6239_v59 = vmul.f32 1.442695, %v1679_v23  ;;  %4285 = vpow2.f32 %v1700_v3  ;;  %v6246_v2 = vmax.f32 %v6126_v34, %v2460_v49  ;;  %v8680_v57 = vld [vmem:[#allocation30_spill] sm:$0xff] }
 0x290   : > { %v6241_v46 = vpop.xlane.xlu0 %3199  ;;  %v6243_v38 = vpop.eup %4267  ;;  %4287 = vpow2.f32 %v1702_v15  ;;  %v8673_v62 = vmax.f32 %v6110_v48, %v6118_v0  ;;  %v8674_v56 = vmax.f32 %v6112_v6, %v6120_v9  ;;  %v6262_v29 = vmul.f32 1.442695, %v1680_v28  ;;  %v8685_v8 = vld [vmem:[#allocation38_spill] sm:$0xff] }
 0x291   : > { %v6260_v33 = vpop.eup %4269  ;;  %v6264_v12 = vmul.f32 1.442695, %v1681_v40  ;;  %4289 = vpow2.f32 %v1704_v55  ;;  %v6267_v34 = vmax.f32 %v3238_v16, %v6192_v22  ;;  %v6273_v0 = vmax.f32 %v3237_v54, %v3167_v41  ;;  %v8677_v55 = vld [vmem:[#allocation34_spill] sm:$0xff]  ;;  %v8678_v22 = vld [vmem:[#allocation35_spill] sm:$0xff]  ;;  %v8682_v16 = vld [vmem:[#allocation40_spill] sm:$0xff] }
 0x292   : > { %v6252_v1 = vmax.f32 %v8673_v62, %v6156_v50  ;;  %v6258_v52 = vmax.f32 %v8674_v56, %v6174_v30  ;;  %v6269_v15 = vpop.xlane.xlu1 %3196  ;;  %v6271_v48 = vpop.eup %4271  ;;  %4291 = vpow2.f32 %v1706_v42  ;;  %v2462_v30 = vsub.f32 %v8677_v55, %v6246_v2  ;;  %v8684_v54 = vld [vmem:[#allocation43_spill] sm:$0xff]  ;;  %v8686_v42 = vld [vmem:[#allocation41_spill] sm:$0xff]  ;;  %v8690_v55 = vld [vmem:[#allocation52_spill] sm:$0xff] }
 0x293   : > { %8675 = vst [vmem:[#allocation25_spill] sm:$0xff] %v6267_v34  ;;  %v6279_v50 = vpop.eup %4273  ;;  %4293 = vpow2.f32 %v1708_v60  ;;  %v2463_v58 = vsub.f32 %v8678_v22, %v6246_v2  ;;  %v2464_v41 = vsub.f32 %v8680_v57, %v6246_v2  ;;  %v2465_v40 = vsub.f32 %v8681_v17, %v6246_v2  ;;  %v8689_v62 = vld [vmem:[#allocation49_spill] sm:$0xff]  ;;  %v8691_v22 = vld [vmem:[#allocation47_spill] sm:$0xff] }
 0x294   : > { %8676 = vst [vmem:[#allocation27_spill] sm:$0xff] %v6279_v50  ;;  %v6287_v23 = vpop.xlane.xlu0 %3193  ;;  %v6289_v28 = vpop.eup %4275  ;;  %4295 = vpow2.f32 %v1710_v5  ;;  %v2466_v43 = vsub.f32 %v8682_v16, %v6246_v2  ;;  %v2467_v19 = vsub.f32 %v8684_v54, %v6246_v2  ;;  %v2468_v3 = vsub.f32 %v8685_v8, %v6246_v2  ;;  %v8693_v16 = vld [vmem:[#allocation50_spill] sm:$0xff]  ;;  %v8694_v8 = vld [vmem:[#allocation59_spill] sm:$0xff] }
 0x295   : > { %8679 = vst [vmem:[#allocation32_spill] sm:$0xff] %v6289_v28  ;;  %v6297_v13 = vpop.eup %4277  ;;  %4297 = vpow2.f32 %v1712_v61  ;;  %v2469_v60 = vsub.f32 %v8686_v42, %v6246_v2  ;;  %v2470_v56 = vsub.f32 %v8689_v62, %v6246_v2  ;;  %v2471_v61 = vsub.f32 %v8690_v55, %v6246_v2  ;;  %v8698_v55 = vld [vmem:[#allocation57_spill] sm:$0xff] }
 0x296   : > { %8683 = vst [vmem:[#allocation33_spill] sm:$0xff] %v6297_v13  ;;  %v6305_v5 = vpop.xlane.xlu1 %3190  ;;  %v6307_v49 = vpop.eup %4279  ;;  %4299 = vpow2.f32 %v1714_v36  ;;  %v2472_v57 = vsub.f32 %v8691_v22, %v6246_v2  ;;  %v2473_v54 = vsub.f32 %v8693_v16, %v6246_v2  ;;  %v2474_v42 = vsub.f32 %v8694_v8, %v6246_v2  ;;  %v8695_v36 = vld [vmem:[#allocation60_spill] sm:$0xff]  ;;  %v8700_v16 = vld [vmem:[#allocation69_spill] sm:$0xff]  ;;  %v8702_v8 = vld [vmem:[#allocation71_spill] sm:$0xff] }
 0x297   : > { %8687 = vst [vmem:[#allocation29_spill] sm:$0xff] %v6305_v5  ;;  %8688 = vst [vmem:[#allocation36_spill] sm:$0xff] %v6307_v49  ;;  %v6315_v17 = vpop.eup %4281  ;;  %4301 = vpow2.f32 %v1716_v14  ;;  %v2475_v53 = vsub.f32 %v8695_v36, %v6246_v2  ;;  %v2476_v22 = vsub.f32 %v8698_v55, %v6246_v2  ;;  %v8699_v14 = vld [vmem:[#allocation58_spill] sm:$0xff]  ;;  %v2478_v10 = vsub.f32 %v8700_v16, %v6246_v2 }
 0x298   : > { %8692 = vst [vmem:[#allocation39_spill] sm:$0xff] %v6315_v17  ;;  %v6323_v9 = vpop.xlane.xlu0 %3211  ;;  %v6325_v62 = vpop.eup %4283  ;;  %4303 = vpow2.f32 %v6212_v24  ;;  %v2477_v6 = vsub.f32 %v8699_v14, %v6246_v2  ;;  %v2479_v36 = vsub.f32 %v8702_v8, %v6246_v2  ;;  %v2480_v7 = vsub.f32 %v8703_v35, %v6246_v2  ;;  %v8704_v24 = vld [vmem:[#allocation70_spill] sm:$0xff]  ;;  %v8707_v14 = vld [vmem:[#allocation73_spill] sm:$0xff]  ;;  %v8709_v8 = vld [vmem:[#allocation72_spill] sm:$0xff] }
 0x299   : > { %8696 = vst [vmem:[#allocation45_spill] sm:$0xff] %v6323_v9  ;;  %8697 = vst [vmem:[#allocation37_spill] sm:$0xff] %v6325_v62  ;;  %v6334_v45 = vpop.eup %4285  ;;  %4305 = vpow2.f32 %v6216_v26  ;;  %v2481_v51 = vsub.f32 %v8704_v24, %v6246_v2  ;;  %v2482_v16 = vsub.f32 %v8707_v14, %v6246_v2  ;;  %v8708_v26 = vld [vmem:[#allocation76_spill] sm:$0xff]  ;;  %v2484_v62 = vsub.f32 %v8709_v8, %v6246_v2  ;;  %v8711_v35 = vld [vmem:[#allocation74_spill] sm:$0xff] }
 0x29a   : > { %8701 = vst [vmem:[#allocation42_spill] sm:$0xff] %v6334_v45  ;;  %v6343_v55 = vpop.xlane.xlu1 %3208  ;;  %v6345_v47 = vpop.eup %4287  ;;  %4307 = vpow2.f32 %v6218_v32  ;;  %v2483_v45 = vsub.f32 %v8708_v26, %v6246_v2  ;;  %v2485_v24 = vsub.f32 %v8711_v35, %v6246_v2  ;;  %v8713_v32 = vld [vmem:[#allocation83_spill] sm:$0xff]  ;;  %v8716_v26 = vld [vmem:[#allocation78_spill] sm:$0xff]  ;;  %v8718_v35 = vld [vmem:[#allocation4_spill] sm:$0xff]  ;;  %v6391_v34 = vmul.f32 1.442695, %v2467_v19 }
 0x29b   : > { %8705 = vst [vmem:[#allocation48_spill] sm:$0xff] %v6343_v55  ;;  %8706 = vst [vmem:[#allocation53_spill] sm:$0xff] %v6345_v47  ;;  %v6354_v17 = vpop.eup %4289  ;;  %4309 = vpow2.f32 %v6220_v20  ;;  %v8712_v47 = vld [vmem:[#allocation80_spill] sm:$0xff]  ;;  %v2487_v13 = vsub.f32 %v8713_v32, %v6246_v2  ;;  %v2488_v8 = vsub.f32 %v8716_v26, %v6246_v2  ;;  %v8717_v20 = vld [vmem:[#allocation81_spill] sm:$0xff]  ;;  %v2490_v55 = vsub.f32 %v8718_v35, %v6246_v2 }
 0x29c   : > { %8710 = vst [vmem:[#allocation46_spill] sm:$0xff] %v6354_v17  ;;  %v2486_v49 = vsub.f32 %v8712_v47, %v6246_v2  ;;  %v6363_v14 = vpop.xlane.xlu0 %3205  ;;  %v6365_v28 = vpop.eup %4291  ;;  %4311 = vpow2.f32 %v6222_v39  ;;  %v2489_v17 = vsub.f32 %v8717_v20, %v6246_v2  ;;  %v8720_v47 = vld [vmem:[#allocation61_spill] sm:$0xff]  ;;  %v8722_v39 = vld [vmem:[#allocation88_spill] sm:$0xff]  ;;  %v2494_v20 = vmul.f32 1.442695, %v2462_v30 }
 0x29d   : > { %8714 = vst [vmem:[#allocation51_spill] sm:$0xff] %v6363_v14  ;;  %8715 = vst [vmem:[#allocation54_spill] sm:$0xff] %v6365_v28  ;;  %v6374_v9 = vpop.eup %4293  ;;  %4313 = vpow2.f32 %v6224_v27  ;;  %v2491_v32 = vsub.f32 %v8720_v47, %v6246_v2  ;;  %v8721_v28 = vld [vmem:[#allocation87_spill] sm:$0xff]  ;;  %v2496_v35 = vmul.f32 1.442695, %v2463_v58 }
 0x29e   : > { %8719 = vst [vmem:[#allocation62_spill] sm:$0xff] %v6374_v9  ;;  %v6383_v26 = vpop.xlane.xlu1 %3202  ;;  %v6385_v50 = vpop.eup %4295  ;;  %4315 = vpow2.f32 %v6226_v25  ;;  %v2498_v9 = vmul.f32 1.442695, %v2464_v41  ;;  %v2500_v27 = vmul.f32 1.442695, %v2465_v40 }
 0x29f   : > { %8723 = vst [vmem:[#allocation55_spill] sm:$0xff] %v6385_v50  ;;  %v6388_v4 = vpop.eup %4297  ;;  %4317 = vpow2.f32 %v6230_v11  ;;  %v2502_v47 = vmul.f32 1.442695, %v2466_v43  ;;  %v6398_v50 = vmul.f32 1.442695, %v2468_v3 }
 0x2a0   : > { %v6393_v14 = vpop.xlane.xlu0 %3223  ;;  %v6395_v5 = vpop.eup %4299  ;;  %4319 = vpow2.f32 %v6232_v21  ;;  %v6400_v25 = vmul.f32 1.442695, %v2469_v60  ;;  %v6402_v30 = vmul.f32 1.442695, %v2470_v56  ;;  %v6407_v11 = vmul.f32 1.442695, %v2471_v61 }
 0x2a1   : > { %v6404_v58 = vpop.eup %4301  ;;  %4321 = vpow2.f32 %v6235_v63  ;;  %v6409_v41 = vmul.f32 1.442695, %v2472_v57  ;;  %v6411_v40 = vmul.f32 1.442695, %v2473_v54  ;;  %v6418_v21 = vmul.f32 1.442695, %v2474_v42 }
 0x2a2   : > { %v6413_v43 = vpop.xlane.xlu1 %3220  ;;  %v6415_v19 = vpop.eup %4303  ;;  %4323 = vpow2.f32 %v6237_v37  ;;  %v6420_v3 = vmul.f32 1.442695, %v2475_v53  ;;  %v6422_v60 = vmul.f32 1.442695, %v2476_v22  ;;  %v6427_v63 = vmul.f32 1.442695, %v2477_v6 }
 0x2a3   : > { %8724 = vst [vmem:[#allocation56_spill] sm:$0xff] %v6415_v19  ;;  %v6424_v56 = vpop.eup %4305  ;;  %4325 = vpow2.f32 %v6239_v59  ;;  %v6429_v61 = vmul.f32 1.442695, %v2478_v10  ;;  %v6431_v57 = vmul.f32 1.442695, %v2479_v36 }
 0x2a4   : > { %v6433_v54 = vpop.xlane.xlu0 %3217  ;;  %v6435_v19 = vpop.eup %4307  ;;  %4327 = vpow2.f32 %v6262_v29  ;;  %v6438_v37 = vmul.f32 1.442695, %v2480_v7  ;;  %v6440_v53 = vmul.f32 1.442695, %v2481_v51  ;;  %v6442_v42 = vmul.f32 1.442695, %v2482_v16 }
 0x2a5   : > { %8725 = vst [vmem:[#allocation65_spill] sm:$0xff] %v6435_v19  ;;  %v6444_v22 = vpop.eup %4309  ;;  %4329 = vpow2.f32 %v6264_v12  ;;  %v6447_v10 = vmul.f32 1.442695, %v2483_v45  ;;  %v6449_v59 = vmul.f32 1.442695, %v2484_v62  ;;  %v1749_v45 = vsel %vm699_vm1, %v6260_v33, 0.0 }
 0x2a6   : > { %v6451_v6 = vmul.f32 1.442695, %v2485_v24  ;;  %v6453_v36 = vpop.xlane.xlu1 %3214  ;;  %v6455_v19 = vpop.eup %4311  ;;  %v6457_v7 = vmul.f32 1.442695, %v2486_v49  ;;  %v6459_v51 = vmul.f32 1.442695, %v2487_v13  ;;  %4331 = vpow2.f32 %v2494_v20  ;;  %1750 = vadd.xlane.f32.xlu1 %v1749_v45 }
 0x2a7   : > { %v6461_v29 = vmul.f32 1.442695, %v2488_v8  ;;  %v6463_v16 = vpop.eup %4313  ;;  %v6465_v12 = vmul.f32 1.442695, %v2489_v17  ;;  %4333 = vpow2.f32 %v2496_v35  ;;  %v1746_v62 = vsel %vm699_vm1, %v6243_v38, 0.0 }
 0x2a8   : > { %8726 = vst [vmem:[#allocation75_spill] sm:$0xff] %v6463_v16  ;;  %v6471_v24 = vpop.xlane.xlu0 %933  ;;  %v6473_v49 = vpop.eup %4315  ;;  %v6475_v13 = vmul.f32 1.442695, %v2490_v55  ;;  %v6477_v8 = vmul.f32 1.442695, %v2491_v32  ;;  %4335 = vpow2.f32 %v2498_v9  ;;  %1747 = vadd.xlane.f32.xlu0 %v1746_v62  ;;  %v1842_v17 = vadd.f32 %v1749_v45, %v1746_v62 }
 0x2a9   : > { %8727 = vst [vmem:[#allocation79_spill] sm:$0xff] %v6473_v49  ;;  %v6479_v20 = vpop.eup %4317  ;;  %v8729_v33 = vsub.f32 %v8721_v28, %v6246_v2  ;;  %v8730_v38 = vsub.f32 %v8722_v39, %v6246_v2  ;;  %4337 = vpow2.f32 %v2500_v27  ;;  %v6493_v55 = vsel %vm699_vm1, %v6271_v48, 0.0 }
 0x2aa   : > { %8728 = vst [vmem:[#allocation84_spill] sm:$0xff] %v6479_v20  ;;  %v931_v9 = vpop.xlane.xlu1 %930  ;;  %v6495_v32 = vpop.eup %4319  ;;  %4339 = vpow2.f32 %v2502_v47  ;;  %v3245_v45 = vmax.f32 %v6273_v0, %v6228_v44  ;;  %v8732_v28 = vmax.f32 %v6252_v1, %v6208_v18  ;;  %v1843_v2 = vadd.f32 %v1842_v17, %v6493_v55  ;;  %v8735_v47 = vld [vmem:[#allocation25_spill] sm:$0xff]  ;;  %v8736_v44 = vld [vmem:[#allocation28_spill] sm:$0xff] }
 0x2ab   : > { %v6484_v35 = vmul.f32 1.442695, %v8729_v33  ;;  %v6489_v16 = vmul.f32 1.442695, %v8730_v38  ;;  %8731 = vst [vmem:[#allocation77_spill] sm:$0xff] %v6495_v32  ;;  %v6504_v39 = vpop.eup %4321  ;;  %4341 = vpow2.f32 %v6391_v34  ;;  %v8734_v48 = vmax.f32 %v6258_v52, %v6210_v31  ;;  %v8738_v38 = vld [vmem:[#allocation27_spill] sm:$0xff] }
 0x2ac   : > { %v3252_v62 = vmax.f32 %v8732_v28, %v6241_v46  ;;  %8733 = vst [vmem:[#allocation82_spill] sm:$0xff] %v6504_v39  ;;  %v8737_v0 = vmax.f32 %v8735_v47, %v8736_v44  ;;  %v6517_v18 = vsel %vm699_vm1, %v8738_v38, 0.0  ;;  %v6519_v46 = vpop.xlane.xlu0 %939  ;;  %v6521_v1 = vpop.eup %4323  ;;  %4343 = vpow2.f32 %v6398_v50  ;;  %v8740_v34 = vld [vmem:[#allocation29_spill] sm:$0xff]  ;;  %v8744_v47 = vld [vmem:[#allocation51_spill] sm:$0xff] }
 0x2ad   : > { %v3251_v27 = vmax.f32 %v8734_v48, %v6269_v15  ;;  %8739 = vst [vmem:[#allocation89_spill] sm:$0xff] %v6521_v1  ;;  %v3249_v17 = vmax.f32 %v3245_v45, %v8740_v34  ;;  %v8741_v28 = vld [vmem:[#allocation45_spill] sm:$0xff]  ;;  %v1844_v52 = vadd.f32 %v1843_v2, %v6517_v18  ;;  %v6527_v15 = vpop.eup %4325  ;;  %4345 = vpow2.f32 %v6400_v25  ;;  %v322_v50 = vld [vmem:[%s8328_s3 + $0x8] sm:$0xff] }
 0x2ae   : > { %v3250_v33 = vmax.f32 %v8737_v0, %v6287_v23  ;;  %v3256_v31 = vmax.f32 %v3252_v62, %v8741_v28  ;;  %8742 = vst [vmem:[#allocation90_spill] sm:$0xff] %v6527_v15  ;;  %v8743_v23 = vld [vmem:[#allocation48_spill] sm:$0xff]  ;;  %v6539_v45 = vpop.xlane.xlu1 %936  ;;  %v6541_v62 = vpop.eup %4327  ;;  %v354_v28 = vld [vmem:[%s8329_s4 + $0x8] sm:$0xff]  ;;  %4347 = vpow2.f32 %v6402_v30  ;;  %v324_v15 = vld [vmem:[%s8328_s3 + $0x18] sm:$0xff] }
 0x2af   : > { %v3255_v48 = vmax.f32 %v3251_v27, %v8743_v23  ;;  %v8745_v0 = vld [vmem:[#allocation32_spill] sm:$0xff]  ;;  %8746 = vst [vmem:[#allocation85_spill] sm:$0xff] %v6541_v62  ;;  %v3253_v25 = vmax.f32 %v3249_v17, %v6383_v26  ;;  %v6555_v23 = vpop.eup %4329  ;;  %4349 = vpow2.f32 %v6407_v11 }
 0x2b0   : > { %v3254_v44 = vmax.f32 %v3250_v33, %v8744_v47  ;;  %v6534_v38 = vsel %vm699_vm1, %v8745_v0, 0.0  ;;  %v6546_v27 = vmax.f32 %v3256_v31, %v6393_v14  ;;  %v8747_v33 = vld [vmem:[#allocation33_spill] sm:$0xff]  ;;  %8748 = vst [vmem:[#allocation86_spill] sm:$0xff] %v6555_v23  ;;  %v8751_v14 = vld [vmem:[#allocation36_spill] sm:$0xff]  ;;  %v321_v31 = vld [vmem:[%s8328_s3] sm:$0xff]  ;;  %v4332_v0 = vpop.eup %4331  ;;  %4351 = vpow2.f32 %v6409_v41 }
 0x2b1   : > { %v1845_v2 = vadd.f32 %v1844_v52, %v6534_v38  ;;  %v6550_v34 = vsel %vm699_vm1, %v8747_v33, 0.0  ;;  %v6559_v47 = vmax.f32 %v3255_v48, %v6413_v43  ;;  %v6566_v17 = vsel %vm699_vm1, %v8751_v14, 0.0  ;;  %v6571_v52 = vpop.xlane.xlu0 %945  ;;  %v353_v48 = vld [vmem:[%s8329_s4] sm:$0xff]  ;;  %v8753_v23 = vld [vmem:[#allocation39_spill] sm:$0xff] }
 0x2b2   : > { %v6562_v26 = vmax.f32 %v3254_v44, %v6433_v54  ;;  %v6576_v43 = vmax.f32 %v3253_v25, %v6453_v36  ;;  %v1100_v54 = vmul.f32 %v6471_v24, %v322_v50  ;;  %v4334_v44 = vpop.eup %4333  ;;  %v2558_v33 = vsel %vm699_vm1, %v4332_v0, 0.0 }
 0x2b3   : > { %8749 = vst [vmem:[#allocation34_spill] sm:$0xff] %v6559_v47  ;;  %v1846_v30 = vadd.f32 %v1845_v2, %v6550_v34  ;;  %v1202_v14 = vmul.f32 %v6471_v24, %v354_v28  ;;  %v6587_v11 = vsel %vm699_vm1, %v8753_v23, 0.0  ;;  %v6589_v2 = vpop.xlane.xlu1 %942  ;;  %v4336_v36 = vpop.eup %4335  ;;  %4353 = vpow2.f32 %v6411_v40  ;;  %2559 = vadd.xlane.f32.xlu0 %v2558_v33 }
 0x2b4   : > { %8750 = vst [vmem:[#allocation35_spill] sm:$0xff] %v6562_v26  ;;  %8752 = vst [vmem:[#allocation30_spill] sm:$0xff] %v6576_v43  ;;  %v2561_v50 = vsel %vm699_vm1, %v4334_v44, 0.0  ;;  %v1099_v62 = vmul.f32 %v931_v9, %v321_v31  ;;  %v4338_v41 = vpop.eup %4337  ;;  %4355 = vpow2.f32 %v6418_v21  ;;  %v1062_v0 = vadd.f32 %v6471_v24, %v931_v9  ;;  %v8757_v43 = vld [vmem:[#allocation46_spill] sm:$0xff] }
 0x2b5   : > { %v1847_v25 = vadd.f32 %v1846_v30, %v6566_v17  ;;  %2562 = vadd.xlane.f32.xlu1 %v2561_v50  ;;  %v2654_v28 = vadd.f32 %v2561_v50, %v2558_v33  ;;  %v1201_v23 = vmul.f32 %v931_v9, %v353_v48  ;;  %v6599_v1 = vpop.xlane.xlu0 %951  ;;  %v4340_v40 = vpop.eup %4339  ;;  %4357 = vpow2.f32 %v6420_v3  ;;  %v356_v33 = vld [vmem:[%s8329_s4 + $0x18] sm:$0xff] }
 0x2b6   : > { %v2564_v30 = vsel %vm699_vm1, %v4336_v36, 0.0  ;;  %v1132_v21 = vsel %vm1131_vm3, %v1099_v62, 0.0  ;;  %v4342_v44 = vpop.eup %4341  ;;  %4359 = vpow2.f32 %v6422_v60  ;;  %v1133_v9 = vsel %vm1131_vm3, %v1100_v54, 0.0 }
 0x2b7   : > { %v1848_v31 = vadd.f32 %v1847_v25, %v6587_v11  ;;  %v2655_v24 = vadd.f32 %v2654_v28, %v2564_v30  ;;  %v1234_v48 = vsel %vm1131_vm3, %v1202_v14, 0.0  ;;  %v6611_v50 = vpop.xlane.xlu1 %948  ;;  %v4344_v3 = vpop.eup %4343  ;;  %4361 = vpow2.f32 %v6427_v63  ;;  %1753 = vadd.xlane.f32.xlu0 %v6493_v55 }
 0x2b8   : > { %v2567_v62 = vsel %vm699_vm1, %v4338_v41, 0.0  ;;  %v1233_v60 = vsel %vm1131_vm3, %v1201_v23, 0.0  ;;  %v1102_v36 = vmul.f32 %v6519_v46, %v324_v15  ;;  %v4346_v54 = vpop.eup %4345  ;;  %4363 = vpow2.f32 %v6429_v61  ;;  %v323_v61 = vld [vmem:[%s8328_s3 + $0x10] sm:$0xff] }
 0x2b9   : > { %2565 = vadd.xlane.f32.xlu1 %v2564_v30  ;;  %v2656_v14 = vadd.f32 %v2655_v24, %v2567_v62  ;;  %v2570_v25 = vsel %vm699_vm1, %v4340_v40, 0.0  ;;  %v1134_v28 = vadd.f32 %v1133_v9, %v1132_v21  ;;  %v6620_v39 = vpop.xlane.xlu0 %957  ;;  %4365 = vpow2.f32 %v6431_v57  ;;  %v355_v41 = vld [vmem:[%s8329_s4 + $0x10] sm:$0xff]  ;;  %v4348_v23 = vpop.eup %4347  ;;  %v8754_v30 = vld [vmem:[#allocation37_spill] sm:$0xff] }
 0x2ba   : > { %v6624_v63 = vsel %vm699_vm1, %v4342_v44, 0.0  ;;  %v6627_v55 = vsel %vm699_vm1, %v4344_v3, 0.0  ;;  %v1204_v15 = vmul.f32 %v6519_v46, %v356_v33  ;;  %4367 = vpow2.f32 %v6438_v37  ;;  %v4350_v24 = vpop.eup %4349 }
 0x2bb   : > { %v2657_v57 = vadd.f32 %v2656_v14, %v2570_v25  ;;  %v1235_v40 = vadd.f32 %v1234_v48, %v1233_v60  ;;  %v6639_v21 = vsel %vm699_vm1, %v8754_v30, 0.0  ;;  %v6641_v44 = vpop.xlane.xlu1 %954  ;;  %4369 = vpow2.f32 %v6440_v53  ;;  %2568 = vadd.xlane.f32.xlu0 %v2567_v62  ;;  %v6649_v37 = vpop.eup %4351  ;;  %v8755_v30 = vld [vmem:[#allocation42_spill] sm:$0xff] }
 0x2bc   : > { %v6645_v9 = vsel %vm699_vm1, %v4346_v54, 0.0  ;;  %v1137_v33 = vsel %vm1131_vm3, %v1102_v36, 0.0  ;;  %v1849_v3 = vadd.f32 %v1848_v31, %v6639_v21  ;;  %4371 = vpow2.f32 %v6442_v42 }
 0x2bd   : > { %1756 = vadd.xlane.f32.xlu1 %v6517_v18  ;;  %v2658_v48 = vadd.f32 %v2657_v57, %v6624_v63  ;;  %v1101_v60 = vmul.f32 %v6539_v45, %v323_v61  ;;  %v1203_v53 = vmul.f32 %v6539_v45, %v355_v41  ;;  %v6656_v62 = vpop.xlane.xlu0 %963  ;;  %v6658_v54 = vpop.eup %4353  ;;  %4373 = vpow2.f32 %v6447_v10  ;;  %v326_v18 = vld [vmem:[%s8328_s3 + $0x28] sm:$0xff] }
 0x2be   : > { %v1238_v31 = vsel %vm1131_vm3, %v1204_v15, 0.0  ;;  %v6663_v36 = vsel %vm699_vm1, %v4348_v23, 0.0  ;;  %v1063_v42 = vadd.f32 %v1062_v0, %v6539_v45  ;;  %v6669_v14 = vpop.eup %4355  ;;  %4375 = vpow2.f32 %v6449_v59  ;;  %v358_v15 = vld [vmem:[%s8329_s4 + $0x28] sm:$0xff]  ;;  %v325_v45 = vld [vmem:[%s8328_s3 + $0x20] sm:$0xff] }
 0x2bf   : > { %v2659_v61 = vadd.f32 %v2658_v48, %v6627_v55  ;;  %v1135_v41 = vsel %vm1131_vm3, %v1101_v60, 0.0  ;;  %v1236_v10 = vsel %vm1131_vm3, %v1203_v53, 0.0  ;;  %v6681_v0 = vpop.xlane.xlu1 %960  ;;  %v6683_v23 = vpop.eup %4357  ;;  %4377 = vpow2.f32 %v6451_v6  ;;  %1759 = vadd.xlane.f32.xlu0 %v6534_v38  ;;  %v357_v60 = vld [vmem:[%s8329_s4 + $0x20] sm:$0xff] }
 0x2c0   : > { %v1136_v59 = vadd.f32 %v1135_v41, %v1134_v28  ;;  %v1237_v57 = vadd.f32 %v1236_v10, %v1235_v40  ;;  %v6689_v48 = vsel %vm699_vm1, %v8755_v30, 0.0  ;;  %v6694_v53 = vpop.eup %4359  ;;  %4379 = vpow2.f32 %v6457_v7 }
 0x2c1   : > { %2571 = vadd.xlane.f32.xlu1 %v2570_v25  ;;  %v2660_v32 = vadd.f32 %v2659_v61, %v6645_v9  ;;  %v1104_v6 = vmul.f32 %v6571_v52, %v326_v18  ;;  %v1850_v38 = vadd.f32 %v1849_v3, %v6689_v48  ;;  %v6700_v28 = vpop.xlane.xlu0 %969  ;;  %v6702_v40 = vpop.eup %4361  ;;  %4381 = vpow2.f32 %v6459_v51 }
 0x2c2   : > { %v1206_v41 = vmul.f32 %v6571_v52, %v358_v15  ;;  %v1064_v10 = vadd.f32 %v1063_v42, %v6519_v46  ;;  %v1103_v30 = vmul.f32 %v6589_v2, %v325_v45  ;;  %v6708_v7 = vpop.eup %4363  ;;  %4383 = vpow2.f32 %v6461_v29  ;;  %v328_v29 = vld [vmem:[%s8328_s3 + $0x38] sm:$0xff] }
 0x2c3   : > { %v2661_v25 = vadd.f32 %v2660_v32, %v6663_v36  ;;  %v1138_v18 = vadd.f32 %v1137_v33, %v1136_v59  ;;  %v1205_v3 = vmul.f32 %v6589_v2, %v357_v60  ;;  %v6713_v61 = vpop.xlane.xlu1 %966  ;;  %v6715_v20 = vpop.eup %4365  ;;  %2574 = vadd.xlane.f32.xlu0 %v6624_v63  ;;  %v6719_v51 = vsel %vm699_vm1, %v4350_v24, 0.0  ;;  %v359_v60 = vld [vmem:[%s8329_s4 + $0x30] sm:$0xff] }
 0x2c4   : > { %v1065_v46 = vadd.f32 %v1064_v10, %v6589_v2  ;;  %v1139_v42 = vsel %vm1131_vm3, %v1103_v30, 0.0  ;;  %v1239_v15 = vadd.f32 %v1238_v31, %v1237_v57  ;;  %v6726_v32 = vpop.eup %4367  ;;  %4385 = vpow2.f32 %v6465_v12  ;;  %v360_v2 = vld [vmem:[%s8329_s4 + $0x38] sm:$0xff]  ;;  %v327_v57 = vld [vmem:[%s8328_s3 + $0x30] sm:$0xff] }
 0x2c5   : > { %1762 = vadd.xlane.f32.xlu1 %v6550_v34  ;;  %v2662_v63 = vadd.f32 %v2661_v25, %v6719_v51  ;;  %v1140_v33 = vadd.f32 %v1139_v42, %v1138_v18  ;;  %v1240_v24 = vsel %vm1131_vm3, %v1205_v3, 0.0  ;;  %v6735_v31 = vpop.xlane.xlu0 %975  ;;  %v6737_v45 = vpop.eup %4369  ;;  %4387 = vpow2.f32 %v6475_v13  ;;  %v330_v18 = vld [vmem:[%s8328_s3 + $0x48] sm:$0xff] }
 0x2c6   : > { %v1141_v59 = vsel %vm1131_vm3, %v1104_v6, 0.0  ;;  %v1242_v12 = vsel %vm1131_vm3, %v1206_v41, 0.0  ;;  %v1241_v34 = vadd.f32 %v1240_v24, %v1239_v15  ;;  %v6748_v10 = vpop.eup %4371  ;;  %v1106_v30 = vmul.f32 %v6599_v1, %v328_v29  ;;  %v8756_v6 = vld [vmem:[#allocation53_spill] sm:$0xff]  ;;  %v362_v3 = vld [vmem:[%s8329_s4 + $0x48] sm:$0xff] }
 0x2c7   : > { %v6753_v13 = vsel %vm699_vm1, %v6649_v37, 0.0  ;;  %v6757_v41 = vsel %vm699_vm1, %v8756_v6, 0.0  ;;  %v1066_v25 = vadd.f32 %v1065_v46, %v6571_v52  ;;  %v6766_v42 = vpop.xlane.xlu1 %972  ;;  %v6768_v15 = vpop.eup %4373  ;;  %4389 = vpow2.f32 %v6477_v8  ;;  %1765 = vadd.xlane.f32.xlu0 %v6566_v17 }
 0x2c8   : > { %v1208_v37 = vmul.f32 %v6599_v1, %v360_v2  ;;  %v2663_v52 = vadd.f32 %v2662_v63, %v6753_v13  ;;  %v1851_v46 = vadd.f32 %v1850_v38, %v6757_v41  ;;  %v6775_v29 = vpop.eup %4375  ;;  %v1105_v6 = vmul.f32 %v6611_v50, %v327_v57 }
 0x2c9   : > { %2577 = vadd.xlane.f32.xlu1 %v6627_v55  ;;  %v1067_v24 = vadd.f32 %v1066_v25, %v6611_v50  ;;  %v1142_v49 = vadd.f32 %v1141_v59, %v1140_v33  ;;  %v1207_v26 = vmul.f32 %v6611_v50, %v359_v60  ;;  %v6781_v8 = vpop.eup %4377  ;;  %v1243_v17 = vadd.f32 %v1242_v12, %v1241_v34  ;;  %v329_v55 = vld [vmem:[%s8328_s3 + $0x40] sm:$0xff]  ;;  %v6795_v50 = vpop.xlane.xlu0 %981 }
 0x2ca   : > { %v1108_v2 = vmul.f32 %v6620_v39, %v330_v18  ;;  %v1210_v63 = vmul.f32 %v6620_v39, %v362_v3  ;;  %v6787_v38 = vsel %vm699_vm1, %v8757_v43, 0.0  ;;  %v361_v33 = vld [vmem:[%s8329_s4 + $0x40] sm:$0xff]  ;;  %v6797_v59 = vpop.eup %4379  ;;  %v1145_v12 = vsel %vm1131_vm3, %v1106_v30, 0.0 }
 0x2cb   : > { %8758 = vst [vmem:[#allocation31_spill] sm:$0xff] %v6797_v59  ;;  %v1143_v34 = vsel %vm1131_vm3, %v1105_v6, 0.0  ;;  %v1244_v57 = vsel %vm1131_vm3, %v1207_v26, 0.0  ;;  %v1852_v43 = vadd.f32 %v1851_v46, %v6787_v38  ;;  %v6803_v60 = vpop.xlane.xlu1 %978  ;;  %v6805_v25 = vpop.eup %4381  ;;  %2580 = vadd.xlane.f32.xlu0 %v6645_v9  ;;  %v1246_v18 = vsel %vm1131_vm3, %v1208_v37, 0.0  ;;  %v332_v26 = vld [vmem:[%s8328_s3 + $0x58] sm:$0xff] }
 0x2cc   : > { %v1144_v3 = vadd.f32 %v1143_v34, %v1142_v49  ;;  %v1245_v47 = vadd.f32 %v1244_v57, %v1243_v17  ;;  %v6811_v59 = vsel %vm699_vm1, %v6658_v54, 0.0  ;;  %v6816_v30 = vpop.eup %4383  ;;  %v1068_v9 = vadd.f32 %v1067_v24, %v6599_v1  ;;  %v364_v54 = vld [vmem:[%s8329_s4 + $0x58] sm:$0xff] }
 0x2cd   : > { %8759 = vst [vmem:[#allocation40_spill] sm:$0xff] %v6816_v30  ;;  %1768 = vadd.xlane.f32.xlu1 %v6587_v11  ;;  %v2664_v46 = vadd.f32 %v2663_v52, %v6811_v59  ;;  %v1107_v37 = vmul.f32 %v6641_v44, %v329_v55  ;;  %v1209_v49 = vmul.f32 %v6641_v44, %v361_v33  ;;  %v1149_v6 = vsel %vm1131_vm3, %v1108_v2, 0.0  ;;  %v331_v11 = vld [vmem:[%s8328_s3 + $0x50] sm:$0xff] }
 0x2ce   : > { %v1250_v17 = vsel %vm1131_vm3, %v1210_v63, 0.0  ;;  %v1146_v34 = vadd.f32 %v1145_v12, %v1144_v3  ;;  %v1247_v57 = vadd.f32 %v1246_v18, %v1245_v47  ;;  %v6831_v52 = vpop.eup %4385  ;;  %v1069_v1 = vadd.f32 %v1068_v9, %v6641_v44  ;;  %v363_v2 = vld [vmem:[%s8329_s4 + $0x50] sm:$0xff]  ;;  %v334_v3 = vld [vmem:[%s8328_s3 + $0x68] sm:$0xff]  ;;  %v6854_v9 = vpop.xlane.xlu0 %987 }
 0x2cf   : > { %8760 = vst [vmem:[#allocation43_spill] sm:$0xff] %v6831_v52  ;;  %v1147_v24 = vsel %vm1131_vm3, %v1107_v37, 0.0  ;;  %v1248_v55 = vsel %vm1131_vm3, %v1209_v49, 0.0  ;;  %v1110_v33 = vmul.f32 %v6656_v62, %v332_v26  ;;  %v6840_v63 = vpop.eup %4387  ;;  %1771 = vadd.xlane.f32.xlu0 %v6639_v21  ;;  %v1212_v18 = vmul.f32 %v6656_v62, %v364_v54  ;;  %v366_v26 = vld [vmem:[%s8329_s4 + $0x68] sm:$0xff]  ;;  %v6856_v37 = vpop.xlane.xlu1 %984  ;;  %v8762_v49 = vld [vmem:[#allocation54_spill] sm:$0xff] }
 0x2d0   : > { %8761 = vst [vmem:[#allocation38_spill] sm:$0xff] %v6840_v63  ;;  %v1148_v47 = vadd.f32 %v1147_v24, %v1146_v34  ;;  %v1249_v12 = vadd.f32 %v1248_v55, %v1247_v57  ;;  %v6846_v44 = vsel %vm699_vm1, %v6669_v14, 0.0  ;;  %v6862_v14 = vsel %vm699_vm1, %v8762_v49, 0.0 }
 0x2d1   : > { %2583 = vadd.xlane.f32.xlu1 %v6663_v36  ;;  %v2665_v21 = vadd.f32 %v2664_v46, %v6846_v44  ;;  %v1070_v54 = vadd.f32 %v1069_v1, %v6620_v39  ;;  %v1109_v34 = vmul.f32 %v6681_v0, %v331_v11  ;;  %v6866_v57 = vpop.eup %4389  ;;  %v1853_v24 = vadd.f32 %v1852_v43, %v6862_v14  ;;  %v333_v39 = vld [vmem:[%s8328_s3 + $0x60] sm:$0xff] }
 0x2d2   : > { %v1150_v55 = vadd.f32 %v1149_v6, %v1148_v47  ;;  %v1211_v63 = vmul.f32 %v6681_v0, %v363_v2  ;;  %v1251_v52 = vadd.f32 %v1250_v17, %v1249_v12  ;;  %v1112_v30 = vmul.f32 %v6700_v28, %v334_v3  ;;  %v8763_v17 = vld [vmem:[#allocation62_spill] sm:$0xff]  ;;  %v368_v12 = vld [vmem:[%s8329_s4 + $0x78] sm:$0xff] }
 0x2d3   : > { %v1071_v36 = vadd.f32 %v1070_v54, %v6681_v0  ;;  %v1151_v46 = vsel %vm1131_vm3, %v1109_v34, 0.0  ;;  %v1214_v49 = vmul.f32 %v6700_v28, %v366_v26  ;;  %2586 = vadd.xlane.f32.xlu0 %v6719_v51  ;;  %v1153_v43 = vsel %vm1131_vm3, %v1110_v33, 0.0  ;;  %v365_v1 = vld [vmem:[%s8329_s4 + $0x60] sm:$0xff]  ;;  %v6903_v26 = vpop.xlane.xlu0 %993  ;;  %v6905_v54 = vpop.xlane.xlu1 %990 }
 0x2d4   : > { %v1152_v6 = vadd.f32 %v1151_v46, %v1150_v55  ;;  %v1252_v11 = vsel %vm1131_vm3, %v1211_v63, 0.0  ;;  %v6882_v0 = vsel %vm699_vm1, %v8763_v17, 0.0  ;;  %v1254_v2 = vsel %vm1131_vm3, %v1212_v18, 0.0  ;;  %v336_v63 = vld [vmem:[%s8328_s3 + $0x78] sm:$0xff]  ;;  %v370_v17 = vld [vmem:[%s8329_s4 + $0x88] sm:$0xff] }
 0x2d5   : > { %1774 = vadd.xlane.f32.xlu1 %v6689_v48  ;;  %v1253_v47 = vadd.f32 %v1252_v11, %v1251_v52  ;;  %v1854_v51 = vadd.f32 %v1853_v24, %v6882_v0  ;;  %v6892_v33 = vsel %vm699_vm1, %v6683_v23, 0.0  ;;  %v1072_v48 = vadd.f32 %v1071_v36, %v6656_v62 }
 0x2d6   : > { %v2666_v3 = vadd.f32 %v2665_v21, %v6892_v33  ;;  %v1111_v52 = vmul.f32 %v6713_v61, %v333_v39  ;;  %v1154_v18 = vadd.f32 %v1153_v43, %v1152_v6  ;;  %v1157_v23 = vsel %vm1131_vm3, %v1112_v30, 0.0  ;;  %v335_v39 = vld [vmem:[%s8328_s3 + $0x70] sm:$0xff]  ;;  %v8764_v6 = vld [vmem:[#allocation55_spill] sm:$0xff] }
 0x2d7   : > { %v1258_v34 = vsel %vm1131_vm3, %v1214_v49, 0.0  ;;  %v1213_v24 = vmul.f32 %v6713_v61, %v365_v1  ;;  %v1255_v55 = vadd.f32 %v1254_v2, %v1253_v47  ;;  %1777 = vadd.xlane.f32.xlu0 %v6757_v41  ;;  %v1073_v21 = vadd.f32 %v1072_v48, %v6713_v61  ;;  %v367_v30 = vld [vmem:[%s8329_s4 + $0x70] sm:$0xff]  ;;  %v338_v41 = vld [vmem:[%s8328_s3 + $0x88] sm:$0xff] }
 0x2d8   : > { %v1155_v62 = vsel %vm1131_vm3, %v1111_v52, 0.0  ;;  %v1114_v36 = vmul.f32 %v6735_v31, %v336_v63  ;;  %v1216_v46 = vmul.f32 %v6735_v31, %v368_v12  ;;  %v6928_v43 = vsel %vm699_vm1, %v6694_v53, 0.0 }
 0x2d9   : > { %2589 = vadd.xlane.f32.xlu1 %v6753_v13  ;;  %v1156_v61 = vadd.f32 %v1155_v62, %v1154_v18  ;;  %v1256_v49 = vsel %vm1131_vm3, %v1213_v24, 0.0  ;;  %v6932_v11 = vsel %vm699_vm1, %v8764_v6, 0.0  ;;  %v2667_v2 = vadd.f32 %v2666_v3, %v6928_v43 }
 0x2da   : > { %v1257_v1 = vadd.f32 %v1256_v49, %v1255_v55  ;;  %v1855_v13 = vadd.f32 %v1854_v51, %v6932_v11  ;;  %v1074_v47 = vadd.f32 %v1073_v21, %v6700_v28  ;;  %v1113_v63 = vmul.f32 %v6766_v42, %v335_v39  ;;  %v337_v28 = vld [vmem:[%s8328_s3 + $0x80] sm:$0xff] }
 0x2db   : > { %v1158_v12 = vadd.f32 %v1157_v23, %v1156_v61  ;;  %v1215_v53 = vmul.f32 %v6766_v42, %v367_v30  ;;  %v1116_v48 = vmul.f32 %v6795_v50, %v338_v41  ;;  %2592 = vadd.xlane.f32.xlu0 %v6811_v59  ;;  %v1218_v24 = vmul.f32 %v6795_v50, %v370_v17  ;;  %v369_v51 = vld [vmem:[%s8329_s4 + $0x80] sm:$0xff]  ;;  %v6956_v23 = vpop.xlane.xlu0 %999  ;;  %v6958_v59 = vpop.xlane.xlu1 %996 }
 0x2dc   : > { %v1075_v52 = vadd.f32 %v1074_v47, %v6766_v42  ;;  %v1259_v18 = vadd.f32 %v1258_v34, %v1257_v1  ;;  %v6948_v3 = vsel %vm699_vm1, %v6388_v4, 0.0  ;;  %v1161_v42 = vsel %vm1131_vm3, %v1114_v36, 0.0 }
 0x2dd   : > { %1780 = vadd.xlane.f32.xlu1 %v6787_v38  ;;  %v1159_v34 = vsel %vm1131_vm3, %v1113_v63, 0.0  ;;  %v1260_v4 = vsel %vm1131_vm3, %v1215_v53, 0.0  ;;  %v1856_v55 = vadd.f32 %v1855_v13, %v6948_v3  ;;  %v1262_v21 = vsel %vm1131_vm3, %v1216_v46, 0.0  ;;  %v340_v38 = vld [vmem:[%s8328_s3 + $0x98] sm:$0xff]  ;;  %v371_v63 = vld [vmem:[%s8329_s4 + $0x90] sm:$0xff] }
 0x2de   : > { %v1160_v62 = vadd.f32 %v1159_v34, %v1158_v12  ;;  %v1261_v39 = vadd.f32 %v1260_v4, %v1259_v18  ;;  %v6968_v30 = vsel %vm699_vm1, %v6702_v40, 0.0  ;;  %v1076_v41 = vadd.f32 %v1075_v52, %v6735_v31  ;;  %v372_v46 = vld [vmem:[%s8329_s4 + $0x98] sm:$0xff]  ;;  %v339_v31 = vld [vmem:[%s8328_s3 + $0x90] sm:$0xff] }
 0x2df   : > { %v2668_v36 = vadd.f32 %v2667_v2, %v6968_v30  ;;  %v1115_v61 = vmul.f32 %v6803_v60, %v337_v28  ;;  %v1217_v49 = vmul.f32 %v6803_v60, %v369_v51  ;;  %1783 = vadd.xlane.f32.xlu0 %v6862_v14  ;;  %v1165_v40 = vsel %vm1131_vm3, %v1116_v48, 0.0  ;;  %v7005_v18 = vpop.xlane.xlu0 %1005 }
 0x2e0   : > { %v1266_v6 = vsel %vm1131_vm3, %v1218_v24, 0.0  ;;  %v1162_v17 = vadd.f32 %v1161_v42, %v1160_v62  ;;  %v1263_v1 = vadd.f32 %v1262_v21, %v1261_v39  ;;  %v1077_v2 = vadd.f32 %v1076_v41, %v6803_v60  ;;  %v342_v60 = vld [vmem:[%s8328_s3 + $0xa8] sm:$0xff]  ;;  %v7007_v24 = vpop.xlane.xlu1 %1002 }
 0x2e1   : > { %2595 = vadd.xlane.f32.xlu1 %v6846_v44  ;;  %v1163_v13 = vsel %vm1131_vm3, %v1115_v61, 0.0  ;;  %v1264_v47 = vsel %vm1131_vm3, %v1217_v49, 0.0  ;;  %v1118_v14 = vmul.f32 %v6854_v9, %v340_v38  ;;  %v1220_v48 = vmul.f32 %v6854_v9, %v372_v46  ;;  %v374_v44 = vld [vmem:[%s8329_s4 + $0xa8] sm:$0xff] }
 0x2e2   : > { %v1164_v12 = vadd.f32 %v1163_v13, %v1162_v17  ;;  %v1265_v53 = vadd.f32 %v1264_v47, %v1263_v1  ;;  %v6997_v52 = vsel %vm699_vm1, %v6708_v7, 0.0  ;;  %v7012_v51 = vsel %vm699_vm1, %v6395_v5, 0.0 }
 0x2e3   : > { %v2669_v28 = vadd.f32 %v2668_v36, %v6997_v52  ;;  %v1078_v7 = vadd.f32 %v1077_v2, %v6795_v50  ;;  %v1117_v42 = vmul.f32 %v6856_v37, %v339_v31  ;;  %2598 = vadd.xlane.f32.xlu0 %v6892_v33  ;;  %v1857_v34 = vadd.f32 %v1856_v55, %v7012_v51  ;;  %v341_v33 = vld [vmem:[%s8328_s3 + $0xa0] sm:$0xff]  ;;  %v7052_v13 = vpop.xlane.xlu0 %1011 }
 0x2e4   : > { %v1166_v4 = vadd.f32 %v1165_v40, %v1164_v12  ;;  %v1219_v21 = vmul.f32 %v6856_v37, %v371_v63  ;;  %v1267_v62 = vadd.f32 %v1266_v6, %v1265_v53  ;;  %v1120_v5 = vmul.f32 %v6903_v26, %v342_v60  ;;  %v344_v6 = vld [vmem:[%s8328_s3 + $0xb8] sm:$0xff]  ;;  %v343_v60 = vld [vmem:[%s8328_s3 + $0xb0] sm:$0xff] }
 0x2e5   : > { %1786 = vadd.xlane.f32.xlu1 %v6882_v0  ;;  %v1079_v39 = vadd.f32 %v1078_v7, %v6856_v37  ;;  %v1167_v38 = vsel %vm1131_vm3, %v1117_v42, 0.0  ;;  %v1222_v50 = vmul.f32 %v6903_v26, %v374_v44  ;;  %v1169_v55 = vsel %vm1131_vm3, %v1118_v14, 0.0  ;;  %v373_v37 = vld [vmem:[%s8329_s4 + $0xa0] sm:$0xff]  ;;  %v346_v44 = vld [vmem:[%s8328_s3 + $0xc8] sm:$0xff]  ;;  %v8765_v42 = vld [vmem:[#allocation56_spill] sm:$0xff] }
 0x2e6   : > { %v1168_v36 = vadd.f32 %v1167_v38, %v1166_v4  ;;  %v1268_v41 = vsel %vm1131_vm3, %v1219_v21, 0.0  ;;  %v7031_v0 = vsel %vm699_vm1, %v6404_v58, 0.0  ;;  %v1270_v61 = vsel %vm1131_vm3, %v1220_v48, 0.0  ;;  %v376_v58 = vld [vmem:[%s8329_s4 + $0xb8] sm:$0xff]  ;;  %v378_v4 = vld [vmem:[%s8329_s4 + $0xc8] sm:$0xff] }
 0x2e7   : > { %v1269_v49 = vadd.f32 %v1268_v41, %v1267_v62  ;;  %v1858_v46 = vadd.f32 %v1857_v34, %v7031_v0  ;;  %v7040_v40 = vsel %vm699_vm1, %v6715_v20, 0.0  ;;  %1789 = vadd.xlane.f32.xlu0 %v6932_v11  ;;  %v1080_v1 = vadd.f32 %v1079_v39, %v6854_v9  ;;  %v7054_v20 = vpop.xlane.xlu1 %1008 }
 0x2e8   : > { %v2670_v17 = vadd.f32 %v2669_v28, %v7040_v40  ;;  %v1119_v31 = vmul.f32 %v6905_v54, %v341_v33  ;;  %v1170_v2 = vadd.f32 %v1169_v55, %v1168_v36  ;;  %v1173_v47 = vsel %vm1131_vm3, %v1120_v5, 0.0 }
 0x2e9   : > { %2601 = vadd.xlane.f32.xlu1 %v6928_v43  ;;  %v1274_v14 = vsel %vm1131_vm3, %v1222_v50, 0.0  ;;  %v1221_v63 = vmul.f32 %v6905_v54, %v373_v37  ;;  %v1271_v11 = vadd.f32 %v1270_v61, %v1269_v49  ;;  %v1081_v12 = vadd.f32 %v1080_v1, %v6905_v54  ;;  %v375_v43 = vld [vmem:[%s8329_s4 + $0xb0] sm:$0xff]  ;;  %v7105_v37 = vpop.xlane.xlu0 %1017 }
 0x2ea   : > { %v1171_v9 = vsel %vm1131_vm3, %v1119_v31, 0.0  ;;  %v1122_v53 = vmul.f32 %v6956_v23, %v344_v6  ;;  %v1224_v48 = vmul.f32 %v6956_v23, %v376_v58  ;;  %v7076_v7 = vsel %vm699_vm1, %v6726_v32, 0.0  ;;  %v348_v31 = vld [vmem:[%s8328_s3 + $0xd8] sm:$0xff] }
 0x2eb   : > { %v1172_v28 = vadd.f32 %v1171_v9, %v1170_v2  ;;  %v1272_v54 = vsel %vm1131_vm3, %v1221_v63, 0.0  ;;  %v7080_v34 = vsel %vm699_vm1, %v8765_v42, 0.0  ;;  %2604 = vadd.xlane.f32.xlu0 %v6968_v30  ;;  %v2671_v62 = vadd.f32 %v2670_v17, %v7076_v7  ;;  %v7107_v61 = vpop.xlane.xlu1 %1014  ;;  %v380_v63 = vld [vmem:[%s8329_s4 + $0xd8] sm:$0xff] }
 0x2ec   : > { %v1273_v21 = vadd.f32 %v1272_v54, %v1271_v11  ;;  %v1859_v39 = vadd.f32 %v1858_v46, %v7080_v34  ;;  %v1082_v38 = vadd.f32 %v1081_v12, %v6903_v26  ;;  %v1121_v32 = vmul.f32 %v6958_v59, %v343_v60  ;;  %v345_v26 = vld [vmem:[%s8328_s3 + $0xc0] sm:$0xff] }
 0x2ed   : > { %1792 = vadd.xlane.f32.xlu1 %v6948_v3  ;;  %v1174_v5 = vadd.f32 %v1173_v47, %v1172_v28  ;;  %v1223_v50 = vmul.f32 %v6958_v59, %v375_v43  ;;  %v1124_v33 = vmul.f32 %v7005_v18, %v346_v44  ;;  %v1226_v30 = vmul.f32 %v7005_v18, %v378_v4  ;;  %v377_v3 = vld [vmem:[%s8329_s4 + $0xc0] sm:$0xff]  ;;  %v379_v43 = vld [vmem:[%s8329_s4 + $0xd0] sm:$0xff] }
 0x2ee   : > { %v1083_v55 = vadd.f32 %v1082_v38, %v6958_v59  ;;  %v1275_v36 = vadd.f32 %v1274_v14, %v1273_v21  ;;  %v7097_v41 = vsel %vm699_vm1, %v6424_v56, 0.0  ;;  %v1177_v59 = vsel %vm1131_vm3, %v1122_v53, 0.0 }
 0x2ef   : > { %v1175_v49 = vsel %vm1131_vm3, %v1121_v32, 0.0  ;;  %v1276_v46 = vsel %vm1131_vm3, %v1223_v50, 0.0  ;;  %v1860_v56 = vadd.f32 %v1859_v39, %v7097_v41  ;;  %1795 = vadd.xlane.f32.xlu0 %v7012_v51  ;;  %v1278_v6 = vsel %vm1131_vm3, %v1224_v48, 0.0  ;;  %v1021_v4 = vpop.xlane.xlu1 %1020  ;;  %v350_v32 = vld [vmem:[%s8328_s3 + $0xe8] sm:$0xff] }
 0x2f0   : > { %v1176_v58 = vadd.f32 %v1175_v49, %v1174_v5  ;;  %v1277_v17 = vadd.f32 %v1276_v46, %v1275_v36  ;;  %v7117_v1 = vsel %vm699_vm1, %v6737_v45, 0.0  ;;  %v1084_v47 = vadd.f32 %v1083_v55, %v6956_v23 }
 0x2f1   : > { %2607 = vadd.xlane.f32.xlu1 %v6997_v52  ;;  %v2672_v2 = vadd.f32 %v2671_v62, %v7117_v1  ;;  %v1123_v51 = vmul.f32 %v7007_v24, %v345_v26  ;;  %v1225_v14 = vmul.f32 %v7007_v24, %v377_v3  ;;  %v1181_v45 = vsel %vm1131_vm3, %v1124_v33, 0.0  ;;  %v347_v52 = vld [vmem:[%s8328_s3 + $0xd0] sm:$0xff]  ;;  %v8766_v62 = vld [vmem:[#allocation65_spill] sm:$0xff]  ;;  %v382_v3 = vld [vmem:[%s8329_s4 + $0xe8] sm:$0xff] }
 0x2f2   : > { %v1282_v11 = vsel %vm1131_vm3, %v1226_v30, 0.0  ;;  %v1178_v12 = vadd.f32 %v1177_v59, %v1176_v58  ;;  %v1279_v9 = vadd.f32 %v1278_v6, %v1277_v17  ;;  %v1085_v23 = vadd.f32 %v1084_v47, %v7007_v24  ;;  %v7148_v24 = vpop.xlane.xlu0 %1023  ;;  %v381_v59 = vld [vmem:[%s8329_s4 + $0xe0] sm:$0xff]  ;;  %v352_v6 = vld [vmem:[%s8328_s3 + $0xf8] sm:$0xff] }
 0x2f3   : > { %v1179_v53 = vsel %vm1131_vm3, %v1123_v51, 0.0  ;;  %v1280_v48 = vsel %vm1131_vm3, %v1225_v14, 0.0  ;;  %v1126_v60 = vmul.f32 %v7052_v13, %v348_v31  ;;  %2610 = vadd.xlane.f32.xlu0 %v7040_v40  ;;  %v1228_v54 = vmul.f32 %v7052_v13, %v380_v63 }
 0x2f4   : > { %v1180_v44 = vadd.f32 %v1179_v53, %v1178_v12  ;;  %v1281_v28 = vadd.f32 %v1280_v48, %v1279_v9  ;;  %v7146_v42 = vsel %vm699_vm1, %v6748_v10, 0.0  ;;  %v1806_v39 = vsel %vm699_vm1, %v8766_v62, 0.0  ;;  %v8767_v62 = vld [vmem:[#allocation75_spill] sm:$0xff] }
 0x2f5   : > { %1798 = vadd.xlane.f32.xlu1 %v7031_v0  ;;  %v2673_v21 = vadd.f32 %v2672_v2, %v7146_v42  ;;  %v1086_v40 = vadd.f32 %v1085_v23, %v7005_v18  ;;  %v1125_v38 = vmul.f32 %v7054_v20, %v347_v52  ;;  %v1861_v10 = vadd.f32 %v1860_v56, %v1806_v39  ;;  %v349_v18 = vld [vmem:[%s8328_s3 + $0xe0] sm:$0xff] }
 0x2f6   : > { %v1182_v5 = vadd.f32 %v1181_v45, %v1180_v44  ;;  %v1227_v50 = vmul.f32 %v7054_v20, %v379_v43  ;;  %v1283_v33 = vadd.f32 %v1282_v11, %v1281_v28  ;;  %4391 = vpow2.f32 %v6484_v35  ;;  %v3233_v2 = vpop.xlane.xlu0 %3232  ;;  %v351_v11 = vld [vmem:[%s8328_s3 + $0xf0] sm:$0xff] }
 0x2f7   : > { %v1185_v0 = vsel %vm1131_vm3, %v1126_v60, 0.0  ;;  %v1087_v55 = vadd.f32 %v1086_v40, %v7054_v20  ;;  %v1183_v36 = vsel %vm1131_vm3, %v1125_v38, 0.0  ;;  %1801 = vadd.xlane.f32.xlu0 %v7080_v34  ;;  %v1128_v35 = vmul.f32 %v7105_v37, %v350_v32 }
 0x2f8   : > { %v1184_v30 = vadd.f32 %v1183_v36, %v1182_v5  ;;  %v1284_v26 = vsel %vm1131_vm3, %v1227_v50, 0.0  ;;  %v7175_v20 = vsel %vm699_vm1, %v6444_v22, 0.0  ;;  %v1286_v34 = vsel %vm1131_vm3, %v1228_v54, 0.0 }
 0x2f9   : > { %2613 = vadd.xlane.f32.xlu1 %v7076_v7  ;;  %v1285_v49 = vadd.f32 %v1284_v26, %v1283_v33  ;;  %v1862_v46 = vadd.f32 %v1861_v10, %v7175_v20  ;;  %v2621_v56 = vsel %vm699_vm1, %v6768_v15, 0.0  ;;  %v1088_v58 = vadd.f32 %v1087_v55, %v7052_v13  ;;  %v3236_v7 = vpop.xlane.xlu1 %3235  ;;  %v8768_v55 = vld [vmem:[#allocation34_spill] sm:$0xff]  ;;  %v8770_v26 = vld [vmem:[#allocation35_spill] sm:$0xff] }
 0x2fa   : > { %v2674_v22 = vadd.f32 %v2673_v21, %v2621_v56  ;;  %v1127_v17 = vmul.f32 %v7107_v61, %v349_v18  ;;  %v1186_v31 = vadd.f32 %v1185_v0, %v1184_v30  ;;  %4393 = vpow2.f32 %v6489_v16  ;;  %v383_v16 = vld [vmem:[%s8329_s4 + $0xf0] sm:$0xff]  ;;  %v3227_v40 = vpop.xlane.xlu0 %3226  ;;  %v8769_v18 = vld [vmem:[#allocation30_spill] sm:$0xff] }
 0x2fb   : > { %v1230_v47 = vmul.f32 %v7105_v37, %v382_v3  ;;  %v1229_v51 = vmul.f32 %v7107_v61, %v381_v59  ;;  %v1287_v14 = vadd.f32 %v1286_v34, %v1285_v49  ;;  %2616 = vadd.xlane.f32.xlu0 %v7117_v1  ;;  %v1189_v15 = vsel %vm1131_vm3, %v1128_v35, 0.0  ;;  %v8771_v59 = vld [vmem:[#allocation31_spill] sm:$0xff] }
 0x2fc   : > { %v1089_v63 = vadd.f32 %v1088_v58, %v7107_v61  ;;  %v1187_v13 = vsel %vm1131_vm3, %v1127_v17, 0.0  ;;  %v1130_v45 = vmul.f32 %v7148_v24, %v352_v6  ;;  %v384_v61 = vld [vmem:[%s8329_s4 + $0xf8] sm:$0xff]  ;;  %v2624_v9 = vsel %vm699_vm1, %v6775_v29, 0.0  ;;  %v8772_v49 = vld [vmem:[#allocation79_spill] sm:$0xff] }
 0x2fd   : > { %1804 = vadd.xlane.f32.xlu1 %v7097_v41  ;;  %v1188_v12 = vadd.f32 %v1187_v13, %v1186_v31  ;;  %v1288_v1 = vsel %vm1131_vm3, %v1229_v51, 0.0  ;;  %v1812_v52 = vsel %vm699_vm1, %v6455_v19, 0.0  ;;  %v2675_v53 = vadd.f32 %v2674_v22, %v2624_v9  ;;  %v3230_v38 = vpop.xlane.xlu1 %3229  ;;  %v8774_v13 = vld [vmem:[#allocation40_spill] sm:$0xff] }
 0x2fe   : > { %v1289_v23 = vadd.f32 %v1288_v1, %v1287_v14  ;;  %v1863_v48 = vadd.f32 %v1862_v46, %v1812_v52  ;;  %v1090_v60 = vadd.f32 %v1089_v63, %v7105_v37  ;;  %v1290_v41 = vsel %vm1131_vm3, %v1230_v47, 0.0 }
 0x2ff   : > { %v1129_v43 = vmul.f32 %v1021_v4, %v351_v11  ;;  %v1190_v44 = vadd.f32 %v1189_v15, %v1188_v12  ;;  %v1231_v28 = vmul.f32 %v1021_v4, %v383_v16  ;;  %1807 = vadd.xlane.f32.xlu0 %v1806_v39  ;;  %v1232_v54 = vmul.f32 %v7148_v24, %v384_v61 }
 0x300   : > { %v1091_v21 = vadd.f32 %v1090_v60, %v1021_v4  ;;  %v1815_v29 = vsel %vm699_vm1, %v8767_v62, 0.0  ;;  %v2627_v19 = vsel %vm699_vm1, %v6781_v8, 0.0  ;;  %v7220_v32 = vpop.eup %4391  ;;  %v1193_v37 = vsel %vm1131_vm3, %v1130_v45, 0.0  ;;  %v8775_v45 = vld [vmem:[#allocation77_spill] sm:$0xff]  ;;  %v8778_v62 = vld [vmem:[#allocation38_spill] sm:$0xff] }
 0x301   : > { %2619 = vadd.xlane.f32.xlu1 %v7146_v42  ;;  %v1191_v10 = vsel %vm1131_vm3, %v1129_v43, 0.0  ;;  %v1864_v39 = vadd.f32 %v1863_v48, %v1815_v29  ;;  %v2676_v5 = vadd.f32 %v2675_v53, %v2627_v19  ;;  %v1291_v33 = vadd.f32 %v1290_v41, %v1289_v23  ;;  %v8776_v53 = vld [vmem:[#allocation82_spill] sm:$0xff] }
 0x302   : > { %v1092_v4 = vadd.f32 %v1091_v21, %v7148_v24  ;;  %v1192_v50 = vadd.f32 %v1191_v10, %v1190_v44  ;;  %v3264_v0 = vmax.f32 %v6546_v27, %v3236_v7  ;;  %v1292_v8 = vsel %vm1131_vm3, %v1231_v28, 0.0 }
 0x303   : > { %v3263_v36 = vmax.f32 %v8768_v55, %v3233_v2  ;;  %v3261_v30 = vmax.f32 %v8769_v18, %v3227_v40  ;;  %v3262_v42 = vmax.f32 %v8770_v26, %v3230_v38  ;;  %2622 = vadd.xlane.f32.xlu0 %v2621_v56  ;;  %v2630_v34 = vsel %vm699_vm1, %v8771_v59, 0.0  ;;  %v8773_v2 = vld [vmem:[#allocation84_spill] sm:$0xff]  ;;  %v8781_v55 = vld [vmem:[#allocation85_spill] sm:$0xff] }
 0x304   : > { %v1093_v3 = vrot.slane %v1092_v4, 4  ;;  %v1194_v35 = vadd.f32 %v1193_v37, %v1192_v50  ;;  %v1818_v24 = vsel %vm699_vm1, %v8772_v49, 0.0  ;;  %v4394_v46 = vpop.eup %4393  ;;  %v2677_v6 = vadd.f32 %v2676_v5, %v2630_v34 }
 0x305   : > { %1810 = vadd.xlane.f32.xlu1 %v7175_v20  ;;  %v3266_v27 = vmax.f32 %v3263_v36, %v3264_v0  ;;  %v1865_v22 = vadd.f32 %v1864_v39, %v1818_v24  ;;  %v3265_v58 = vmax.f32 %v3261_v30, %v3262_v42  ;;  %v1293_v31 = vadd.f32 %v1292_v8, %v1291_v33 }
 0x306   : > { %v1094_v17 = vadd.f32 %v1093_v3, %v1092_v4  ;;  %v1821_v56 = vsel %vm699_vm1, %v8773_v2, 0.0  ;;  %v2633_v7 = vsel %vm699_vm1, %v6805_v25, 0.0  ;;  %v1195_v63 = vrot.slane %v1194_v35, 4  ;;  %v8780_v4 = vld [vmem:[#allocation90_spill] sm:$0xff]  ;;  %v8785_v2 = vld [vmem:[#allocation63_spill] sm:$0xff] }
 0x307   : > { %v3267_v47 = vmax.f32 %v3265_v58, %v3266_v27  ;;  %v1866_v51 = vadd.f32 %v1865_v22, %v1821_v56  ;;  %v2678_v14 = vadd.f32 %v2677_v6, %v2633_v7  ;;  %1813 = vadd.xlane.f32.xlu0 %v1812_v52  ;;  %v2636_v20 = vsel %vm699_vm1, %v8774_v13, 0.0  ;;  %v8777_v52 = vld [vmem:[#allocation43_spill] sm:$0xff]  ;;  %v8782_v3 = vld [vmem:[#allocation86_spill] sm:$0xff]  ;;  %v8787_v13 = vld [vmem:[#allocation68_spill] sm:$0xff] }
 0x308   : > { %v1095_v15 = vrot.slane %v1094_v17, 2  ;;  %v1824_v11 = vsel %vm699_vm1, %v8775_v45, 0.0  ;;  %v1294_v16 = vsel %vm1131_vm3, %v1232_v54, 0.0  ;;  %v1827_v48 = vsel %vm699_vm1, %v8776_v53, 0.0  ;;  %v8779_v54 = vld [vmem:[#allocation89_spill] sm:$0xff]  ;;  %v8784_v58 = vld [vmem:[#allocation3_spill] sm:$0xff] }
 0x309   : > { %2625 = vadd.xlane.f32.xlu1 %v2624_v9  ;;  %v3268_v12 = vrot.slane %v3267_v47, 4  ;;  %v2679_v1 = vadd.f32 %v2678_v14, %v2636_v20  ;;  %v1867_v61 = vadd.f32 %v1866_v51, %v1824_v11  ;;  %v1295_v25 = vadd.f32 %v1294_v16, %v1293_v31  ;;  %v8786_v51 = vld [vmem:[#allocation2_spill] sm:$0xff]  ;;  %v8788_v16 = vld [vmem:[#allocation8_spill] sm:$0xff] }
 0x30a   : > { %v1096_v23 = vadd.f32 %v1095_v15, %v1094_v17  ;;  %v2639_v60 = vsel %vm699_vm1, %v8777_v52, 0.0  ;;  %v1196_v21 = vadd.f32 %v1195_v63, %v1194_v35  ;;  %v7251_v9 = vsel %vm699_vm1, %v8778_v62, 0.0  ;;  %v8790_v53 = vld [vmem:[#allocation6_spill] sm:$0xff]  ;;  %v8794_v62 = vld [vmem:[#allocation5_spill] sm:$0xff] }
 0x30b   : > { %v3269_v41 = vmax.f32 %v3267_v47, %v3268_v12  ;;  %v1868_v43 = vadd.f32 %v1867_v61, %v1827_v48  ;;  %v2680_v44 = vadd.f32 %v2679_v1, %v2639_v60  ;;  %2628 = vadd.xlane.f32.xlu0 %v2627_v19  ;;  %v7255_v40 = vsel %vm699_vm1, %v8779_v54, 0.0  ;;  %v8789_v1 = vld [vmem:[#allocation64_spill] sm:$0xff] }
 0x30c   : > { %v1097_v28 = vrot.slane %v1096_v23, 1  ;;  %v1296_v5 = vrot.slane %v1295_v25, 4  ;;  %v7261_v50 = vsel %vm699_vm1, %v8780_v4, 0.0  ;;  %v7265_v19 = vsel %vm699_vm1, %v6866_v57, 0.0  ;;  %v8797_v4 = vld [vmem:[#allocation9_spill] sm:$0xff] }
 0x30d   : > { %1816 = vadd.xlane.f32.xlu1 %v1815_v29  ;;  %v3270_v38 = vrot.slane %v3269_v41, 2  ;;  %v2681_v37 = vadd.f32 %v2680_v44, %v7251_v9  ;;  %v1869_v10 = vadd.f32 %v1868_v43, %v7255_v40  ;;  %v1197_v8 = vrot.slane %v1196_v21, 2  ;;  %v8792_v44 = vld [vmem:[#allocation7_spill] sm:$0xff] }
 0x30e   : > { %v1098_v39 = vadd.f32 %v1097_v28, %v1096_v23  ;;  %v7271_v36 = vsel %vm699_vm1, %v8781_v55, 0.0  ;;  %v7275_v18 = vsel %vm699_vm1, %v7220_v32, 0.0  ;;  %v1297_v42 = vadd.f32 %v1296_v5, %v1295_v25  ;;  %v8793_v28 = vld [vmem:[#allocation66_spill] sm:$0xff] }
 0x30f   : > { %v3271_v33 = vmax.f32 %v3269_v41, %v3270_v38  ;;  %v1870_v0 = vadd.f32 %v1869_v10, %v7261_v50  ;;  %v2682_v29 = vadd.f32 %v2681_v37, %v7265_v19  ;;  %1819 = vadd.xlane.f32.xlu0 %v1818_v24  ;;  %v7281_v35 = vsel %vm699_vm1, %v8782_v3, 0.0  ;;  %v8795_v38 = vld [vmem:[#allocation14_spill] sm:$0xff]  ;;  %v8796_v10 = vld [vmem:[#allocation11_spill] sm:$0xff] }
 0x310   : > { %4395 = vrcp.f32 %v1098_v39  ;;  %v7284_v59 = vsel %vm699_vm1, %v4394_v46, 0.0  ;;  %v1298_v27 = vrot.slane %v1297_v42, 2  ;;  %v8783_v46 = vld [vmem:[#allocation44_spill] sm:$0xff] }
 0x311   : > { %2631 = vadd.xlane.f32.xlu1 %v2630_v34  ;;  %v3272_v57 = vrot.slane %v3271_v33, 1  ;;  %v1871_v30 = vadd.f32 %v1870_v0, %v7271_v36  ;;  %v2683_v26 = vadd.f32 %v2682_v29, %v7275_v18  ;;  %v1198_v34 = vadd.f32 %v1197_v8, %v1196_v21  ;;  %v8798_v0 = vld [vmem:[#allocation12_spill] sm:$0xff] }
 0x313   : > { %v7287_v49 = vadd.f32 %v1871_v30, %v7281_v35  ;;  %v7290_v32 = vadd.f32 %v2683_v26, %v7284_v59  ;;  %2634 = vadd.xlane.f32.xlu0 %v2633_v7  ;;  %v7292_v24 = vmax.f32 %v3271_v33, %v3272_v57  ;;  %v1199_v6 = vrot.slane %v1198_v34, 1  ;;  %v8800_v57 = vld [vmem:[#allocation15_spill] sm:$0xff] }
 0x314   : > { %v7310_v7 = vadd.f32 %v1298_v27, %v1297_v42  ;;  %v8801_v42 = vld [vmem:[#allocation13_spill] sm:$0xff] }
 0x315   : > { %1822 = vadd.xlane.f32.xlu1 %v1821_v56  ;;  %v3274_v22 = vsub.f32 %v8783_v46, %v7292_v24  ;;  %v3275_v17 = vsub.f32 %v8784_v58, %v7292_v24  ;;  %v3276_v56 = vsub.f32 %v8785_v2, %v7292_v24  ;;  %v3277_v14 = vsub.f32 %v8786_v51, %v7292_v24  ;;  %v8803_v27 = vld [vmem:[#allocation17_spill] sm:$0xff] }
 0x316   : > { %v7318_v15 = vadd.f32 %v1199_v6, %v1198_v34  ;;  %v3279_v12 = vsub.f32 %v8788_v16, %v7292_v24  ;;  %v3280_v61 = vsub.f32 %v8789_v1, %v7292_v24  ;;  %v1300_v25 = vrot.slane %v7310_v7, 1 }
 0x317   : > { %1825 = vadd.xlane.f32.xlu0 %v1824_v11  ;;  %v3306_v45 = vmul.f32 1.442695, %v3274_v22  ;;  %v3308_v11 = vmul.f32 1.442695, %v3275_v17  ;;  %v3310_v23 = vmul.f32 1.442695, %v3276_v56  ;;  %v3281_v52 = vsub.f32 %v8790_v53, %v7292_v24 }
 0x318   : > { %v3312_v43 = vmul.f32 1.442695, %v3277_v14  ;;  %v3284_v21 = vsub.f32 %v8793_v28, %v7292_v24  ;;  %v3285_v54 = vsub.f32 %v8794_v62, %v7292_v24  ;;  %v3286_v37 = vsub.f32 %v8795_v38, %v7292_v24  ;;  %v8804_v22 = vld [vmem:[#allocation92_spill] sm:$0xff]  ;;  %v8805_v17 = vld [vmem:[#allocation91_spill] sm:$0xff]  ;;  %v8807_v14 = vld [vmem:[#allocation94_spill] sm:$0xff] }
 0x319   : > { %2637 = vadd.xlane.f32.xlu1 %v2636_v20  ;;  %v3278_v20 = vsub.f32 %v8787_v13, %v7292_v24  ;;  %v3288_v33 = vsub.f32 %v8797_v4, %v7292_v24  ;;  %v3289_v29 = vsub.f32 %v8798_v0, %v7292_v24  ;;  %v3316_v8 = vmul.f32 1.442695, %v3279_v12  ;;  %v8812_v28 = vld [vmem:[#allocation23_spill] sm:$0xff] }
 0x31a   : > { %v7306_v31 = vpop.eup %4395  ;;  %v3291_v30 = vsub.f32 %v8800_v57, %v7292_v24  ;;  %v3318_v26 = vmul.f32 1.442695, %v3280_v61  ;;  %v3292_v3 = vsub.f32 %v8801_v42, %v7292_v24  ;;  %v3294_v6 = vsub.f32 %v8803_v27, %v7292_v24  ;;  %v7412_v27 = vpop.xlane.xlu1 %1305 }
 0x31b   : > { %v1309_v47 = vmul.f32 %v7306_v31, %v1098_v39  ;;  %1326 = vst.msk [vmem:[%s7300_s14] sm:$0x1] %vm1314_vm4, %v7306_v31  ;;  %2640 = vadd.xlane.f32.xlu0 %v2639_v60  ;;  %v8791_v60 = vld [vmem:[#allocation10_spill] sm:$0xff]  ;;  %v3287_v39 = vsub.f32 %v8796_v10, %v7292_v24  ;;  %v3314_v5 = vmul.f32 1.442695, %v3278_v20  ;;  %v3295_v58 = vsub.f32 %v8804_v22, %v7292_v24 }
 0x31c   : > { %v3282_v41 = vsub.f32 %v8791_v60, %v7292_v24  ;;  %v3320_v46 = vmul.f32 1.442695, %v3281_v52  ;;  %v3296_v2 = vsub.f32 %v8805_v17, %v7292_v24  ;;  %v3326_v16 = vmul.f32 1.442695, %v3284_v21  ;;  %8815 = vst [vmem:[#allocation49_spill] sm:$0xff] %v7412_v27 }
 0x31d   : > { %v1310_v63 = vadd.f32 1e-07, %v1309_v47  ;;  %1828 = vadd.xlane.f32.xlu1 %v1827_v48  ;;  %v3283_v48 = vsub.f32 %v8792_v44, %v7292_v24  ;;  %v8806_v47 = vld [vmem:[#allocation20_spill] sm:$0xff]  ;;  %v3328_v12 = vmul.f32 1.442695, %v3285_v54  ;;  %v2685_v1 = vrot.slane %v7290_v32, 4 }
 0x31e   : > { %v3322_v56 = vmul.f32 1.442695, %v3282_v41  ;;  %v3297_v51 = vsub.f32 %v8806_v47, %v7292_v24  ;;  %v3330_v52 = vmul.f32 1.442695, %v3286_v37  ;;  %v3332_v60 = vmul.f32 1.442695, %v3287_v39 }
 0x31f   : > { %4397 = vrcp.f32 %v1310_v63  ;;  %1831 = vadd.xlane.f32.xlu0 %v7255_v40  ;;  %v8799_v40 = vld [vmem:[#allocation18_spill] sm:$0xff]  ;;  %v3298_v63 = vsub.f32 %v8807_v14, %v7292_v24  ;;  %v3324_v13 = vmul.f32 1.442695, %v3283_v48  ;;  %v3302_v21 = vsub.f32 %v8812_v28, %v7292_v24 }
 0x320   : > { %4399 = vpow2.f32 %v3306_v45  ;;  %v3290_v55 = vsub.f32 %v8799_v40, %v7292_v24  ;;  %v8809_v45 = vld [vmem:[#allocation93_spill] sm:$0xff]  ;;  %v3334_v62 = vmul.f32 1.442695, %v3288_v33  ;;  %v3336_v38 = vmul.f32 1.442695, %v3289_v29 }
 0x321   : > { %4401 = vpow2.f32 %v3308_v11  ;;  %2643 = vadd.xlane.f32.xlu1 %v7251_v9  ;;  %v8802_v9 = vld [vmem:[#allocation16_spill] sm:$0xff]  ;;  %v3300_v11 = vsub.f32 %v8809_v45, %v7292_v24  ;;  %v3340_v4 = vmul.f32 1.442695, %v3291_v30  ;;  %v3352_v22 = vmul.f32 1.442695, %v3297_v51 }
 0x322   : > { %4403 = vpow2.f32 %v3310_v23  ;;  %v3293_v34 = vsub.f32 %v8802_v9, %v7292_v24  ;;  %v8810_v23 = vld [vmem:[#allocation19_spill] sm:$0xff]  ;;  %v3338_v10 = vmul.f32 1.442695, %v3290_v55  ;;  %v3354_v17 = vmul.f32 1.442695, %v3298_v63 }
 0x323   : > { %4405 = vpow2.f32 %v3312_v43  ;;  %2646 = vadd.xlane.f32.xlu0 %v7265_v19  ;;  %v8808_v19 = vld [vmem:[#allocation22_spill] sm:$0xff]  ;;  %v3301_v53 = vsub.f32 %v8810_v23, %v7292_v24  ;;  %v3358_v47 = vmul.f32 1.442695, %v3300_v11  ;;  %v3362_v45 = vmul.f32 1.442695, %v3302_v21  ;;  %v7439_v11 = vld [vmem:[%s8328_s3 + $0x8] sm:$0xff] }
 0x324   : > { %4407 = vpow2.f32 %v3314_v5  ;;  %v3299_v20 = vsub.f32 %v8808_v19, %v7292_v24  ;;  %v3344_v42 = vmul.f32 1.442695, %v3293_v34  ;;  %v3348_v34 = vmul.f32 1.442695, %v3295_v58  ;;  %v4478_v21 = vld [vmem:[%s8329_s4] sm:$0xff] }
 0x325   : > { %1834 = vadd.xlane.f32.xlu1 %v7261_v50  ;;  %4409 = vpow2.f32 %v3316_v8  ;;  %v1873_v50 = vrot.slane %v7287_v49, 4  ;;  %v3342_v8 = vmul.f32 1.442695, %v3292_v3  ;;  %v3346_v3 = vmul.f32 1.442695, %v3294_v6 }
 0x326   : > { %4411 = vpow2.f32 %v3318_v26  ;;  %v8813_v26 = vld [vmem:[#allocation26_spill] sm:$0xff]  ;;  %v3360_v14 = vmul.f32 1.442695, %v3301_v53 }
 0x327   : > { %4413 = vpow2.f32 %v3320_v46  ;;  %1837 = vadd.xlane.f32.xlu0 %v7271_v36  ;;  %v1874_v44 = vadd.f32 %v1873_v50, %v7287_v49  ;;  %v2686_v36 = vadd.f32 %v2685_v1, %v7290_v32  ;;  %v3303_v55 = vsub.f32 %v8813_v26, %v7292_v24  ;;  %v8814_v46 = vld [vmem:[#allocation24_spill] sm:$0xff] }
 0x328   : > { %4415 = vpow2.f32 %v3322_v56  ;;  %v3304_v56 = vsub.f32 %v8814_v46, %v7292_v24 }
 0x329   : > { %v4398_v61 = vpop.eup %4397  ;;  %4417 = vpow2.f32 %v3324_v13  ;;  %v1875_v5 = vrot.slane %v1874_v44, 2  ;;  %v2687_v0 = vrot.slane %v2686_v36, 2 }
 0x32a   : > { %v4400_v41 = vpop.eup %4399  ;;  %v7377_v43 = vmul.f32 %v4398_v61, %v7306_v31  ;;  %4419 = vpow2.f32 %v3326_v16  ;;  %v3350_v61 = vmul.f32 1.442695, %v3296_v2  ;;  %v3356_v2 = vmul.f32 1.442695, %v3299_v20 }
 0x32b   : > { %v4402_v48 = vpop.eup %4401  ;;  %v3370_v54 = vsel %vm699_vm1, %v4400_v41, 0.0  ;;  %4421 = vpow2.f32 %v3328_v12  ;;  %v1876_v40 = vadd.f32 %v1875_v5, %v1874_v44  ;;  %v2688_v50 = vadd.f32 %v2687_v0, %v2686_v36  ;;  %v8816_v41 = vld [vmem:[#allocation21_spill] sm:$0xff] }
 0x32c   : > { %8811 = vst [vmem:[#allocation41_spill] sm:$0xff] %v7377_v43  ;;  %v4404_v31 = vpop.eup %4403  ;;  %v1313_v49 = vmul.f32 %v7377_v43, %v7318_v15  ;;  %v3373_v32 = vsel %vm699_vm1, %v4402_v48, 0.0  ;;  %3371 = vadd.xlane.f32.xlu0 %v3370_v54  ;;  %4423 = vpow2.f32 %v3330_v52  ;;  %v3305_v44 = vsub.f32 %v8816_v41, %v7292_v24  ;;  %v4477_v24 = vld [vmem:[%s8328_s3] sm:$0xff] }
 0x32d   : > { %v4406_v37 = vpop.eup %4405  ;;  %3374 = vadd.xlane.f32.xlu1 %v3373_v32  ;;  %v3466_v39 = vadd.f32 %v3373_v32, %v3370_v54  ;;  %4425 = vpow2.f32 %v3332_v60  ;;  %v3376_v33 = vsel %vm699_vm1, %v4404_v31, 0.0  ;;  %v1877_v52 = vrot.slane %v1876_v40, 1 }
 0x32e   : > { %1315 = vst.msk [vmem:[%s7389_s17] sm:$0x1] %vm1314_vm4, %v1313_v49  ;;  %v4408_v29 = vpop.eup %4407  ;;  %4427 = vpow2.f32 %v3334_v62  ;;  %v3379_v9 = vsel %vm699_vm1, %v4406_v37, 0.0  ;;  %v2689_v54 = vrot.slane %v2688_v50, 1  ;;  %v4476_v37 = vld [vmem:[%s8329_s4 + $0x8] sm:$0xff] }
 0x32f   : > { %v3467_v15 = vadd.f32 %v3466_v39, %v3376_v33  ;;  %v4410_v57 = vpop.eup %4409  ;;  %4429 = vpow2.f32 %v3336_v38  ;;  %v3382_v12 = vsel %vm699_vm1, %v4408_v29, 0.0  ;;  %v1878_v38 = vadd.f32 %v1877_v52, %v1876_v40 }
 0x330   : > { %3377 = vadd.xlane.f32.xlu0 %v3376_v33  ;;  %v4412_v30 = vpop.eup %4411  ;;  %4431 = vpow2.f32 %v3338_v10  ;;  %v3385_v58 = vsel %vm699_vm1, %v4410_v57, 0.0  ;;  %v3364_v33 = vmul.f32 1.442695, %v3303_v55  ;;  %v2690_v29 = vadd.f32 %v2689_v54, %v2688_v50  ;;  %v7456_v57 = vld [vmem:[%s8330_s5] sm:$0x1] }
 0x331   : > { %3380 = vadd.xlane.f32.xlu1 %v3379_v9  ;;  %v3468_v13 = vadd.f32 %v3467_v15, %v3379_v9  ;;  %v4414_v16 = vpop.eup %4413  ;;  %4433 = vpow2.f32 %v3340_v4  ;;  %v3388_v51 = vsel %vm699_vm1, %v4412_v30, 0.0  ;;  %v3366_v15 = vmul.f32 1.442695, %v3304_v56 }
 0x332   : > { %v4416_v1 = vpop.eup %4415  ;;  %4435 = vpow2.f32 %v3342_v8  ;;  %v3391_v23 = vsel %vm699_vm1, %v4414_v16, 0.0  ;;  %v2118_v26 = vmul.f32 %v7456_v57, %v1878_v38  ;;  %v3368_v9 = vmul.f32 1.442695, %v3305_v44 }
 0x333   : > { %v3469_v6 = vadd.f32 %v3468_v13, %v3382_v12  ;;  %v4418_v60 = vpop.eup %4417  ;;  %4437 = vpow2.f32 %v3344_v42  ;;  %v1751_v63 = vpop.xlane.xlu1 %1750  ;;  %v3394_v0 = vsel %vm699_vm1, %v4416_v1, 0.0 }
 0x334   : > { %3383 = vadd.xlane.f32.xlu0 %v3382_v12  ;;  %v4420_v36 = vpop.eup %4419  ;;  %4439 = vpow2.f32 %v3346_v3  ;;  %v1917_v32 = vmul.f32 %v7439_v11, %v1751_v63  ;;  %v2018_v10 = vmul.f32 %v4476_v37, %v1751_v63  ;;  %v3397_v55 = vsel %vm699_vm1, %v4418_v60, 0.0 }
 0x335   : > { %3386 = vadd.xlane.f32.xlu1 %v3385_v58  ;;  %v3470_v48 = vadd.f32 %v3469_v6, %v3385_v58  ;;  %v4422_v62 = vpop.eup %4421  ;;  %4441 = vpow2.f32 %v3348_v34  ;;  %v1748_v19 = vpop.xlane.xlu0 %1747  ;;  %v3400_v46 = vsel %vm699_vm1, %v4420_v36, 0.0  ;;  %v7473_v41 = vsel %vm1303_vm2, %v2118_v26, 0.0 }
 0x336   : > { %v4424_v31 = vpop.eup %4423  ;;  %4443 = vpow2.f32 %v3350_v61  ;;  %v1916_v28 = vmul.f32 %v4477_v24, %v1748_v19  ;;  %v2017_v39 = vmul.f32 %v4478_v21, %v1748_v19  ;;  %v1949_v30 = vsel %vm1131_vm3, %v1917_v32, 0.0 }
 0x337   : > { %v3471_v20 = vadd.f32 %v3470_v48, %v3388_v51  ;;  %v4426_v49 = vpop.eup %4425  ;;  %4445 = vpow2.f32 %v3352_v22  ;;  %v2050_v56 = vsel %vm1131_vm3, %v2018_v10, 0.0  ;;  %v3403_v50 = vsel %vm699_vm1, %v4422_v62, 0.0 }
 0x338   : > { %3389 = vadd.xlane.f32.xlu0 %v3388_v51  ;;  %v4428_v53 = vpop.eup %4427  ;;  %4447 = vpow2.f32 %v3354_v17  ;;  %v1948_v13 = vsel %vm1131_vm3, %v1916_v28, 0.0  ;;  %v2049_v16 = vsel %vm1131_vm3, %v2017_v39, 0.0  ;;  %v3406_v1 = vsel %vm699_vm1, %v4424_v31, 0.0 }
 0x339   : > { %3392 = vadd.xlane.f32.xlu1 %v3391_v23  ;;  %v3472_v5 = vadd.f32 %v3471_v20, %v3391_v23  ;;  %v4430_v4 = vpop.eup %4429  ;;  %4449 = vpow2.f32 %v3356_v2  ;;  %v7468_v61 = vmul.f32 %v7456_v57, %v2690_v29  ;;  %v7470_v52 = vadd.f32 %v1751_v63, %v1748_v19 }
 0x33a   : > { %v4432_v8 = vpop.eup %4431  ;;  %4451 = vpow2.f32 %v3358_v47  ;;  %v7475_v22 = vadd.f32 %v1949_v30, %v1948_v13  ;;  %v7477_v58 = vadd.f32 %v2050_v56, %v2049_v16  ;;  %v3409_v36 = vsel %vm699_vm1, %v4426_v49, 0.0 }
 0x33b   : > { %v3473_v40 = vadd.f32 %v3472_v5, %v3394_v0  ;;  %v4434_v42 = vpop.eup %4433  ;;  %4453 = vpow2.f32 %v3360_v14  ;;  %v7481_v62 = vsel %vm699_vm1, %v4430_v4, 0.0  ;;  %v3412_v47 = vsel %vm699_vm1, %v4428_v53, 0.0 }
 0x33c   : > { %3395 = vadd.xlane.f32.xlu0 %v3394_v0  ;;  %v4436_v3 = vpop.eup %4435  ;;  %4455 = vpow2.f32 %v3362_v45  ;;  %v7485_v63 = vsel %vm699_vm1, %v4434_v42, 0.0  ;;  %v7489_v49 = vsel %vm699_vm1, %v4432_v8, 0.0  ;;  %v4480_v0 = vld [vmem:[%s8328_s3 + $0x10] sm:$0xff] }
 0x33d   : > { %3398 = vadd.xlane.f32.xlu1 %v3397_v55  ;;  %v3474_v34 = vadd.f32 %v3473_v40, %v3397_v55  ;;  %v4438_v12 = vpop.eup %4437  ;;  %4457 = vpow2.f32 %v3364_v33  ;;  %v7495_v23 = vsel %vm699_vm1, %v4436_v3, 0.0  ;;  %v4481_v40 = vld [vmem:[%s8329_s4 + $0x10] sm:$0xff] }
 0x33e   : > { %v4440_v6 = vpop.eup %4439  ;;  %4459 = vpow2.f32 %v3366_v15  ;;  %v7492_v32 = vsel %vm699_vm1, %v4438_v12, 0.0 }
 0x33f   : > { %v3475_v60 = vadd.f32 %v3474_v34, %v3400_v46  ;;  %v4442_v44 = vpop.eup %4441  ;;  %4461 = vpow2.f32 %v3368_v9  ;;  %v7498_v53 = vsel %vm699_vm1, %v4440_v6, 0.0 }
 0x340   : > { %3401 = vadd.xlane.f32.xlu0 %v3400_v46  ;;  %v4444_v17 = vpop.eup %4443  ;;  %v2560_v2 = vpop.xlane.xlu0 %2559  ;;  %v7501_v28 = vsel %vm699_vm1, %v4442_v44, 0.0 }
 0x341   : > { %3404 = vadd.xlane.f32.xlu1 %v3403_v50  ;;  %v3476_v48 = vadd.f32 %v3475_v60, %v3403_v50  ;;  %v4446_v51 = vpop.eup %4445  ;;  %v2728_v31 = vmul.f32 %v4477_v24, %v2560_v2  ;;  %v2829_v14 = vmul.f32 %v4478_v21, %v2560_v2  ;;  %v7504_v21 = vsel %vm699_vm1, %v4444_v17, 0.0 }
 0x342   : > { %v2563_v54 = vpop.xlane.xlu1 %2562  ;;  %v4448_v45 = vpop.eup %4447  ;;  %v7519_v55 = vsel %vm699_vm1, %v4446_v51, 0.0  ;;  %v4482_v51 = vld [vmem:[%s8328_s3 + $0x18] sm:$0xff] }
 0x343   : > { %v2729_v19 = vmul.f32 %v7439_v11, %v2563_v54  ;;  %v2830_v20 = vmul.f32 %v4476_v37, %v2563_v54  ;;  %v3477_v38 = vadd.f32 %v3476_v48, %v3406_v1  ;;  %v4450_v10 = vpop.eup %4449  ;;  %v2691_v24 = vadd.f32 %v2563_v54, %v2560_v2 }
 0x344   : > { %3407 = vadd.xlane.f32.xlu0 %v3406_v1  ;;  %v1754_v11 = vpop.xlane.xlu0 %1753  ;;  %v2760_v5 = vsel %vm1131_vm3, %v2728_v31, 0.0  ;;  %v2861_v4 = vsel %vm1131_vm3, %v2829_v14, 0.0  ;;  %v7516_v9 = vpop.eup %4451  ;;  %v7522_v46 = vsel %vm699_vm1, %v4450_v10, 0.0  ;;  %v7525_v3 = vsel %vm699_vm1, %v4448_v45, 0.0 }
 0x345   : > { %3410 = vadd.xlane.f32.xlu1 %v3409_v36  ;;  %v3478_v37 = vadd.f32 %v3477_v38, %v3409_v36  ;;  %v2761_v39 = vsel %vm1131_vm3, %v2729_v19, 0.0  ;;  %v1918_v29 = vmul.f32 %v4480_v0, %v1754_v11  ;;  %v2862_v8 = vsel %vm1131_vm3, %v2830_v20, 0.0  ;;  %v7527_v56 = vpop.eup %4453 }
 0x346   : > { %v2566_v33 = vpop.xlane.xlu1 %2565  ;;  %v2019_v42 = vmul.f32 %v4481_v40, %v1754_v11  ;;  %v7533_v1 = vpop.eup %4455  ;;  %v2762_v6 = vadd.f32 %v2761_v39, %v2760_v5  ;;  %v2863_v60 = vadd.f32 %v2862_v8, %v2861_v4  ;;  %v1880_v48 = vadd.f32 %v7470_v52, %v1754_v11 }
 0x347   : > { %v2730_v15 = vmul.f32 %v4480_v0, %v2566_v33  ;;  %v2831_v26 = vmul.f32 %v4481_v40, %v2566_v33  ;;  %v2692_v30 = vadd.f32 %v2691_v24, %v2566_v33  ;;  %v1951_v34 = vsel %vm1131_vm3, %v1918_v29, 0.0  ;;  %v7536_v2 = vpop.eup %4457 }
 0x348   : > { %3413 = vadd.xlane.f32.xlu0 %v3412_v47  ;;  %v2569_v12 = vpop.xlane.xlu0 %2568  ;;  %v3479_v50 = vadd.f32 %v3478_v37, %v3412_v47  ;;  %v2052_v44 = vsel %vm1131_vm3, %v2019_v42, 0.0  ;;  %v4483_v47 = vld [vmem:[%s8329_s4 + $0x18] sm:$0xff]  ;;  %v7545_v19 = vpop.eup %4459  ;;  %v1952_v45 = vadd.f32 %v1951_v34, %v7475_v22 }
 0x349   : > { %v2763_v13 = vsel %vm1131_vm3, %v2730_v15, 0.0  ;;  %v2864_v16 = vsel %vm1131_vm3, %v2831_v26, 0.0  ;;  %3416 = vadd.xlane.f32.xlu1 %v7481_v62  ;;  %v2693_v17 = vadd.f32 %v2692_v30, %v2569_v12  ;;  %v2731_v14 = vmul.f32 %v4482_v51, %v2569_v12  ;;  %v7554_v5 = vpop.eup %4461 }
 0x34a   : > { %v1757_v36 = vpop.xlane.xlu1 %1756  ;;  %v2764_v20 = vadd.f32 %v2763_v13, %v2762_v6  ;;  %v2865_v38 = vadd.f32 %v2864_v16, %v2863_v60  ;;  %v2832_v10 = vmul.f32 %v4483_v47, %v2569_v12  ;;  %v2053_v24 = vadd.f32 %v2052_v44, %v7477_v58  ;;  %v7561_v58 = vld [vmem:[%s8328_s3 + $0x20] sm:$0xff] }
 0x34b   : > { %v1919_v54 = vmul.f32 %v4482_v51, %v1757_v36  ;;  %v2020_v31 = vmul.f32 %v4483_v47, %v1757_v36  ;;  %v2765_v11 = vsel %vm1131_vm3, %v2731_v14, 0.0  ;;  %v3480_v39 = vadd.f32 %v3479_v50, %v7481_v62  ;;  %v7567_v62 = vld [vmem:[%s8329_s4 + $0x20] sm:$0xff]  ;;  %v7582_v14 = vld [vmem:[%s8328_s3 + $0x28] sm:$0xff] }
 0x34c   : > { %3419 = vadd.xlane.f32.xlu0 %v7489_v49  ;;  %v1760_v37 = vpop.xlane.xlu0 %1759  ;;  %v1881_v4 = vadd.f32 %v1880_v48, %v1757_v36  ;;  %v2766_v22 = vadd.f32 %v2765_v11, %v2764_v20  ;;  %v2866_v0 = vsel %vm1131_vm3, %v2832_v10, 0.0 }
 0x34d   : > { %v1953_v52 = vsel %vm1131_vm3, %v1919_v54, 0.0  ;;  %3422 = vadd.xlane.f32.xlu1 %v7485_v63  ;;  %v2054_v33 = vsel %vm1131_vm3, %v2020_v31, 0.0  ;;  %v2867_v8 = vadd.f32 %v2866_v0, %v2865_v38  ;;  %v1920_v13 = vmul.f32 %v7561_v58, %v1760_v37 }
 0x34e   : > { %v2572_v29 = vpop.xlane.xlu1 %2571  ;;  %v1954_v42 = vadd.f32 %v1953_v52, %v1952_v45  ;;  %v1882_v30 = vadd.f32 %v1881_v4, %v1760_v37  ;;  %v2021_v16 = vmul.f32 %v7567_v62, %v1760_v37  ;;  %v2055_v34 = vadd.f32 %v2054_v33, %v2053_v24 }
 0x34f   : > { %v2694_v15 = vadd.f32 %v2693_v17, %v2572_v29  ;;  %v2732_v40 = vmul.f32 %v7561_v58, %v2572_v29  ;;  %v2833_v26 = vmul.f32 %v7567_v62, %v2572_v29  ;;  %v3481_v60 = vadd.f32 %v3480_v39, %v7489_v49  ;;  %v7588_v49 = vld [vmem:[%s8329_s4 + $0x28] sm:$0xff] }
 0x350   : > { %3425 = vadd.xlane.f32.xlu0 %v7495_v23  ;;  %v2575_v6 = vpop.xlane.xlu0 %2574  ;;  %v1955_v17 = vsel %vm1131_vm3, %v1920_v13, 0.0  ;;  %v2056_v48 = vsel %vm1131_vm3, %v2021_v16, 0.0  ;;  %v7599_v39 = vsel %vm699_vm1, %v7527_v56, 0.0  ;;  %v7603_v4 = vsel %vm699_vm1, %v7516_v9, 0.0  ;;  %v7611_v56 = vld [vmem:[%s8328_s3 + $0x30] sm:$0xff] }
 0x351   : > { %v2767_v12 = vsel %vm1131_vm3, %v2732_v40, 0.0  ;;  %v2868_v50 = vsel %vm1131_vm3, %v2833_v26, 0.0  ;;  %3428 = vadd.xlane.f32.xlu1 %v7492_v32  ;;  %v1956_v54 = vadd.f32 %v1955_v17, %v1954_v42  ;;  %v2057_v47 = vadd.f32 %v2056_v48, %v2055_v34  ;;  %v7617_v42 = vld [vmem:[%s8329_s4 + $0x30] sm:$0xff] }
 0x352   : > { %v2768_v44 = vadd.f32 %v2767_v12, %v2766_v22  ;;  %v2869_v36 = vadd.f32 %v2868_v50, %v2867_v8  ;;  %v1763_v51 = vpop.xlane.xlu1 %1762  ;;  %v2695_v45 = vadd.f32 %v2694_v15, %v2575_v6  ;;  %v2733_v10 = vmul.f32 %v7582_v14, %v2575_v6 }
 0x353   : > { %v1883_v31 = vadd.f32 %v1882_v30, %v1763_v51  ;;  %v1921_v20 = vmul.f32 %v7582_v14, %v1763_v51  ;;  %v2022_v38 = vmul.f32 %v7588_v49, %v1763_v51  ;;  %v2834_v52 = vmul.f32 %v7588_v49, %v2575_v6 }
 0x354   : > { %3431 = vadd.xlane.f32.xlu0 %v7498_v53  ;;  %v1766_v11 = vpop.xlane.xlu0 %1765  ;;  %v3482_v37 = vadd.f32 %v3481_v60, %v7485_v63  ;;  %v2769_v0 = vsel %vm1131_vm3, %v2733_v10, 0.0  ;;  %v7627_v6 = vsel %vm699_vm1, %v7536_v2, 0.0  ;;  %v7631_v60 = vsel %vm699_vm1, %v7533_v1, 0.0  ;;  %v7640_v1 = vld [vmem:[%s8328_s3 + $0x38] sm:$0xff] }
 0x355   : > { %v1957_v24 = vsel %vm1131_vm3, %v1921_v20, 0.0  ;;  %3434 = vadd.xlane.f32.xlu1 %v7501_v28  ;;  %v2058_v22 = vsel %vm1131_vm3, %v2022_v38, 0.0  ;;  %v2870_v29 = vsel %vm1131_vm3, %v2834_v52, 0.0  ;;  %v2770_v63 = vadd.f32 %v2769_v0, %v2768_v44 }
 0x356   : > { %v1958_v33 = vadd.f32 %v1957_v24, %v1956_v54  ;;  %v2578_v8 = vpop.xlane.xlu1 %2577  ;;  %v2059_v15 = vadd.f32 %v2058_v22, %v2057_v47  ;;  %v2871_v40 = vadd.f32 %v2870_v29, %v2869_v36  ;;  %v1884_v13 = vadd.f32 %v1883_v31, %v1766_v11 }
 0x357   : > { %v2696_v26 = vadd.f32 %v2695_v45, %v2578_v8  ;;  %v2734_v9 = vmul.f32 %v7611_v56, %v2578_v8  ;;  %v2835_v30 = vmul.f32 %v7617_v42, %v2578_v8  ;;  %v1922_v16 = vmul.f32 %v7611_v56, %v1766_v11  ;;  %v7646_v45 = vld [vmem:[%s8329_s4 + $0x38] sm:$0xff] }
 0x358   : > { %3437 = vadd.xlane.f32.xlu0 %v7504_v21  ;;  %v2023_v34 = vmul.f32 %v7617_v42, %v1766_v11  ;;  %v3483_v12 = vadd.f32 %v3482_v37, %v7495_v23  ;;  %v2581_v50 = vpop.xlane.xlu0 %2580 }
 0x359   : > { %3440 = vadd.xlane.f32.xlu1 %v7519_v55  ;;  %v2771_v44 = vsel %vm1131_vm3, %v2734_v9, 0.0  ;;  %v2872_v36 = vsel %vm1131_vm3, %v2835_v30, 0.0  ;;  %v1959_v17 = vsel %vm1131_vm3, %v1922_v16, 0.0  ;;  %v2697_v51 = vadd.f32 %v2696_v26, %v2581_v50 }
 0x35a   : > { %v1769_v48 = vpop.xlane.xlu1 %1768  ;;  %v2772_v23 = vadd.f32 %v2771_v44, %v2770_v63  ;;  %v2873_v54 = vadd.f32 %v2872_v36, %v2871_v40  ;;  %v1960_v47 = vadd.f32 %v1959_v17, %v1958_v33  ;;  %v2060_v31 = vsel %vm1131_vm3, %v2023_v34, 0.0 }
 0x35b   : > { %v2061_v20 = vadd.f32 %v2060_v31, %v2059_v15  ;;  %v1885_v2 = vadd.f32 %v1884_v13, %v1769_v48  ;;  %v1923_v38 = vmul.f32 %v7640_v1, %v1769_v48  ;;  %v2024_v10 = vmul.f32 %v7646_v45, %v1769_v48  ;;  %v7663_v15 = vld [vmem:[%s8328_s3 + $0x40] sm:$0xff] }
 0x35c   : > { %3443 = vadd.xlane.f32.xlu0 %v7525_v3  ;;  %v2735_v52 = vmul.f32 %v7640_v1, %v2581_v50  ;;  %v2836_v24 = vmul.f32 %v7646_v45, %v2581_v50  ;;  %v3484_v11 = vadd.f32 %v3483_v12, %v7492_v32  ;;  %v1772_v37 = vpop.xlane.xlu0 %1771  ;;  %v7656_v33 = vsel %vm699_vm1, %v7545_v19, 0.0  ;;  %v7674_v12 = vld [vmem:[%s8329_s4 + $0x40] sm:$0xff] }
 0x35d   : > { %3446 = vadd.xlane.f32.xlu1 %v7522_v46  ;;  %v1961_v22 = vsel %vm1131_vm3, %v1923_v38, 0.0  ;;  %v2062_v0 = vsel %vm1131_vm3, %v2024_v10, 0.0  ;;  %v1886_v8 = vadd.f32 %v1885_v2, %v1772_v37  ;;  %v1924_v32 = vmul.f32 %v7663_v15, %v1772_v37 }
 0x35e   : > { %v2584_v29 = vpop.xlane.xlu1 %2583  ;;  %v1962_v63 = vadd.f32 %v1961_v22, %v1960_v47  ;;  %v2063_v40 = vadd.f32 %v2062_v0, %v2061_v20  ;;  %v2773_v26 = vsel %vm1131_vm3, %v2735_v52, 0.0  ;;  %v2874_v19 = vsel %vm1131_vm3, %v2836_v24, 0.0 }
 0x35f   : > { %v2774_v9 = vadd.f32 %v2773_v26, %v2772_v23  ;;  %v2875_v30 = vadd.f32 %v2874_v19, %v2873_v54  ;;  %v3485_v13 = vadd.f32 %v3484_v11, %v7498_v53  ;;  %v2698_v16 = vadd.f32 %v2697_v51, %v2584_v29  ;;  %v7684_v54 = vld [vmem:[%s8328_s3 + $0x48] sm:$0xff]  ;;  %v7706_v26 = vld [vmem:[%s8328_s3 + $0x50] sm:$0xff] }
 0x360   : > { %3449 = vadd.xlane.f32.xlu0 %v7603_v4  ;;  %v2736_v34 = vmul.f32 %v7663_v15, %v2584_v29  ;;  %v2837_v50 = vmul.f32 %v7674_v12, %v2584_v29  ;;  %v1963_v44 = vsel %vm1131_vm3, %v1924_v32, 0.0  ;;  %v2025_v36 = vmul.f32 %v7674_v12, %v1772_v37  ;;  %v2587_v17 = vpop.xlane.xlu0 %2586  ;;  %v7696_v37 = vld [vmem:[%s8329_s4 + $0x48] sm:$0xff] }
 0x361   : > { %3452 = vadd.xlane.f32.xlu1 %v7599_v39  ;;  %v1964_v53 = vadd.f32 %v1963_v44, %v1962_v63  ;;  %v3486_v48 = vadd.f32 %v3485_v13, %v7501_v28  ;;  %v2699_v23 = vadd.f32 %v2698_v16, %v2587_v17  ;;  %v2737_v47 = vmul.f32 %v7684_v54, %v2587_v17 }
 0x362   : > { %v1775_v51 = vpop.xlane.xlu1 %1774  ;;  %v2775_v31 = vsel %vm1131_vm3, %v2736_v34, 0.0  ;;  %v2876_v20 = vsel %vm1131_vm3, %v2837_v50, 0.0  ;;  %v2064_v2 = vsel %vm1131_vm3, %v2025_v36, 0.0  ;;  %v2838_v29 = vmul.f32 %v7696_v37, %v2587_v17  ;;  %v7718_v17 = vld [vmem:[%s8329_s4 + $0x50] sm:$0xff] }
 0x363   : > { %v1887_v38 = vadd.f32 %v1886_v8, %v1775_v51  ;;  %v2776_v10 = vadd.f32 %v2775_v31, %v2774_v9  ;;  %v2877_v52 = vadd.f32 %v2876_v20, %v2875_v30  ;;  %v2065_v24 = vadd.f32 %v2064_v2, %v2063_v40  ;;  %v7728_v2 = vld [vmem:[%s8328_s3 + $0x58] sm:$0xff] }
 0x364   : > { %v3487_v28 = vadd.f32 %v3486_v48, %v7504_v21  ;;  %3455 = vadd.xlane.f32.xlu0 %v7631_v60  ;;  %v1925_v11 = vmul.f32 %v7684_v54, %v1775_v51  ;;  %v2026_v22 = vmul.f32 %v7696_v37, %v1775_v51  ;;  %v2777_v0 = vsel %vm1131_vm3, %v2737_v47, 0.0  ;;  %v1778_v8 = vpop.xlane.xlu0 %1777 }
 0x365   : > { %3458 = vadd.xlane.f32.xlu1 %v7627_v6  ;;  %v2778_v32 = vadd.f32 %v2777_v0, %v2776_v10  ;;  %v1888_v40 = vadd.f32 %v1887_v38, %v1778_v8  ;;  %v1926_v19 = vmul.f32 %v7706_v26, %v1778_v8  ;;  %v2878_v13 = vsel %vm1131_vm3, %v2838_v29, 0.0  ;;  %v7740_v29 = vld [vmem:[%s8329_s4 + $0x58] sm:$0xff] }
 0x366   : > { %v3488_v21 = vadd.f32 %v3487_v28, %v7519_v55  ;;  %v2590_v63 = vpop.xlane.xlu1 %2589  ;;  %v1965_v9 = vsel %vm1131_vm3, %v1925_v11, 0.0  ;;  %v2066_v30 = vsel %vm1131_vm3, %v2026_v22, 0.0  ;;  %v2879_v44 = vadd.f32 %v2878_v13, %v2877_v52 }
 0x367   : > { %v2700_v16 = vadd.f32 %v2699_v23, %v2590_v63  ;;  %v1966_v34 = vadd.f32 %v1965_v9, %v1964_v53  ;;  %v2067_v50 = vadd.f32 %v2066_v30, %v2065_v24  ;;  %v2738_v36 = vmul.f32 %v7706_v26, %v2590_v63 }
 0x368   : > { %v3489_v55 = vadd.f32 %v3488_v21, %v7525_v3  ;;  %3461 = vadd.xlane.f32.xlu0 %v7656_v33  ;;  %v2839_v48 = vmul.f32 %v7718_v17, %v2590_v63  ;;  %v1967_v51 = vsel %vm1131_vm3, %v1926_v19, 0.0  ;;  %v2027_v23 = vmul.f32 %v7718_v17, %v1778_v8  ;;  %v2593_v53 = vpop.xlane.xlu0 %2592 }
 0x369   : > { %2649 = vadd.xlane.f32.xlu1 %v7275_v18  ;;  %v1968_v47 = vadd.f32 %v1967_v51, %v1966_v34  ;;  %v2701_v20 = vadd.f32 %v2700_v16, %v2593_v53  ;;  %v2739_v38 = vmul.f32 %v7728_v2, %v2593_v53  ;;  %v2779_v10 = vsel %vm1131_vm3, %v2738_v36, 0.0 }
 0x36a   : > { %v3490_v3 = vadd.f32 %v3489_v55, %v7522_v46  ;;  %v1781_v31 = vpop.xlane.xlu1 %1780  ;;  %v2880_v52 = vsel %vm1131_vm3, %v2839_v48, 0.0  ;;  %v2068_v24 = vsel %vm1131_vm3, %v2027_v23, 0.0  ;;  %v2780_v18 = vadd.f32 %v2779_v10, %v2778_v32 }
 0x36b   : > { %v1889_v28 = vadd.f32 %v1888_v40, %v1781_v31  ;;  %v2881_v11 = vadd.f32 %v2880_v52, %v2879_v44  ;;  %v2069_v22 = vadd.f32 %v2068_v24, %v2067_v50  ;;  %v1927_v0 = vmul.f32 %v7728_v2, %v1781_v31 }
 0x36c   : > { %v3491_v46 = vadd.f32 %v3490_v3, %v7603_v4  ;;  %2652 = vadd.xlane.f32.xlu0 %v7284_v59  ;;  %v2028_v8 = vmul.f32 %v7740_v29, %v1781_v31  ;;  %v2781_v21 = vsel %vm1131_vm3, %v2739_v38, 0.0  ;;  %v2840_v63 = vmul.f32 %v7740_v29, %v2593_v53  ;;  %v1784_v32 = vpop.xlane.xlu0 %1783  ;;  %v7749_v59 = vld [vmem:[%s8328_s3 + $0x60] sm:$0xff] }
 0x36d   : > { %1840 = vadd.xlane.f32.xlu1 %v7281_v35  ;;  %v2782_v40 = vadd.f32 %v2781_v21, %v2780_v18  ;;  %v1890_v19 = vadd.f32 %v1889_v28, %v1784_v32  ;;  %v1928_v9 = vmul.f32 %v7749_v59, %v1784_v32  ;;  %v7754_v30 = vsel %vm699_vm1, %v7554_v5, 0.0  ;;  %v7765_v5 = vld [vmem:[%s8329_s4 + $0x60] sm:$0xff] }
 0x36e   : > { %v2596_v4 = vpop.xlane.xlu1 %2595  ;;  %v1969_v13 = vsel %vm1131_vm3, %v1927_v0, 0.0  ;;  %v2070_v16 = vsel %vm1131_vm3, %v2028_v8, 0.0  ;;  %v2882_v35 = vsel %vm1131_vm3, %v2840_v63, 0.0  ;;  %v3492_v36 = vadd.f32 %v3491_v46, %v7599_v39  ;;  %v7787_v8 = vld [vmem:[%s8329_s4 + $0x68] sm:$0xff] }
 0x36f   : > { %v2702_v34 = vadd.f32 %v2701_v20, %v2596_v4  ;;  %v1970_v50 = vadd.f32 %v1969_v13, %v1968_v47  ;;  %v2071_v44 = vadd.f32 %v2070_v16, %v2069_v22  ;;  %v2883_v55 = vadd.f32 %v2882_v35, %v2881_v11  ;;  %v7801_v13 = vld [vmem:[%s8329_s4 + $0x70] sm:$0xff] }
 0x370   : > { %2120 = vadd.xlane.f32.xlu0 %v7473_v41  ;;  %v2740_v48 = vmul.f32 %v7749_v59, %v2596_v4  ;;  %v2841_v51 = vmul.f32 %v7765_v5, %v2596_v4  ;;  %v1971_v23 = vsel %vm1131_vm3, %v1928_v9, 0.0  ;;  %v2029_v53 = vmul.f32 %v7765_v5, %v1784_v32  ;;  %v2599_v47 = vpop.xlane.xlu0 %2598  ;;  %v7774_v41 = vld [vmem:[%s8328_s3 + $0x68] sm:$0xff] }
 0x371   : > { %3464 = vadd.xlane.f32.xlu1 %v7754_v30  ;;  %v1972_v3 = vadd.f32 %v1971_v23, %v1970_v50  ;;  %v2703_v31 = vadd.f32 %v2702_v34, %v2599_v47  ;;  %v2741_v20 = vmul.f32 %v7774_v41, %v2599_v47  ;;  %v2931_v38 = vsel %vm1303_vm2, %v7468_v61, 0.0 }
 0x372   : > { %v1787_v39 = vpop.xlane.xlu1 %1786  ;;  %v2783_v10 = vsel %vm1131_vm3, %v2740_v48, 0.0  ;;  %v2884_v52 = vsel %vm1131_vm3, %v2841_v51, 0.0  ;;  %v2072_v24 = vsel %vm1131_vm3, %v2029_v53, 0.0  ;;  %v3493_v18 = vadd.f32 %v3492_v36, %v7631_v60 }
 0x373   : > { %v1891_v28 = vadd.f32 %v1890_v19, %v1787_v39  ;;  %v2784_v11 = vadd.f32 %v2783_v10, %v2782_v40  ;;  %v2885_v22 = vadd.f32 %v2884_v52, %v2883_v55  ;;  %v2073_v46 = vadd.f32 %v2072_v24, %v2071_v44  ;;  %v7795_v19 = vld [vmem:[%s8328_s3 + $0x70] sm:$0xff] }
 0x374   : > { %v1929_v0 = vmul.f32 %v7774_v41, %v1787_v39  ;;  %v2030_v61 = vmul.f32 %v7787_v8, %v1787_v39  ;;  %v2785_v21 = vsel %vm1131_vm3, %v2741_v20, 0.0  ;;  %v2842_v63 = vmul.f32 %v7787_v8, %v2599_v47  ;;  %v1790_v32 = vpop.xlane.xlu0 %1789 }
 0x375   : > { %2932 = vadd.xlane.f32.xlu1 %v2931_v38  ;;  %v2786_v4 = vadd.f32 %v2785_v21, %v2784_v11  ;;  %v1892_v40 = vadd.f32 %v1891_v28, %v1790_v32  ;;  %v1930_v9 = vmul.f32 %v7795_v19, %v1790_v32  ;;  %v2031_v16 = vmul.f32 %v7801_v13, %v1790_v32 }
 0x376   : > { %v2602_v60 = vpop.xlane.xlu1 %2601  ;;  %v1973_v35 = vsel %vm1131_vm3, %v1929_v0, 0.0  ;;  %v2074_v34 = vsel %vm1131_vm3, %v2030_v61, 0.0  ;;  %v2886_v50 = vsel %vm1131_vm3, %v2842_v63, 0.0  ;;  %v3494_v23 = vadd.f32 %v3493_v18, %v7627_v6  ;;  %v7817_v6 = vld [vmem:[%s8328_s3 + $0x78] sm:$0xff] }
 0x377   : > { %v2704_v44 = vadd.f32 %v2703_v31, %v2602_v60  ;;  %v1974_v55 = vadd.f32 %v1973_v35, %v1972_v3  ;;  %v2075_v36 = vadd.f32 %v2074_v34, %v2073_v46  ;;  %v2887_v48 = vadd.f32 %v2886_v50, %v2885_v22  ;;  %v7823_v46 = vld [vmem:[%s8329_s4 + $0x78] sm:$0xff] }
 0x378   : > { %v2742_v51 = vmul.f32 %v7795_v19, %v2602_v60  ;;  %v2843_v53 = vmul.f32 %v7801_v13, %v2602_v60  ;;  %v1975_v47 = vsel %vm1131_vm3, %v1930_v9, 0.0  ;;  %v2076_v39 = vsel %vm1131_vm3, %v2031_v16, 0.0  ;;  %v2605_v20 = vpop.xlane.xlu0 %2604 }
 0x379   : > { %v1976_v10 = vadd.f32 %v1975_v47, %v1974_v55  ;;  %v2077_v52 = vadd.f32 %v2076_v39, %v2075_v36  ;;  %v2705_v31 = vadd.f32 %v2704_v44, %v2605_v20  ;;  %v2743_v61 = vmul.f32 %v7817_v6, %v2605_v20 }
 0x37a   : > { %v2787_v38 = vsel %vm1131_vm3, %v2742_v51, 0.0  ;;  %v1793_v24 = vpop.xlane.xlu1 %1792  ;;  %v2888_v28 = vsel %vm1131_vm3, %v2843_v53, 0.0  ;;  %v3495_v21 = vadd.f32 %v3494_v23, %v7656_v33  ;;  %v2844_v63 = vmul.f32 %v7823_v46, %v2605_v20 }
 0x37b   : > { %v2788_v3 = vadd.f32 %v2787_v38, %v2786_v4  ;;  %v1893_v11 = vadd.f32 %v1892_v40, %v1793_v24  ;;  %v2889_v22 = vadd.f32 %v2888_v28, %v2887_v48  ;;  %v1931_v18 = vmul.f32 %v7817_v6, %v1793_v24  ;;  %v7846_v48 = vld [vmem:[%s8329_s4 + $0x80] sm:$0xff] }
 0x37c   : > { %v2032_v0 = vmul.f32 %v7823_v46, %v1793_v24  ;;  %v1796_v32 = vpop.xlane.xlu0 %1795  ;;  %v1301_v4 = vadd.f32 %v1300_v25, %v7310_v7  ;;  %v2789_v9 = vsel %vm1131_vm3, %v2743_v61, 0.0  ;;  %v2890_v55 = vsel %vm1131_vm3, %v2844_v63, 0.0  ;;  %v7840_v7 = vld [vmem:[%s8328_s3 + $0x80] sm:$0xff] }
 0x37d   : > { %v1977_v60 = vsel %vm1131_vm3, %v1931_v18, 0.0  ;;  %v1894_v35 = vadd.f32 %v1893_v11, %v1796_v32  ;;  %v2790_v44 = vadd.f32 %v2789_v9, %v2788_v3  ;;  %v3496_v23 = vadd.f32 %v3495_v21, %v7754_v30 }
 0x37e   : > { %v2078_v40 = vsel %vm1131_vm3, %v2032_v0, 0.0  ;;  %v2608_v16 = vpop.xlane.xlu1 %2607  ;;  %v1978_v34 = vadd.f32 %v1977_v60, %v1976_v10  ;;  %v1316_v33 = vmul.f32 %v7377_v43, %v1301_v4  ;;  %v2891_v53 = vadd.f32 %v2890_v55, %v2889_v22 }
 0x37f   : > { %v2079_v50 = vadd.f32 %v2078_v40, %v2077_v52  ;;  %v2706_v36 = vadd.f32 %v2705_v31, %v2608_v16  ;;  %v2744_v25 = vmul.f32 %v7840_v7, %v2608_v16  ;;  %v2845_v51 = vmul.f32 %v7846_v48, %v2608_v16  ;;  %v7857_v31 = vld [vmem:[%s8328_s3 + $0x88] sm:$0xff] }
 0x380   : > { %v1932_v47 = vmul.f32 %v7840_v7, %v1796_v32  ;;  %v2033_v39 = vmul.f32 %v7846_v48, %v1796_v32  ;;  %v2611_v20 = vpop.xlane.xlu0 %2610  ;;  %v3497_v63 = vrot.slane %v3496_v23, 4  ;;  %v7866_v32 = vld [vmem:[%s8329_s4 + $0x88] sm:$0xff] }
 0x381   : > { %v2791_v38 = vsel %vm1131_vm3, %v2744_v25, 0.0  ;;  %v2892_v10 = vsel %vm1131_vm3, %v2845_v51, 0.0  ;;  %v2707_v24 = vadd.f32 %v2706_v36, %v2611_v20  ;;  %v2745_v3 = vmul.f32 %v7857_v31, %v2611_v20 }
 0x382   : > { %v1799_v52 = vpop.xlane.xlu1 %1798  ;;  %v2792_v30 = vadd.f32 %v2791_v38, %v2790_v44  ;;  %v2893_v28 = vadd.f32 %v2892_v10, %v2891_v53  ;;  %v1979_v11 = vsel %vm1131_vm3, %v1932_v47, 0.0  ;;  %v2080_v22 = vsel %vm1131_vm3, %v2033_v39, 0.0  ;;  %v7875_v44 = vld [vmem:[%s8328_s3 + $0x90] sm:$0xff] }
 0x383   : > { %v1980_v18 = vadd.f32 %v1979_v11, %v1978_v34  ;;  %v2081_v0 = vadd.f32 %v2080_v22, %v2079_v50  ;;  %v1895_v61 = vadd.f32 %v1894_v35, %v1799_v52  ;;  %v1933_v21 = vmul.f32 %v7857_v31, %v1799_v52  ;;  %v7885_v38 = vld [vmem:[%s8329_s4 + $0x90] sm:$0xff] }
 0x384   : > { %v2034_v4 = vmul.f32 %v7866_v32, %v1799_v52  ;;  %v2793_v60 = vsel %vm1131_vm3, %v2745_v3, 0.0  ;;  %v2846_v40 = vmul.f32 %v7866_v32, %v2611_v20  ;;  %v1802_v9 = vpop.xlane.xlu0 %1801  ;;  %v3498_v52 = vadd.f32 %v3497_v63, %v3496_v23  ;;  %v7896_v23 = vld [vmem:[%s8328_s3 + $0x98] sm:$0xff] }
 0x385   : > { %v1981_v16 = vsel %vm1131_vm3, %v1933_v21, 0.0  ;;  %v2794_v34 = vadd.f32 %v2793_v60, %v2792_v30  ;;  %v1896_v35 = vadd.f32 %v1895_v61, %v1802_v9  ;;  %v1934_v55 = vmul.f32 %v7875_v44, %v1802_v9 }
 0x386   : > { %v2614_v50 = vpop.xlane.xlu1 %2613  ;;  %1318 = vrot.lane.b32.xlu0 %v1316_v33, %s4559_s12  ;;  %v1982_v36 = vadd.f32 %v1981_v16, %v1980_v18  ;;  %v2082_v25 = vsel %vm1131_vm3, %v2034_v4, 0.0  ;;  %v2894_v51 = vsel %vm1131_vm3, %v2846_v40, 0.0  ;;  %v2035_v3 = vmul.f32 %v7885_v38, %v1802_v9  ;;  %v7902_v40 = vld [vmem:[%s8329_s4 + $0x98] sm:$0xff] }
 0x387   : > { %v2708_v53 = vadd.f32 %v2707_v24, %v2614_v50  ;;  %v2083_v47 = vadd.f32 %v2082_v25, %v2081_v0  ;;  %v2895_v39 = vadd.f32 %v2894_v51, %v2893_v28  ;;  %v2746_v20 = vmul.f32 %v7875_v44, %v2614_v50 }
 0x388   : > { %v2847_v10 = vmul.f32 %v7885_v38, %v2614_v50  ;;  %v1983_v33 = vsel %vm1131_vm3, %v1934_v55, 0.0  ;;  %v2617_v30 = vpop.xlane.xlu0 %2616  ;;  %v2084_v21 = vsel %vm1131_vm3, %v2035_v3, 0.0 }
 0x389   : > { %v2795_v11 = vsel %vm1131_vm3, %v2746_v20, 0.0  ;;  %v1984_v28 = vadd.f32 %v1983_v33, %v1982_v36  ;;  %v2709_v18 = vadd.f32 %v2708_v53, %v2617_v30  ;;  %v2085_v60 = vadd.f32 %v2084_v21, %v2083_v47 }
 0x38a   : > { %v2896_v24 = vsel %vm1131_vm3, %v2847_v10, 0.0  ;;  %v1805_v22 = vpop.xlane.xlu1 %1804  ;;  %v2796_v0 = vadd.f32 %v2795_v11, %v2794_v34  ;;  %v2747_v16 = vmul.f32 %v7896_v23, %v2617_v30  ;;  %v3499_v34 = vrot.slane %v3498_v52, 2 }
 0x38b   : > { %v2897_v61 = vadd.f32 %v2896_v24, %v2895_v39  ;;  %v1897_v4 = vadd.f32 %v1896_v35, %v1805_v22  ;;  %v1935_v63 = vmul.f32 %v7896_v23, %v1805_v22  ;;  %v2036_v9 = vmul.f32 %v7902_v40, %v1805_v22  ;;  %v7920_v24 = vld [vmem:[%s8329_s4 + $0xa0] sm:$0xff] }
 0x38c   : > { %v2848_v50 = vmul.f32 %v7902_v40, %v2617_v30  ;;  %v1808_v35 = vpop.xlane.xlu0 %1807  ;;  %v2797_v25 = vsel %vm1131_vm3, %v2747_v16, 0.0  ;;  %v7914_v30 = vld [vmem:[%s8328_s3 + $0xa0] sm:$0xff]  ;;  %v3500_v22 = vadd.f32 %v3499_v34, %v3498_v52 }
 0x38d   : > { %v1985_v55 = vsel %vm1131_vm3, %v1935_v63, 0.0  ;;  %v2086_v36 = vsel %vm1131_vm3, %v2036_v9, 0.0  ;;  %v1898_v53 = vadd.f32 %v1897_v4, %v1808_v35  ;;  %v2798_v20 = vadd.f32 %v2797_v25, %v2796_v0  ;;  %v7930_v9 = vld [vmem:[%s8328_s3 + $0xa8] sm:$0xff] }
 0x38e   : > { %v2620_v51 = vpop.xlane.xlu1 %2619  ;;  %v1986_v47 = vadd.f32 %v1985_v55, %v1984_v28  ;;  %v2087_v39 = vadd.f32 %v2086_v36, %v2085_v60  ;;  %v2898_v10 = vsel %vm1131_vm3, %v2848_v50, 0.0  ;;  %v1936_v0 = vmul.f32 %v7914_v30, %v1808_v35 }
 0x38f   : > { %v2899_v33 = vadd.f32 %v2898_v10, %v2897_v61  ;;  %v2710_v3 = vadd.f32 %v2709_v18, %v2620_v51  ;;  %v2748_v11 = vmul.f32 %v7914_v30, %v2620_v51  ;;  %v2849_v28 = vmul.f32 %v7920_v24, %v2620_v51  ;;  %v7939_v10 = vld [vmem:[%s8329_s4 + $0xa8] sm:$0xff] }
 0x390   : > { %v2037_v61 = vmul.f32 %v7920_v24, %v1808_v35  ;;  %v2623_v18 = vpop.xlane.xlu0 %2622  ;;  %v1987_v34 = vsel %vm1131_vm3, %v1936_v0, 0.0  ;;  %8817 = vst [vmem:[#allocation52_spill] sm:$0xff] %v7939_v10 }
 0x391   : > { %v2799_v21 = vsel %vm1131_vm3, %v2748_v11, 0.0  ;;  %v2900_v4 = vsel %vm1131_vm3, %v2849_v28, 0.0  ;;  %v2711_v63 = vadd.f32 %v2710_v3, %v2623_v18  ;;  %v2749_v16 = vmul.f32 %v7930_v9, %v2623_v18 }
 0x392   : > { %v1811_v60 = vpop.xlane.xlu1 %1810  ;;  %v2800_v50 = vadd.f32 %v2799_v21, %v2798_v20  ;;  %v2901_v52 = vadd.f32 %v2900_v4, %v2899_v33  ;;  %v2088_v35 = vsel %vm1131_vm3, %v2037_v61, 0.0  ;;  %v1988_v55 = vadd.f32 %v1987_v34, %v1986_v47  ;;  %v7948_v61 = vld [vmem:[%s8328_s3 + $0xb0] sm:$0xff] }
 0x393   : > { %v2089_v36 = vadd.f32 %v2088_v35, %v2087_v39  ;;  %v1899_v25 = vadd.f32 %v1898_v53, %v1811_v60  ;;  %v1937_v51 = vmul.f32 %v7930_v9, %v1811_v60  ;;  %v2038_v3 = vmul.f32 %v7939_v10, %v1811_v60  ;;  %8818 = vst [vmem:[#allocation47_spill] sm:$0xff] %v7948_v61 }
 0x394   : > { %v2801_v11 = vsel %vm1131_vm3, %v2749_v16, 0.0  ;;  %v2850_v20 = vmul.f32 %v7939_v10, %v2623_v18  ;;  %v1814_v33 = vpop.xlane.xlu0 %1813  ;;  %v3501_v28 = vrot.slane %v3500_v22, 1 }
 0x395   : > { %v1989_v0 = vsel %vm1131_vm3, %v1937_v51, 0.0  ;;  %v2802_v47 = vadd.f32 %v2801_v11, %v2800_v50  ;;  %v1900_v53 = vadd.f32 %v1899_v25, %v1814_v33  ;;  %v1938_v21 = vmul.f32 %v7948_v61, %v1814_v33  ;;  %v7957_v50 = vld [vmem:[%s8329_s4 + $0xb0] sm:$0xff] }
 0x396   : > { %v2626_v39 = vpop.xlane.xlu1 %2625  ;;  %v1990_v4 = vadd.f32 %v1989_v0, %v1988_v55  ;;  %v2090_v60 = vsel %vm1131_vm3, %v2038_v3, 0.0  ;;  %v2902_v16 = vsel %vm1131_vm3, %v2850_v20, 0.0  ;;  %v2039_v55 = vmul.f32 %v7957_v50, %v1814_v33  ;;  %v7974_v33 = vld [vmem:[%s8329_s4 + $0xb8] sm:$0xff] }
 0x397   : > { %v2712_v18 = vadd.f32 %v2711_v63, %v2626_v39  ;;  %v2091_v34 = vadd.f32 %v2090_v60, %v2089_v36  ;;  %v2903_v35 = vadd.f32 %v2902_v16, %v2901_v52  ;;  %v2750_v51 = vmul.f32 %v7948_v61, %v2626_v39  ;;  %8819 = vst [vmem:[#allocation50_spill] sm:$0xff] %v7974_v33 }
 0x398   : > { %v2851_v25 = vmul.f32 %v7957_v50, %v2626_v39  ;;  %v1991_v11 = vsel %vm1131_vm3, %v1938_v21, 0.0  ;;  %v2629_v0 = vpop.xlane.xlu0 %2628  ;;  %v3502_v3 = vadd.f32 %v3501_v28, %v3500_v22  ;;  %v2092_v27 = vsel %vm1131_vm3, %v2039_v55, 0.0  ;;  %v7968_v39 = vld [vmem:[%s8328_s3 + $0xb8] sm:$0xff] }
 0x399   : > { %v2803_v20 = vsel %vm1131_vm3, %v2750_v51, 0.0  ;;  %v1992_v52 = vadd.f32 %v1991_v11, %v1990_v4  ;;  %v2713_v60 = vadd.f32 %v2712_v18, %v2629_v0  ;;  %v2093_v10 = vadd.f32 %v2092_v27, %v2091_v34 }
 0x39a   : > { %v2904_v63 = vsel %vm1131_vm3, %v2851_v25, 0.0  ;;  %v1817_v36 = vpop.xlane.xlu1 %1816  ;;  %v2804_v16 = vadd.f32 %v2803_v20, %v2802_v47  ;;  %v2751_v47 = vmul.f32 %v7968_v39, %v2629_v0  ;;  %v2852_v21 = vmul.f32 %v7974_v33, %v2629_v0  ;;  %v7987_v0 = vld [vmem:[%s8328_s3 + $0xc0] sm:$0xff] }
 0x39b   : > { %v2905_v43 = vadd.f32 %v2904_v63, %v2903_v35  ;;  %v1901_v61 = vadd.f32 %v1900_v53, %v1817_v36  ;;  %v1939_v22 = vmul.f32 %v7968_v39, %v1817_v36  ;;  %v2040_v28 = vmul.f32 %v7974_v33, %v1817_v36 }
 0x39c   : > { %v1820_v53 = vpop.xlane.xlu0 %1819  ;;  %v3742_v27 = vmul.f32 %v7456_v57, %v3502_v3  ;;  %v2805_v34 = vsel %vm1131_vm3, %v2751_v47, 0.0  ;;  %v2906_v20 = vsel %vm1131_vm3, %v2852_v21, 0.0  ;;  %v7993_v3 = vld [vmem:[%s8329_s4 + $0xc0] sm:$0xff]  ;;  %v8004_v21 = vld [vmem:[%s8328_s3 + $0xc8] sm:$0xff] }
 0x39d   : > { %v1993_v4 = vsel %vm1131_vm3, %v1939_v22, 0.0  ;;  %v2094_v18 = vsel %vm1131_vm3, %v2040_v28, 0.0  ;;  %v1902_v51 = vadd.f32 %v1901_v61, %v1820_v53  ;;  %v2806_v55 = vadd.f32 %v2805_v34, %v2804_v16  ;;  %8820 = vst [vmem:[#allocation59_spill] sm:$0xff] %v7993_v3 }
 0x39e   : > { %v2632_v35 = vpop.xlane.xlu1 %2631  ;;  %v1994_v25 = vadd.f32 %v1993_v4, %v1992_v52  ;;  %v2095_v11 = vadd.f32 %v2094_v18, %v2093_v10  ;;  %v2907_v63 = vadd.f32 %v2906_v20, %v2905_v43  ;;  %v1940_v10 = vmul.f32 %v7987_v0, %v1820_v53 }
 0x39f   : > { %v2714_v36 = vadd.f32 %v2713_v60, %v2632_v35  ;;  %v2752_v57 = vmul.f32 %v7987_v0, %v2632_v35  ;;  %v2853_v61 = vmul.f32 %v7993_v3, %v2632_v35  ;;  %v2041_v52 = vmul.f32 %v7993_v3, %v1820_v53 }
 0x3a0   : > { %v2635_v43 = vpop.xlane.xlu0 %2634  ;;  %v3743_v60 = vsel %vm1303_vm2, %v3742_v27, 0.0  ;;  %v1995_v53 = vsel %vm1131_vm3, %v1940_v10, 0.0 }
 0x3a1   : > { %v2807_v16 = vsel %vm1131_vm3, %v2752_v57, 0.0  ;;  %v2908_v22 = vsel %vm1131_vm3, %v2853_v61, 0.0  ;;  %v2715_v47 = vadd.f32 %v2714_v36, %v2635_v43  ;;  %v2753_v4 = vmul.f32 %v8004_v21, %v2635_v43  ;;  %v8013_v36 = vld [vmem:[%s8329_s4 + $0xc8] sm:$0xff] }
 0x3a2   : > { %v1823_v28 = vpop.xlane.xlu1 %1822  ;;  %v2808_v18 = vadd.f32 %v2807_v16, %v2806_v55  ;;  %v2909_v34 = vadd.f32 %v2908_v22, %v2907_v63  ;;  %v2096_v35 = vsel %vm1131_vm3, %v2041_v52, 0.0  ;;  %v1996_v27 = vadd.f32 %v1995_v53, %v1994_v25  ;;  %8821 = vst [vmem:[#allocation60_spill] sm:$0xff] %v8013_v36  ;;  %v8022_v52 = vld [vmem:[%s8328_s3 + $0xd0] sm:$0xff] }
 0x3a3   : > { %v2097_v20 = vadd.f32 %v2096_v35, %v2095_v11  ;;  %v1903_v57 = vadd.f32 %v1902_v51, %v1823_v28  ;;  %v1941_v61 = vmul.f32 %v8004_v21, %v1823_v28  ;;  %v2042_v3 = vmul.f32 %v8013_v36, %v1823_v28  ;;  %8822 = vst [vmem:[#allocation57_spill] sm:$0xff] %v8022_v52 }
 0x3a4   : > { %v2809_v33 = vsel %vm1131_vm3, %v2753_v4, 0.0  ;;  %v2854_v55 = vmul.f32 %v8013_v36, %v2635_v43  ;;  %v1826_v63 = vpop.xlane.xlu0 %1825 }
 0x3a5   : > { %3744 = vadd.xlane.f32.xlu0 %v3743_v60  ;;  %v1997_v10 = vsel %vm1131_vm3, %v1941_v61, 0.0  ;;  %v2810_v25 = vadd.f32 %v2809_v33, %v2808_v18  ;;  %v1904_v51 = vadd.f32 %v1903_v57, %v1826_v63  ;;  %v1942_v16 = vmul.f32 %v8022_v52, %v1826_v63  ;;  %v8031_v33 = vld [vmem:[%s8329_s4 + $0xd0] sm:$0xff] }
 0x3a6   : > { %v2638_v11 = vpop.xlane.xlu1 %2637  ;;  %v1998_v22 = vadd.f32 %v1997_v10, %v1996_v27  ;;  %v2098_v28 = vsel %vm1131_vm3, %v2042_v3, 0.0  ;;  %v2910_v4 = vsel %vm1131_vm3, %v2854_v55, 0.0  ;;  %8823 = vst [vmem:[#allocation58_spill] sm:$0xff] %v8031_v33  ;;  %v2043_v27 = vmul.f32 %v8031_v33, %v1826_v63 }
 0x3a7   : > { %v2716_v43 = vadd.f32 %v2715_v47, %v2638_v11  ;;  %v2099_v53 = vadd.f32 %v2098_v28, %v2097_v20  ;;  %v2911_v60 = vadd.f32 %v2910_v4, %v2909_v34  ;;  %v2754_v35 = vmul.f32 %v8022_v52, %v2638_v11 }
 0x3a8   : > { %v2855_v18 = vmul.f32 %v8031_v33, %v2638_v11  ;;  %v1999_v57 = vsel %vm1131_vm3, %v1942_v16, 0.0  ;;  %v2641_v61 = vpop.xlane.xlu0 %2640  ;;  %v2100_v4 = vsel %vm1131_vm3, %v2043_v27, 0.0  ;;  %v8042_v11 = vld [vmem:[%s8328_s3 + $0xd8] sm:$0xff] }
 0x3a9   : > { %v2811_v3 = vsel %vm1131_vm3, %v2754_v35, 0.0  ;;  %v2000_v20 = vadd.f32 %v1999_v57, %v1998_v22  ;;  %v2717_v55 = vadd.f32 %v2716_v43, %v2641_v61  ;;  %v2101_v52 = vadd.f32 %v2100_v4, %v2099_v53  ;;  %v8048_v16 = vld [vmem:[%s8329_s4 + $0xd8] sm:$0xff] }
 0x3aa   : > { %v2912_v47 = vsel %vm1131_vm3, %v2855_v18, 0.0  ;;  %v1829_v34 = vpop.xlane.xlu1 %1828  ;;  %v2812_v10 = vadd.f32 %v2811_v3, %v2810_v25  ;;  %8824 = vst [vmem:[#allocation69_spill] sm:$0xff] %v8048_v16  ;;  %v2755_v25 = vmul.f32 %v8042_v11, %v2641_v61  ;;  %v2856_v43 = vmul.f32 %v8048_v16, %v2641_v61  ;;  %v8060_v61 = vld [vmem:[%s8328_s3 + $0xe0] sm:$0xff] }
 0x3ab   : > { %v2913_v28 = vadd.f32 %v2912_v47, %v2911_v60  ;;  %v1905_v36 = vadd.f32 %v1904_v51, %v1829_v34  ;;  %v1943_v63 = vmul.f32 %v8042_v11, %v1829_v34  ;;  %v2044_v22 = vmul.f32 %v8048_v16, %v1829_v34  ;;  %8825 = vst [vmem:[#allocation71_spill] sm:$0xff] %v8060_v61 }
 0x3ac   : > { %v1832_v51 = vpop.xlane.xlu0 %1831  ;;  %v2813_v35 = vsel %vm1131_vm3, %v2755_v25, 0.0  ;;  %v2914_v4 = vsel %vm1131_vm3, %v2856_v43, 0.0 }
 0x3ad   : > { %v2001_v53 = vsel %vm1131_vm3, %v1943_v63, 0.0  ;;  %v2102_v60 = vsel %vm1131_vm3, %v2044_v22, 0.0  ;;  %v1906_v57 = vadd.f32 %v1905_v36, %v1832_v51  ;;  %v2814_v47 = vadd.f32 %v2813_v35, %v2812_v10  ;;  %v8066_v22 = vld [vmem:[%s8329_s4 + $0xe0] sm:$0xff] }
 0x3ae   : > { %v2644_v18 = vpop.xlane.xlu1 %2643  ;;  %v2002_v27 = vadd.f32 %v2001_v53, %v2000_v20  ;;  %v2103_v3 = vadd.f32 %v2102_v60, %v2101_v52  ;;  %v2915_v33 = vadd.f32 %v2914_v4, %v2913_v28  ;;  %8826 = vst [vmem:[#allocation67_spill] sm:$0xff] %v8066_v22  ;;  %v1944_v52 = vmul.f32 %v8060_v61, %v1832_v51  ;;  %v8078_v53 = vld [vmem:[%s8328_s3 + $0xe8] sm:$0xff] }
 0x3af   : > { %v2718_v34 = vadd.f32 %v2717_v55, %v2644_v18  ;;  %v2756_v63 = vmul.f32 %v8060_v61, %v2644_v18  ;;  %v2857_v36 = vmul.f32 %v8066_v22, %v2644_v18  ;;  %v2045_v20 = vmul.f32 %v8066_v22, %v1832_v51  ;;  %8828 = vst [vmem:[#allocation73_spill] sm:$0xff] %v8078_v53 }
 0x3b0   : > { %v2647_v10 = vpop.xlane.xlu0 %2646  ;;  %v2003_v4 = vsel %vm1131_vm3, %v1944_v52, 0.0 }
 0x3b1   : > { %v2815_v55 = vsel %vm1131_vm3, %v2756_v63, 0.0  ;;  %v2916_v28 = vsel %vm1131_vm3, %v2857_v36, 0.0  ;;  %v8073_v43 = vadd.f32 %v2718_v34, %v2647_v10  ;;  %v2757_v60 = vmul.f32 %v8078_v53, %v2647_v10  ;;  %v8087_v34 = vld [vmem:[%s8329_s4 + $0xe8] sm:$0xff] }
 0x3b2   : > { %v1835_v25 = vpop.xlane.xlu1 %1834  ;;  %v2816_v35 = vadd.f32 %v2815_v55, %v2814_v47  ;;  %v2917_v18 = vadd.f32 %v2916_v28, %v2915_v33  ;;  %v2104_v51 = vsel %vm1131_vm3, %v2045_v20, 0.0  ;;  %v2004_v22 = vadd.f32 %v2003_v4, %v2002_v27  ;;  %8829 = vst [vmem:[#allocation76_spill] sm:$0xff] %v8087_v34 }
 0x3b3   : > { %8827 = vst [vmem:[#allocation70_spill] sm:$0xff] %v8073_v43  ;;  %v2105_v63 = vadd.f32 %v2104_v51, %v2103_v3  ;;  %v1907_v16 = vadd.f32 %v1906_v57, %v1835_v25  ;;  %v1945_v36 = vmul.f32 %v8078_v53, %v1835_v25  ;;  %v2046_v61 = vmul.f32 %v8087_v34, %v1835_v25  ;;  %v8100_v57 = vld [vmem:[%s8328_s3 + $0xf0] sm:$0xff] }
 0x3b4   : > { %v2817_v43 = vsel %vm1131_vm3, %v2757_v60, 0.0  ;;  %v2858_v33 = vmul.f32 %v8087_v34, %v2647_v10  ;;  %v1838_v47 = vpop.xlane.xlu0 %1837  ;;  %8832 = vst [vmem:[#allocation80_spill] sm:$0xff] %v8100_v57  ;;  %v8108_v10 = vld [vmem:[%s8329_s4 + $0xf0] sm:$0xff] }
 0x3b5   : > { %v2005_v52 = vsel %vm1131_vm3, %v1945_v36, 0.0  ;;  %v8093_v20 = vadd.f32 %v2817_v43, %v2816_v35  ;;  %v8095_v27 = vadd.f32 %v1907_v16, %v1838_v47  ;;  %v1946_v3 = vmul.f32 %v8100_v57, %v1838_v47  ;;  %8833 = vst [vmem:[#allocation83_spill] sm:$0xff] %v8108_v10 }
 0x3b6   : > { %v2006_v55 = vadd.f32 %v2005_v52, %v2004_v22  ;;  %v2106_v28 = vsel %vm1131_vm3, %v2046_v61, 0.0  ;;  %v2918_v25 = vsel %vm1131_vm3, %v2858_v33, 0.0  ;;  %v2047_v16 = vmul.f32 %v8108_v10, %v1838_v47  ;;  %v4538_v33 = vld [vmem:[%s8328_s3] sm:$0xff]  ;;  %v4540_v47 = vld [vmem:[%s8328_s3 + $0x8] sm:$0xff] }
 0x3b7   : > { %8830 = vst [vmem:[#allocation72_spill] sm:$0xff] %v8093_v20  ;;  %8831 = vst [vmem:[#allocation74_spill] sm:$0xff] %v8095_v27  ;;  %v2107_v43 = vadd.f32 %v2106_v28, %v2105_v63  ;;  %v8111_v60 = vadd.f32 %v2918_v25, %v2917_v18  ;;  %v2007_v35 = vsel %vm1131_vm3, %v1946_v3, 0.0  ;;  %v4539_v18 = vld [vmem:[%s8329_s4] sm:$0xff] }
 0x3b8   : > { %v8114_v4 = vadd.f32 %v2007_v35, %v2006_v55  ;;  %v2108_v22 = vsel %vm1131_vm3, %v2047_v16, 0.0  ;;  %v4541_v55 = vld [vmem:[%s8329_s4 + $0x8] sm:$0xff] }
 0x3b9   : > { %8834 = vst [vmem:[#allocation78_spill] sm:$0xff] %v8111_v60  ;;  %v3372_v51 = vpop.xlane.xlu0 %3371  ;;  %v8117_v61 = vadd.f32 %v2108_v22, %v2107_v43 }
 0x3ba   : > { %8835 = vst [vmem:[#allocation81_spill] sm:$0xff] %v8114_v4  ;;  %v3375_v36 = vpop.xlane.xlu1 %3374  ;;  %v3540_v52 = vmul.f32 %v4538_v33, %v3372_v51  ;;  %v3641_v63 = vmul.f32 %v4539_v18, %v3372_v51 }
 0x3bb   : > { %8836 = vst [vmem:[#allocation4_spill] sm:$0xff] %v8117_v61  ;;  %v3541_v3 = vmul.f32 %v4540_v47, %v3375_v36  ;;  %v3642_v28 = vmul.f32 %v4541_v55, %v3375_v36  ;;  %v3503_v25 = vadd.f32 %v3375_v36, %v3372_v51  ;;  %v4542_v47 = vld [vmem:[%s8328_s3 + $0x10] sm:$0xff]  ;;  %v4543_v51 = vld [vmem:[%s8328_s3 + $0x18] sm:$0xff] }
 0x3bc   : > { %v3572_v16 = vsel %vm1131_vm3, %v3540_v52, 0.0  ;;  %v3673_v22 = vsel %vm1131_vm3, %v3641_v63, 0.0  ;;  %v4544_v52 = vld [vmem:[%s8329_s4 + $0x18] sm:$0xff]  ;;  %v4545_v63 = vld [vmem:[%s8329_s4 + $0x10] sm:$0xff] }
 0x3bd   : > { %v3573_v43 = vsel %vm1131_vm3, %v3541_v3, 0.0  ;;  %v3674_v35 = vsel %vm1131_vm3, %v3642_v28, 0.0  ;;  %v3378_v33 = vpop.xlane.xlu0 %3377 }
 0x3be   : > { %v3381_v18 = vpop.xlane.xlu1 %3380  ;;  %v3504_v61 = vadd.f32 %v3503_v25, %v3378_v33  ;;  %v3542_v4 = vmul.f32 %v4542_v47, %v3378_v33  ;;  %v3574_v60 = vadd.f32 %v3573_v43, %v3572_v16  ;;  %v3643_v55 = vmul.f32 %v4545_v63, %v3378_v33 }
 0x3bf   : > { %v3543_v36 = vmul.f32 %v4543_v51, %v3381_v18  ;;  %v3644_v3 = vmul.f32 %v4544_v52, %v3381_v18  ;;  %v3675_v28 = vadd.f32 %v3674_v35, %v3673_v22 }
 0x3c0   : > { %v3575_v25 = vsel %vm1131_vm3, %v3542_v4, 0.0  ;;  %v3505_v47 = vadd.f32 %v3504_v61, %v3381_v18  ;;  %v3676_v20 = vsel %vm1131_vm3, %v3643_v55, 0.0 }
 0x3c1   : > { %v3577_v16 = vsel %vm1131_vm3, %v3543_v36, 0.0  ;;  %v3576_v43 = vadd.f32 %v3575_v25, %v3574_v60  ;;  %v3384_v51 = vpop.xlane.xlu0 %3383  ;;  %v3677_v10 = vadd.f32 %v3676_v20, %v3675_v28  ;;  %v3678_v27 = vsel %vm1131_vm3, %v3644_v3, 0.0 }
 0x3c2   : > { %v3387_v57 = vpop.xlane.xlu1 %3386  ;;  %v3506_v34 = vadd.f32 %v3505_v47, %v3384_v51  ;;  %v3544_v52 = vmul.f32 %v7561_v58, %v3384_v51  ;;  %v3645_v53 = vmul.f32 %v7567_v62, %v3384_v51 }
 0x3c3   : > { %v3545_v35 = vmul.f32 %v7582_v14, %v3387_v57  ;;  %v3646_v4 = vmul.f32 %v7588_v49, %v3387_v57  ;;  %v3578_v61 = vadd.f32 %v3577_v16, %v3576_v43  ;;  %v3679_v22 = vadd.f32 %v3678_v27, %v3677_v10 }
 0x3c4   : > { %v3579_v60 = vsel %vm1131_vm3, %v3544_v52, 0.0  ;;  %v3680_v33 = vsel %vm1131_vm3, %v3645_v53, 0.0  ;;  %v3507_v18 = vadd.f32 %v3506_v34, %v3387_v57 }
 0x3c5   : > { %v3581_v20 = vsel %vm1131_vm3, %v3545_v35, 0.0  ;;  %v3580_v36 = vadd.f32 %v3579_v60, %v3578_v61  ;;  %v3390_v63 = vpop.xlane.xlu0 %3389  ;;  %v3681_v58 = vadd.f32 %v3680_v33, %v3679_v22  ;;  %v3682_v49 = vsel %vm1131_vm3, %v3646_v4, 0.0 }
 0x3c6   : > { %v3393_v55 = vpop.xlane.xlu1 %3392  ;;  %v3508_v62 = vadd.f32 %v3507_v18, %v3390_v63  ;;  %v3546_v3 = vmul.f32 %v7611_v56, %v3390_v63  ;;  %v3647_v14 = vmul.f32 %v7617_v42, %v3390_v63 }
 0x3c7   : > { %v3547_v27 = vmul.f32 %v7640_v1, %v3393_v55  ;;  %v3648_v10 = vmul.f32 %v7646_v45, %v3393_v55  ;;  %v3582_v28 = vadd.f32 %v3581_v20, %v3580_v36  ;;  %v3683_v53 = vadd.f32 %v3682_v49, %v3681_v58 }
 0x3c8   : > { %v3583_v34 = vsel %vm1131_vm3, %v3546_v3, 0.0  ;;  %v3684_v57 = vsel %vm1131_vm3, %v3647_v14, 0.0  ;;  %v3509_v25 = vadd.f32 %v3508_v62, %v3393_v55 }
 0x3c9   : > { %v3585_v47 = vsel %vm1131_vm3, %v3547_v27, 0.0  ;;  %v3584_v16 = vadd.f32 %v3583_v34, %v3582_v28  ;;  %v3396_v43 = vpop.xlane.xlu0 %3395  ;;  %v3685_v56 = vadd.f32 %v3684_v57, %v3683_v53  ;;  %v3686_v45 = vsel %vm1131_vm3, %v3648_v10, 0.0 }
 0x3ca   : > { %v3399_v51 = vpop.xlane.xlu1 %3398  ;;  %v3510_v42 = vadd.f32 %v3509_v25, %v3396_v43  ;;  %v3548_v52 = vmul.f32 %v7663_v15, %v3396_v43  ;;  %v3649_v1 = vmul.f32 %v7674_v12, %v3396_v43 }
 0x3cb   : > { %v3549_v35 = vmul.f32 %v7684_v54, %v3399_v51  ;;  %v3650_v4 = vmul.f32 %v7696_v37, %v3399_v51  ;;  %v3586_v61 = vadd.f32 %v3585_v47, %v3584_v16  ;;  %v3687_v22 = vadd.f32 %v3686_v45, %v3685_v56 }
 0x3cc   : > { %v3587_v60 = vsel %vm1131_vm3, %v3548_v52, 0.0  ;;  %v3688_v33 = vsel %vm1131_vm3, %v3649_v1, 0.0  ;;  %v3511_v18 = vadd.f32 %v3510_v42, %v3399_v51 }
 0x3cd   : > { %v3589_v20 = vsel %vm1131_vm3, %v3549_v35, 0.0  ;;  %v3588_v36 = vadd.f32 %v3587_v60, %v3586_v61  ;;  %v3402_v63 = vpop.xlane.xlu0 %3401  ;;  %v3689_v15 = vadd.f32 %v3688_v33, %v3687_v22  ;;  %v3690_v37 = vsel %vm1131_vm3, %v3650_v4, 0.0 }
 0x3ce   : > { %v3405_v58 = vpop.xlane.xlu1 %3404  ;;  %v3512_v12 = vadd.f32 %v3511_v18, %v3402_v63  ;;  %v3550_v55 = vmul.f32 %v7706_v26, %v3402_v63  ;;  %v3651_v54 = vmul.f32 %v7718_v17, %v3402_v63 }
 0x3cf   : > { %v3551_v62 = vmul.f32 %v7728_v2, %v3405_v58  ;;  %v3652_v3 = vmul.f32 %v7740_v29, %v3405_v58  ;;  %v3590_v14 = vadd.f32 %v3589_v20, %v3588_v36  ;;  %v3691_v49 = vadd.f32 %v3690_v37, %v3689_v15 }
 0x3d0   : > { %v3591_v27 = vsel %vm1131_vm3, %v3550_v55, 0.0  ;;  %v3692_v10 = vsel %vm1131_vm3, %v3651_v54, 0.0  ;;  %v3513_v28 = vadd.f32 %v3512_v12, %v3405_v58 }
 0x3d1   : > { %v3593_v53 = vsel %vm1131_vm3, %v3551_v62, 0.0  ;;  %v3592_v34 = vadd.f32 %v3591_v27, %v3590_v14  ;;  %v3408_v57 = vpop.xlane.xlu0 %3407  ;;  %v3693_v26 = vadd.f32 %v3692_v10, %v3691_v49  ;;  %v3694_v29 = vsel %vm1131_vm3, %v3652_v3, 0.0 }
 0x3d2   : > { %v3411_v25 = vpop.xlane.xlu1 %3410  ;;  %v3514_v17 = vadd.f32 %v3513_v28, %v3408_v57  ;;  %v3552_v47 = vmul.f32 %v7749_v59, %v3408_v57  ;;  %v3653_v2 = vmul.f32 %v7765_v5, %v3408_v57 }
 0x3d3   : > { %v3553_v16 = vmul.f32 %v7774_v41, %v3411_v25  ;;  %v3654_v43 = vmul.f32 %v7787_v8, %v3411_v25  ;;  %v3594_v56 = vadd.f32 %v3593_v53, %v3592_v34  ;;  %v3695_v51 = vadd.f32 %v3694_v29, %v3693_v26 }
 0x3d4   : > { %v3595_v42 = vsel %vm1131_vm3, %v3552_v47, 0.0  ;;  %v3696_v52 = vsel %vm1131_vm3, %v3653_v2, 0.0  ;;  %v3515_v1 = vadd.f32 %v3514_v17, %v3411_v25 }
 0x3d5   : > { %v3597_v45 = vsel %vm1131_vm3, %v3553_v16, 0.0  ;;  %v3596_v35 = vadd.f32 %v3595_v42, %v3594_v56  ;;  %v3414_v4 = vpop.xlane.xlu0 %3413  ;;  %v3697_v59 = vadd.f32 %v3696_v52, %v3695_v51  ;;  %v3698_v8 = vsel %vm1131_vm3, %v3654_v43, 0.0 }
 0x3d6   : > { %v3417_v61 = vpop.xlane.xlu1 %3416  ;;  %v3516_v5 = vadd.f32 %v3515_v1, %v3414_v4  ;;  %v3554_v22 = vmul.f32 %v7795_v19, %v3414_v4  ;;  %v3655_v41 = vmul.f32 %v7801_v13, %v3414_v4  ;;  %v8837_v4 = vld [vmem:[#allocation52_spill] sm:$0xff] }
 0x3d7   : > { %v3555_v60 = vmul.f32 %v7817_v6, %v3417_v61  ;;  %v3656_v33 = vmul.f32 %v7823_v46, %v3417_v61  ;;  %v3598_v18 = vadd.f32 %v3597_v45, %v3596_v35  ;;  %v3699_v20 = vadd.f32 %v3698_v8, %v3697_v59 }
 0x3d8   : > { %v3599_v36 = vsel %vm1131_vm3, %v3554_v22, 0.0  ;;  %v3700_v63 = vsel %vm1131_vm3, %v3655_v41, 0.0  ;;  %v3517_v15 = vadd.f32 %v3516_v5, %v3417_v61 }
 0x3d9   : > { %v3601_v58 = vsel %vm1131_vm3, %v3555_v60, 0.0  ;;  %v3600_v12 = vadd.f32 %v3599_v36, %v3598_v18  ;;  %v3420_v55 = vpop.xlane.xlu0 %3419  ;;  %v3701_v19 = vadd.f32 %v3700_v63, %v3699_v20  ;;  %v3702_v46 = vsel %vm1131_vm3, %v3656_v33, 0.0  ;;  %v8838_v36 = vld [vmem:[#allocation47_spill] sm:$0xff] }
 0x3da   : > { %v3423_v54 = vpop.xlane.xlu1 %3422  ;;  %v3518_v13 = vadd.f32 %v3517_v15, %v3420_v55  ;;  %v3556_v37 = vmul.f32 %v7840_v7, %v3420_v55  ;;  %v3657_v6 = vmul.f32 %v7846_v48, %v3420_v55 }
 0x3db   : > { %v3557_v62 = vmul.f32 %v7857_v31, %v3423_v54  ;;  %v3658_v3 = vmul.f32 %v7866_v32, %v3423_v54  ;;  %v3602_v14 = vadd.f32 %v3601_v58, %v3600_v12  ;;  %v3703_v49 = vadd.f32 %v3702_v46, %v3701_v19 }
 0x3dc   : > { %v3603_v27 = vsel %vm1131_vm3, %v3556_v37, 0.0  ;;  %v3704_v10 = vsel %vm1131_vm3, %v3657_v6, 0.0  ;;  %v3519_v28 = vadd.f32 %v3518_v13, %v3423_v54 }
 0x3dd   : > { %v3605_v53 = vsel %vm1131_vm3, %v3557_v62, 0.0  ;;  %v3604_v34 = vadd.f32 %v3603_v27, %v3602_v14  ;;  %v3426_v57 = vpop.xlane.xlu0 %3425  ;;  %v3705_v7 = vadd.f32 %v3704_v10, %v3703_v49  ;;  %v3706_v32 = vsel %vm1131_vm3, %v3658_v3, 0.0  ;;  %v8839_v14 = vld [vmem:[#allocation50_spill] sm:$0xff] }
 0x3de   : > { %v3429_v26 = vpop.xlane.xlu1 %3428  ;;  %v3520_v48 = vadd.f32 %v3519_v28, %v3426_v57  ;;  %v3558_v25 = vmul.f32 %v7875_v44, %v3426_v57  ;;  %v3659_v31 = vmul.f32 %v7885_v38, %v3426_v57 }
 0x3df   : > { %v3559_v17 = vmul.f32 %v7896_v23, %v3429_v26  ;;  %v3660_v47 = vmul.f32 %v7902_v40, %v3429_v26  ;;  %v3606_v2 = vadd.f32 %v3605_v53, %v3604_v34  ;;  %v3707_v29 = vadd.f32 %v3706_v32, %v3705_v7 }
 0x3e0   : > { %v3607_v16 = vsel %vm1131_vm3, %v3558_v25, 0.0  ;;  %v3708_v43 = vsel %vm1131_vm3, %v3659_v31, 0.0  ;;  %v3521_v56 = vadd.f32 %v3520_v48, %v3429_v26 }
 0x3e1   : > { %v3609_v51 = vsel %vm1131_vm3, %v3559_v17, 0.0  ;;  %v3608_v42 = vadd.f32 %v3607_v16, %v3606_v2  ;;  %v3432_v52 = vpop.xlane.xlu0 %3431  ;;  %v3709_v44 = vadd.f32 %v3708_v43, %v3707_v29  ;;  %v3710_v40 = vsel %vm1131_vm3, %v3660_v47, 0.0  ;;  %v8841_v2 = vld [vmem:[#allocation57_spill] sm:$0xff]  ;;  %v8842_v43 = vld [vmem:[#allocation60_spill] sm:$0xff] }
 0x3e2   : > { %v3435_v1 = vpop.xlane.xlu1 %3434  ;;  %v3522_v38 = vadd.f32 %v3521_v56, %v3432_v52  ;;  %v3560_v45 = vmul.f32 %v7914_v30, %v3432_v52  ;;  %v3661_v23 = vmul.f32 %v7920_v24, %v3432_v52 }
 0x3e3   : > { %v3561_v35 = vmul.f32 %v7930_v9, %v3435_v1  ;;  %v3662_v59 = vmul.f32 %v8837_v4, %v3435_v1  ;;  %v3610_v61 = vadd.f32 %v3609_v51, %v3608_v42  ;;  %v3711_v5 = vadd.f32 %v3710_v40, %v3709_v44  ;;  %v8843_v44 = vld [vmem:[#allocation58_spill] sm:$0xff] }
 0x3e4   : > { %v3611_v22 = vsel %vm1131_vm3, %v3560_v45, 0.0  ;;  %v3712_v41 = vsel %vm1131_vm3, %v3661_v23, 0.0  ;;  %v3523_v8 = vadd.f32 %v3522_v38, %v3435_v1 }
 0x3e5   : > { %v3613_v60 = vsel %vm1131_vm3, %v3561_v35, 0.0  ;;  %v3612_v33 = vadd.f32 %v3611_v22, %v3610_v61  ;;  %v3438_v18 = vpop.xlane.xlu0 %3437  ;;  %v3713_v30 = vadd.f32 %v3712_v41, %v3711_v5  ;;  %v3714_v15 = vsel %vm1131_vm3, %v3662_v59, 0.0  ;;  %v8844_v59 = vld [vmem:[#allocation70_spill] sm:$0xff] }
 0x3e6   : > { %v3441_v20 = vpop.xlane.xlu1 %3440  ;;  %v3524_v24 = vadd.f32 %v3523_v8, %v3438_v18  ;;  %v3562_v63 = vmul.f32 %v8838_v36, %v3438_v18  ;;  %v3663_v9 = vmul.f32 %v7957_v50, %v3438_v18 }
 0x3e7   : > { %v3614_v58 = vadd.f32 %v3613_v60, %v3612_v33  ;;  %v3563_v12 = vmul.f32 %v7968_v39, %v3441_v20  ;;  %v3715_v55 = vadd.f32 %v3714_v15, %v3713_v30  ;;  %v3664_v49 = vmul.f32 %v8839_v14, %v3441_v20  ;;  %v8840_v39 = vld [vmem:[#allocation59_spill] sm:$0xff]  ;;  %v8845_v60 = vld [vmem:[#allocation49_spill] sm:$0xff] }
 0x3e8   : > { %v3615_v19 = vsel %vm1131_vm3, %v3562_v63, 0.0  ;;  %v3525_v54 = vadd.f32 %v3524_v24, %v3441_v20  ;;  %v3716_v37 = vsel %vm1131_vm3, %v3663_v9, 0.0  ;;  %v8846_v33 = vld [vmem:[#allocation41_spill] sm:$0xff]  ;;  %v8847_v30 = vld [vmem:[#allocation71_spill] sm:$0xff] }
 0x3e9   : > { %v3616_v13 = vadd.f32 %v3615_v19, %v3614_v58  ;;  %v3444_v6 = vpop.xlane.xlu0 %3443  ;;  %v3617_v50 = vsel %vm1131_vm3, %v3563_v12, 0.0  ;;  %v3717_v27 = vadd.f32 %v3716_v37, %v3715_v55  ;;  %v3718_v48 = vsel %vm1131_vm3, %v3664_v49, 0.0  ;;  %v8848_v9 = vld [vmem:[#allocation69_spill] sm:$0xff] }
 0x3ea   : > { %v3447_v46 = vpop.xlane.xlu1 %3446  ;;  %v3526_v62 = vadd.f32 %v3525_v54, %v3444_v6  ;;  %v3564_v3 = vmul.f32 %v7987_v0, %v3444_v6  ;;  %v3665_v53 = vmul.f32 %v8840_v39, %v3444_v6  ;;  %v1323_v18 = vmul.f32 %v8846_v33, %v8845_v60  ;;  %v8850_v55 = vld [vmem:[#allocation73_spill] sm:$0xff]  ;;  %v8851_v54 = vld [vmem:[#allocation67_spill] sm:$0xff]  ;;  %v8852_v6 = vld [vmem:[#allocation76_spill] sm:$0xff] }
 0x3eb   : > { %v3618_v28 = vadd.f32 %v3617_v50, %v3616_v13  ;;  %v3565_v25 = vmul.f32 %v8004_v21, %v3447_v46  ;;  %v3719_v31 = vadd.f32 %v3718_v48, %v3717_v27  ;;  %v3666_v56 = vmul.f32 %v8842_v43, %v3447_v46  ;;  %v8853_v27 = vld [vmem:[#allocation80_spill] sm:$0xff]  ;;  %v8856_v33 = vld [vmem:[#allocation78_spill] sm:$0xff] }
 0x3ec   : > { %v3527_v10 = vadd.f32 %v3526_v62, %v3447_v46  ;;  %v3619_v57 = vsel %vm1131_vm3, %v3564_v3, 0.0  ;;  %v3720_v32 = vsel %vm1131_vm3, %v3665_v53, 0.0 }
 0x3ed   : > { %v3450_v34 = vpop.xlane.xlu0 %3449  ;;  %v3620_v0 = vadd.f32 %v3619_v57, %v3618_v28  ;;  %v3621_v51 = vsel %vm1131_vm3, %v3565_v25, 0.0  ;;  %v3721_v42 = vadd.f32 %v3720_v32, %v3719_v31  ;;  %v3722_v40 = vsel %vm1131_vm3, %v3666_v56, 0.0  ;;  %v8854_v28 = vld [vmem:[#allocation83_spill] sm:$0xff]  ;;  %v4546_v56 = vld [vmem:[%s8328_s3 + $0xf8] sm:$0xff] }
 0x3ee   : > { %v3453_v7 = vpop.xlane.xlu1 %3452  ;;  %v3528_v26 = vadd.f32 %v3527_v10, %v3450_v34  ;;  %v3566_v29 = vmul.f32 %v8841_v2, %v3450_v34  ;;  %v3667_v1 = vmul.f32 %v8843_v44, %v3450_v34 }
 0x3ef   : > { %v3622_v52 = vadd.f32 %v3621_v51, %v3620_v0  ;;  %v3567_v35 = vmul.f32 %v8042_v11, %v3453_v7  ;;  %v3723_v4 = vadd.f32 %v3722_v40, %v3721_v42  ;;  %v3668_v15 = vmul.f32 %v8848_v9, %v3453_v7  ;;  %v8849_v11 = vld [vmem:[#allocation74_spill] sm:$0xff] }
 0x3f0   : > { %v3529_v17 = vadd.f32 %v3528_v26, %v3453_v7  ;;  %v3623_v21 = vsel %vm1131_vm3, %v3566_v29, 0.0  ;;  %v3724_v22 = vsel %vm1131_vm3, %v3667_v1, 0.0  ;;  %v4547_v1 = vld [vmem:[%s8329_s4 + $0xf8] sm:$0xff] }
 0x3f1   : > { %v3456_v47 = vpop.xlane.xlu0 %3455  ;;  %v3624_v5 = vadd.f32 %v3623_v21, %v3622_v52  ;;  %v3625_v63 = vsel %vm1131_vm3, %v3567_v35, 0.0  ;;  %v3725_v12 = vadd.f32 %v3724_v22, %v3723_v4  ;;  %v3726_v57 = vsel %vm1131_vm3, %v3668_v15, 0.0 }
 0x3f2   : > { %v3459_v16 = vpop.xlane.xlu1 %3458  ;;  %v3530_v38 = vadd.f32 %v3529_v17, %v3456_v47  ;;  %v3568_v20 = vmul.f32 %v8847_v30, %v3456_v47  ;;  %v3669_v13 = vmul.f32 %v8851_v54, %v3456_v47 }
 0x3f3   : > { %v3569_v19 = vmul.f32 %v8850_v55, %v3459_v16  ;;  %v3670_v46 = vmul.f32 %v8852_v6, %v3459_v16  ;;  %v3626_v62 = vadd.f32 %v3625_v63, %v3624_v5  ;;  %v3727_v25 = vadd.f32 %v3726_v57, %v3725_v12  ;;  %v8858_v6 = vld [vmem:[#allocation4_spill] sm:$0xff] }
 0x3f4   : > { %v3531_v41 = vadd.f32 %v3530_v38, %v3459_v16  ;;  %v3627_v50 = vsel %vm1131_vm3, %v3568_v20, 0.0  ;;  %v3728_v31 = vsel %vm1131_vm3, %v3669_v13, 0.0 }
 0x3f5   : > { %v8240_v45 = vpop.xlane.xlu0 %3461  ;;  %v3629_v48 = vsel %vm1131_vm3, %v3569_v19, 0.0  ;;  %v3730_v32 = vsel %vm1131_vm3, %v3670_v46, 0.0  ;;  %v3628_v17 = vadd.f32 %v3627_v50, %v3626_v62  ;;  %v8857_v19 = vld [vmem:[#allocation81_spill] sm:$0xff] }
 0x3f6   : > { %v2650_v23 = vpop.xlane.xlu1 %2649  ;;  %v3532_v3 = vadd.f32 %v3531_v41, %v8240_v45  ;;  %v3570_v40 = vmul.f32 %v8853_v27, %v8240_v45  ;;  %v8855_v41 = vld [vmem:[#allocation72_spill] sm:$0xff] }
 0x3f7   : > { %v2720_v61 = vadd.f32 %v8844_v59, %v2650_v23  ;;  %v2758_v10 = vmul.f32 %v8853_v27, %v2650_v23  ;;  %v2859_v39 = vmul.f32 %v8854_v28, %v2650_v23  ;;  %v3729_v23 = vadd.f32 %v3728_v31, %v3727_v25 }
 0x3f8   : > { %v3630_v59 = vadd.f32 %v3629_v48, %v3628_v17 }
 0x3f9   : > { %v2653_v8 = vpop.xlane.xlu0 %2652  ;;  %v2819_v16 = vsel %vm1131_vm3, %v2758_v10, 0.0  ;;  %v2920_v43 = vsel %vm1131_vm3, %v2859_v39, 0.0 }
 0x3fa   : > { %v1841_v24 = vpop.xlane.xlu1 %1840  ;;  %v2721_v36 = vadd.f32 %v2720_v61, %v2653_v8  ;;  %v2759_v44 = vmul.f32 %v4546_v56, %v2653_v8  ;;  %v2860_v38 = vmul.f32 %v4547_v1, %v2653_v8  ;;  %v3671_v61 = vmul.f32 %v8854_v28, %v8240_v45 }
 0x3fb   : > { %v1909_v58 = vadd.f32 %v8849_v11, %v1841_v24  ;;  %v1947_v51 = vmul.f32 %v4546_v56, %v1841_v24  ;;  %v2048_v35 = vmul.f32 %v4547_v1, %v1841_v24  ;;  %v2820_v60 = vadd.f32 %v2819_v16, %v8855_v41 }
 0x3fc   : > { %v2722_v37 = vrot.slane %v2721_v36, 4  ;;  %v2921_v30 = vadd.f32 %v2920_v43, %v8856_v33  ;;  %v2922_v63 = vsel %vm1131_vm3, %v2860_v38, 0.0  ;;  %v3731_v11 = vadd.f32 %v3730_v32, %v3729_v23 }
 0x3fd   : > { %v1910_v14 = vrot.slane %v1909_v58, 4  ;;  %v8257_v49 = vpop.xlane.xlu0 %2120  ;;  %v2009_v8 = vsel %vm1131_vm3, %v1947_v51, 0.0  ;;  %v2110_v9 = vsel %vm1131_vm3, %v2048_v35, 0.0  ;;  %v3732_v55 = vsel %vm1131_vm3, %v3671_v61, 0.0 }
 0x3fe   : > { %v2723_v53 = vadd.f32 %v2722_v37, %v2721_v36  ;;  %v3465_v34 = vpop.xlane.xlu1 %3464  ;;  %v2821_v36 = vsel %vm1131_vm3, %v2759_v44, 0.0  ;;  %v2010_v54 = vadd.f32 %v2009_v8, %v8857_v19  ;;  %v2923_v37 = vadd.f32 %v2922_v63, %v2921_v30 }
 0x3ff   : > { %v1911_v7 = vadd.f32 %v1910_v14, %v1909_v58  ;;  %v3533_v26 = vadd.f32 %v3532_v3, %v3465_v34  ;;  %v3571_v15 = vmul.f32 %v4546_v56, %v3465_v34  ;;  %v3672_v45 = vmul.f32 %v4547_v1, %v3465_v34 }
 0x400   : > { %v2724_v0 = vrot.slane %v2723_v53, 2  ;;  %v3631_v58 = vsel %vm1131_vm3, %v3570_v40, 0.0  ;;  %v2822_v13 = vadd.f32 %v2821_v36, %v2820_v60  ;;  %v2111_v46 = vadd.f32 %v2110_v9, %v8858_v6 }
 0x401   : > { %v1912_v47 = vrot.slane %v1911_v7, 2  ;;  %v3534_v2 = vrot.slane %v3533_v26, 4  ;;  %v1319_v29 = vpop.permute.xlu0 %1318  ;;  %v3633_v3 = vsel %vm1131_vm3, %v3571_v15, 0.0  ;;  %v3734_v14 = vsel %vm1131_vm3, %v3672_v45, 0.0 }
 0x402   : > { %v2725_v42 = vadd.f32 %v2724_v0, %v2723_v53  ;;  %1322 = vst.msk [vmem:[%s7389_s17] sm:$0x1] %vm1321_vm5, %v1319_v29  ;;  %v3632_v50 = vadd.f32 %v3631_v58, %v3630_v59  ;;  %v3733_v27 = vadd.f32 %v3732_v55, %v3731_v11  ;;  %v2011_v10 = vrot.slane %v2010_v54, 4 }
 0x403   : > { %v1913_v52 = vadd.f32 %v1912_v47, %v1911_v7  ;;  %v3535_v21 = vadd.f32 %v3534_v2, %v3533_v26  ;;  %1325 = vst.msk [vmem:[%s7389_s17] sm:$0x1] %vm1324_vm6, %v1323_v18  ;;  %v2823_v28 = vrot.slane %v2822_v13, 4  ;;  %v2924_v39 = vrot.slane %v2923_v37, 4 }
 0x404   : > { %v2726_v4 = vrot.slane %v2725_v42, 1  ;;  %v2112_v53 = vrot.slane %v2111_v46, 4  ;;  %v3634_v34 = vadd.f32 %v3633_v3, %v3632_v50  ;;  %v3735_v57 = vadd.f32 %v3734_v14, %v3733_v27  ;;  %v2933_v14 = vpop.xlane.xlu1 %2932 }
 0x405   : > { %v1914_v5 = vrot.slane %v1913_v52, 1  ;;  %v3536_v22 = vrot.slane %v3535_v21, 2  ;;  %v2012_v26 = vadd.f32 %v2011_v10, %v2010_v54  ;;  %v2824_v48 = vadd.f32 %v2823_v28, %v2822_v13 }
 0x406   : > { %v2727_v20 = vadd.f32 %v2726_v4, %v2725_v42  ;;  %v2925_v25 = vadd.f32 %v2924_v39, %v2923_v37  ;;  %v2113_v0 = vadd.f32 %v2112_v53, %v2111_v46  ;;  %v3635_v17 = vrot.slane %v3634_v34, 4 }
 0x407   : > { %v1915_v18 = vadd.f32 %v1914_v5, %v1913_v52  ;;  %v3537_v24 = vadd.f32 %v3536_v22, %v3535_v21  ;;  %v3736_v47 = vrot.slane %v3735_v57, 4  ;;  %v2013_v16 = vrot.slane %v2012_v26, 2 }
 0x408   : > { %4463 = vrcp.f32 %v2727_v20  ;;  %v2825_v56 = vrot.slane %v2824_v48, 2  ;;  %v2926_v51 = vrot.slane %v2925_v25, 2  ;;  %v2114_v52 = vrot.slane %v2113_v0, 2 }
 0x409   : > { %4465 = vrcp.f32 %v1915_v18  ;;  %v3538_v12 = vrot.slane %v3537_v24, 1  ;;  %v3636_v44 = vadd.f32 %v3635_v17, %v3634_v34  ;;  %v3737_v1 = vadd.f32 %v3736_v47, %v3735_v57 }
 0x40a   : > { %v2014_v21 = vadd.f32 %v2013_v16, %v2012_v26  ;;  %v2826_v23 = vadd.f32 %v2825_v56, %v2824_v48  ;;  %v2927_v40 = vadd.f32 %v2926_v51, %v2925_v25  ;;  %v2115_v4 = vadd.f32 %v2114_v52, %v2113_v0 }
 0x40b   : > { %v3539_v62 = vadd.f32 %v3538_v12, %v3537_v24  ;;  %v3637_v59 = vrot.slane %v3636_v44, 2  ;;  %v3738_v61 = vrot.slane %v3737_v1, 2 }
 0x40c   : > { %v2015_v5 = vrot.slane %v2014_v21, 1  ;;  %v2827_v22 = vrot.slane %v2826_v23, 1  ;;  %v2928_v41 = vrot.slane %v2927_v40, 1  ;;  %v2116_v30 = vrot.slane %v2115_v4, 1 }
 0x40d   : > { %4467 = vrcp.f32 %v3539_v62  ;;  %v3638_v60 = vadd.f32 %v3637_v59, %v3636_v44  ;;  %v3739_v33 = vadd.f32 %v3738_v61, %v3737_v1 }
 0x40e   : > { %v2828_v36 = vadd.f32 %v2827_v22, %v2826_v23  ;;  %v2929_v24 = vadd.f32 %v2928_v41, %v2927_v40  ;;  %v2117_v45 = vadd.f32 %v2116_v30, %v2115_v4 }
 0x40f   : > { %v3639_v9 = vrot.slane %v3638_v60, 1  ;;  %v3740_v11 = vrot.slane %v3739_v33, 1 }
 0x411   : > { %v3640_v37 = vadd.f32 %v3639_v9, %v3638_v60  ;;  %v3741_v6 = vadd.f32 %v3740_v11, %v3739_v33 }
 0x412   : > { %v4464_v7 = vpop.eup %4463 }
 0x413   : > { %v4466_v31 = vpop.eup %4465  ;;  %v2936_v32 = vmul.f32 %v4464_v7, %v2727_v20  ;;  %2950 = vst.msk [vmem:[%s7300_s14 + $0x2] sm:$0x1] %vm1314_vm4, %v4464_v7 }
 0x414   : > { %v2124_v2 = vmul.f32 %v4466_v31, %v1915_v18  ;;  %2138 = vst.msk [vmem:[%s7300_s14 + $0x1] sm:$0x1] %vm1314_vm4, %v4466_v31  ;;  %v2016_v18 = vadd.f32 %v2015_v5, %v2014_v21 }
 0x415   : > { %v2937_v29 = vadd.f32 1e-07, %v2936_v32 }
 0x416   : > { %v2125_v43 = vadd.f32 1e-07, %v2124_v2 }
 0x417   : > { %v4468_v42 = vpop.eup %4467  ;;  %4469 = vrcp.f32 %v2937_v29 }
 0x418   : > { %4471 = vrcp.f32 %v2125_v43  ;;  %v3748_v38 = vmul.f32 %v4468_v42, %v3539_v62  ;;  %3762 = vst.msk [vmem:[%s7300_s14 + $0x3] sm:$0x1] %vm1314_vm4, %v4468_v42 }
 0x41a   : > { %v3749_v35 = vadd.f32 1e-07, %v3748_v38 }
 0x41c   : > { %4473 = vrcp.f32 %v3749_v35 }
 0x421   : > { %v4470_v8 = vpop.eup %4469 }
 0x422   : > { %v4472_v20 = vpop.eup %4471  ;;  %v2939_v63 = vmul.f32 %v4470_v8, %v4464_v7 }
 0x423   : > { %v2127_v15 = vmul.f32 %v4472_v20, %v4466_v31 }
 0x424   : > { %v2940_v58 = vmul.f32 %v2939_v63, %v2828_v36  ;;  %v2942_v12 = vmul.f32 %v2939_v63, %v2929_v24  ;;  %v2948_v50 = vmul.f32 %v2939_v63, %v2933_v14 }
 0x425   : > { %v2128_v55 = vmul.f32 %v2127_v15, %v2016_v18  ;;  %v2136_v19 = vmul.f32 %v2127_v15, %v8257_v49  ;;  %v2130_v54 = vmul.f32 %v2127_v15, %v2117_v45 }
 0x426   : > { %v4474_v13 = vpop.eup %4473  ;;  %2941 = vst.msk [vmem:[%s7389_s17 + $0x2] sm:$0x1] %vm1314_vm4, %v2940_v58  ;;  %2944 = vrot.lane.b32.xlu0 %v2942_v12, %s4559_s12 }
 0x427   : > { %2129 = vst.msk [vmem:[%s7389_s17 + $0x1] sm:$0x1] %vm1314_vm4, %v2128_v55  ;;  %2132 = vrot.lane.b32.xlu1 %v2130_v54, %s4559_s12  ;;  %v3751_v46 = vmul.f32 %v4474_v13, %v4468_v42 }
 0x429   : > { %v3754_v62 = vmul.f32 %v3751_v46, %v3741_v6  ;;  %v3752_v49 = vmul.f32 %v3751_v46, %v3640_v37 }
 0x42b   : > { %3756 = vrot.lane.b32.xlu1 %v3754_v62, %s4559_s12  ;;  %3753 = vst.msk [vmem:[%s7389_s17 + $0x3] sm:$0x1] %vm1314_vm4, %v3752_v49 }
 0x432   : > { %v3745_v3 = vpop.xlane.xlu0 %3744 }
 0x433   : > { %v3760_v28 = vmul.f32 %v3751_v46, %v3745_v3 }
 0x498   : > { %v2945_v27 = vpop.permute.xlu0 %2944 }
 0x499   : > { %v2133_v10 = vpop.permute.xlu1 %2132  ;;  %2947 = vst.msk [vmem:[%s7389_s17 + $0x2] sm:$0x1] %vm1321_vm5, %v2945_v27 }
 0x49a   : > { %2135 = vst.msk [vmem:[%s7389_s17 + $0x1] sm:$0x1] %vm1321_vm5, %v2133_v10 }
 0x49b   : > { %2949 = vst.msk [vmem:[%s7389_s17 + $0x2] sm:$0x1] %vm1324_vm6, %v2948_v50  ;;  %2137 = vst.msk [vmem:[%s7389_s17 + $0x1] sm:$0x1] %vm1324_vm6, %v2136_v19 }
 0x49d   : > { %v3757_v39 = vpop.permute.xlu1 %3756 }
 0x49e   : > { %3759 = vst.msk [vmem:[%s7389_s17 + $0x3] sm:$0x1] %vm1321_vm5, %v3757_v39 }
 0x49f   : > { %3761 = vst.msk [vmem:[%s7389_s17 + $0x3] sm:$0x1] %vm1324_vm6, %v3760_v28 }
 0x4a0 PF: > { %s18_s24 = sadd.s32 1, %s4554_s24  }
 0x4a1   : > { %p15_p4 = scmp.ge.s32.totalorder %s18_s24, 4  }
 0x4a3   :  { %17 = sbr.rel (!%p15_p4) target bundleno = 1 (0x1), region = 86 }

</bundles_post_ra>
